<compile_context>
chip_gen: v5e
topology: v5e:2x2
jax: 0.10.0
libtpu: 0.0.40
codegen_flags: <defaults>
</compile_context>

<pallas_src>
import functools
import math

import jax
import jax.numpy as jnp
from jax.experimental import pallas as pl
from jax.experimental.pallas import tpu as pltpu

# ---------------- config (small synthetic sizes) ----------------
C = 3            # image channels
IMG = 16         # image H = W
PATCH = 4        # patch size -> 4x4 = 16 patches
N_PATCH = (IMG // PATCH) ** 2
S_IMG = N_PATCH + 1              # +1 CLS token
CPP = C * PATCH * PATCH          # flattened patch length (48)
DIM = 32         # hidden dim
HEADS = 4
DH = DIM // HEADS
MLP = 64
PROJ = 16        # shared CLIP embedding dim
VOCAB = 64
SEQ_T = 8        # text sequence length

LANES = 128      # pack width (one vreg lane row)

# ---- packed weight-matrix row offsets (bf16 slab, shape (rows, 128)); starts % 16 == 0 ----
IW_PATCH, IW_QKV, IW_WO, IW_FC1, IW_FC2, IW_PROJ = 0, 48, 80, 112, 144, 208
IW_ROWS = 240
TW_QKV, TW_WO, TW_FC1, TW_FC2, TW_PROJ = 0, 32, 64, 96, 160
TW_ROWS = 192

# ---- packed bias / LayerNorm vector rows (f32 slab, shape (rows, 128)) ----
(IV_LNPRE_G, IV_LNPRE_B, IV_LN1_G, IV_LN1_B, IV_LN2_G, IV_LN2_B,
 IV_LNPOST_G, IV_LNPOST_B, IV_BQKV, IV_BO, IV_FC1B, IV_FC2B) = range(12)
IV_ROWS = 12
(TV_EMBLN_G, TV_EMBLN_B, TV_LN1_G, TV_LN1_B, TV_LN2_G, TV_LN2_B,
 TV_BQKV, TV_BO, TV_FC1B, TV_FC2B, TV_PROJB) = range(11)
TV_ROWS = 11


# ---------------- in-kernel helpers (traced inside the fused kernels) ----------------
def _bf(x):
    return x.astype(jnp.bfloat16)


def _vrow(ref, r, n):
    """One packed (1, n) bias / LN vector row (static slice of the f32 vector slab)."""
    return ref[r:r + 1, :n]


def _wblk(ref, r, rows, cols):
    """One packed (rows, cols) weight matrix (static slice of the bf16 weight slab)."""
    return ref[r:r + rows, :cols]


def _layernorm(x, g, b, eps=1e-5):
    x = x.astype(jnp.float32)
    mu = jnp.mean(x, axis=-1, keepdims=True)
    var = jnp.mean((x - mu) ** 2, axis=-1, keepdims=True)
    return (x - mu) * jax.lax.rsqrt(var + eps) * g + b


def _fused_mha(x2d, wqkv, bqkv, wo, bo, add_mask, batch, seq):
    """Multi-head self-attention over a fused (B*S, DIM) activation slab.

    One lane-dense bf16 QKV matmul; heads are stacked into the leading batch axis so the
    score / softmax / AV steps are each ONE batched op, and the output projection is a
    single K=DIM matmul (no per-head K=8 accumulated matmuls).  add_mask: (B,1,S) or None.
    """
    scale = 1.0 / math.sqrt(DH)
    qkv = jnp.dot(_bf(x2d), wqkv, preferred_element_type=jnp.float32) + bqkv  # (B*S, 3*DIM)

    def head(h, base):
        col = base + h * DH
        return qkv[:, col:col + DH].reshape(batch, seq, DH)

    # head-major stacking: entry h*batch + b
    q = jnp.concatenate([head(h, 0) for h in range(HEADS)], axis=0) * scale   # (H*B, S, DH)
    k = jnp.concatenate([head(h, DIM) for h in range(HEADS)], axis=0)
    v = jnp.concatenate([head(h, 2 * DIM) for h in range(HEADS)], axis=0)

    s = jnp.einsum("bqd,bkd->bqk", _bf(q), _bf(k),
                   preferred_element_type=jnp.float32)                        # (H*B, S, S)
    if add_mask is not None:
        s = s + jnp.concatenate([add_mask] * HEADS, axis=0)                   # (H*B, 1, S)
    m = jnp.max(s, axis=-1, keepdims=True)
    p = jnp.exp(s - m)
    # approx reciprocal lives on the EUP; ~2^-12 rel. error vs exact softmax division
    p = p * pl.reciprocal(jnp.sum(p, axis=-1, keepdims=True), approx=True)
    o = jnp.einsum("bqk,bkd->bqd", _bf(p), _bf(v),
                   preferred_element_type=jnp.float32)                        # (H*B, S, DH)
    # reassemble heads along lanes once, then one K=DIM output projection
    o = jnp.concatenate(
        [o[h * batch:(h + 1) * batch].reshape(batch * seq, DH) for h in range(HEADS)],
        axis=-1)                                                              # (B*S, DIM)
    return jnp.dot(_bf(o), wo, preferred_element_type=jnp.float32) + bo


# ---------------- fused encoder kernels (one pallas_call per branch) ----------------
def _image_encoder_kernel(patches_ref, poscls_ref, w_ref, v_ref, o_ref, *, batch):
    seq = S_IMG
    # Patch-conv as one matmul.  The CLS slot is a zero patch row and the class embedding
    # is pre-folded into poscls row 0 (init), so no in-kernel concatenation is needed.
    x = jnp.dot(_bf(patches_ref[...]), _wblk(w_ref, IW_PATCH, CPP, DIM),
                preferred_element_type=jnp.float32)
    x = x + jnp.concatenate([poscls_ref[...]] * batch, axis=0)                # (B*S, DIM)
    x = _layernorm(x, _vrow(v_ref, IV_LNPRE_G, DIM), _vrow(v_ref, IV_LNPRE_B, DIM))

    # CLIP pre-LN encoder layer: x += attn(ln1(x)); x += mlp(ln2(x)) (quick_gelu)
    h = _layernorm(x, _vrow(v_ref, IV_LN1_G, DIM), _vrow(v_ref, IV_LN1_B, DIM))
    x = x + _fused_mha(h, _wblk(w_ref, IW_QKV, DIM, 3 * DIM),
                       _vrow(v_ref, IV_BQKV, 3 * DIM),
                       _wblk(w_ref, IW_WO, DIM, DIM), _vrow(v_ref, IV_BO, DIM),
                       None, batch, seq)
    h = _layernorm(x, _vrow(v_ref, IV_LN2_G, DIM), _vrow(v_ref, IV_LN2_B, DIM))
    h = jnp.dot(_bf(h), _wblk(w_ref, IW_FC1, DIM, MLP),
                preferred_element_type=jnp.float32) + _vrow(v_ref, IV_FC1B, MLP)
    h = h * jax.nn.sigmoid(1.702 * h)                                         # quick_gelu
    h = jnp.dot(_bf(h), _wblk(w_ref, IW_FC2, MLP, DIM),
                preferred_element_type=jnp.float32) + _vrow(v_ref, IV_FC2B, DIM)
    x = x + h

    # Batched CLS epilogue: gather the B CLS rows -> one LN, one matmul, one full store.
    cls = jnp.concatenate([x[b * seq:b * seq + 1, :] for b in range(batch)], axis=0)
    cls = _layernorm(cls, _vrow(v_ref, IV_LNPOST_G, DIM), _vrow(v_ref, IV_LNPOST_B, DIM))
    o_ref[...] = jnp.dot(_bf(cls), _wblk(w_ref, IW_PROJ, DIM, PROJ),
                         preferred_element_type=jnp.float32)


def _text_encoder_kernel(x_ref, keep_ref, w_ref, v_ref, o_ref, *, batch):
    seq = SEQ_T
    keep = keep_ref[...]                                   # (B, 1, S) keep-mask in {0,1}
    add_mask = (keep - 1.0) * jnp.float32(1e9)             # additive attention mask
    x = _layernorm(x_ref[...], _vrow(v_ref, TV_EMBLN_G, DIM),
                   _vrow(v_ref, TV_EMBLN_B, DIM))                             # (B*S, DIM)

    # XLM-R style post-LN encoder layer: x = LN(x + attn(x)); x = LN(x + mlp(x))
    a = _fused_mha(x, _wblk(w_ref, TW_QKV, DIM, 3 * DIM),
                   _vrow(v_ref, TV_BQKV, 3 * DIM),
                   _wblk(w_ref, TW_WO, DIM, DIM), _vrow(v_ref, TV_BO, DIM),
                   add_mask, batch, seq)
    x = _layernorm(x + a, _vrow(v_ref, TV_LN1_G, DIM), _vrow(v_ref, TV_LN1_B, DIM))
    h = jnp.dot(_bf(x), _wblk(w_ref, TW_FC1, DIM, MLP),
                preferred_element_type=jnp.float32) + _vrow(v_ref, TV_FC1B, MLP)
    # TODO(synk): HF XLM-R uses exact erf GELU; tanh approximation used here.
    h = jax.nn.gelu(h, approximate=True)
    h = jnp.dot(_bf(h), _wblk(w_ref, TW_FC2, MLP, DIM),
                preferred_element_type=jnp.float32) + _vrow(v_ref, TV_FC2B, DIM)
    x = _layernorm(x + h, _vrow(v_ref, TV_LN2_G, DIM), _vrow(v_ref, TV_LN2_B, DIM))

    # Batched masked-mean pooling (MXU) + final projection + one full store.
    x3 = x.reshape(batch, seq, DIM)
    num = jnp.einsum("bos,bsd->bod", keep, x3, preferred_element_type=jnp.float32)
    cnt = jnp.maximum(jnp.sum(keep, axis=-1, keepdims=True), 1.0)             # all-pad guard
    pooled = (num / cnt).reshape(batch, DIM)
    o_ref[...] = (jnp.dot(_bf(pooled), _wblk(w_ref, TW_PROJ, DIM, PROJ),
                          preferred_element_type=jnp.float32)
                  + _vrow(v_ref, TV_PROJB, PROJ))


# ---------------- wrappers (one pallas_call each; prep is pure XLA layout work) ------
_VSPEC = pl.BlockSpec(memory_space=pltpu.MemorySpace.VMEM)


@jax.jit
def pallas_image_encode(p, x):
    # x: (B, C, H, W) float32, NCHW (PyTorch conv layout)
    B = x.shape[0]
    Hp, Wp = IMG // PATCH, IMG // PATCH
    patches = (x.reshape(B, C, Hp, PATCH, Wp, PATCH)
                 .transpose(0, 2, 4, 1, 3, 5)
                 .reshape(B, Hp * Wp, CPP))
    patches = jnp.pad(patches, ((0, 0), (1, 0), (0, 0))).reshape(B * S_IMG, CPP)
    kernel = functools.partial(_image_encoder_kernel, batch=B)
    return pl.pallas_call(
        kernel,
        out_shape=jax.ShapeDtypeStruct((B, PROJ), jnp.float32),
        in_specs=[_VSPEC] * 4,
        out_specs=_VSPEC,
    )(patches, p["poscls"], p["w_pack"], p["v_pack"])


@jax.jit
def pallas_text_encode(p, input_ids, attention_mask):
    B, S = input_ids.shape
    # Token-embedding gather stays in XLA (data-dependent gather outside the kernel).
    # TODO(synk): XLM-R padding_idx position offset ignored (synthetic weights).
    tok = jnp.take(p["tok_emb"], input_ids, axis=0)                           # (B, S, DIM)
    x = (tok + p["pos_emb"][None, :S]).reshape(B * S, DIM).astype(jnp.float32)
    keep = attention_mask.astype(jnp.float32).reshape(B, 1, S)
    kernel = functools.partial(_text_encoder_kernel, batch=B)
    return pl.pallas_call(
        kernel,
        out_shape=jax.ShapeDtypeStruct((B, PROJ), jnp.float32),
        in_specs=[_VSPEC] * 4,
        out_specs=_VSPEC,
    )(x, keep, p["w_pack"], p["v_pack"])


def clip_res_forward(params, x):
    # mirrors CLIP_RES.forward dispatch: dict input -> text branch, tensor -> image branch
    if isinstance(x, dict):
        return pallas_text_encode(params["text"], x["input_ids"], x["attention_mask"])
    return pallas_image_encode(params["image"], x)


# ---------------- deterministic parameter init + one-time packing ----------------
def _nrm(key, shape, scale=0.02):
    return (scale * jax.random.normal(key, shape)).astype(jnp.float32)


def _pack(entries, rows, dtype):
    """entries: [(row_offset, 2D array)] -> one (rows, 128) slab (one DMA instead of N)."""
    buf = jnp.zeros((rows, LANES), dtype)
    for off, arr in entries:
        r, c = arr.shape
        buf = buf.at[off:off + r, :c].set(arr.astype(dtype))
    return buf


def init_params(key):
    ki, kt = jax.random.split(key)
    ones = jnp.ones((1, DIM), jnp.float32)
    zeros = jnp.zeros((1, DIM), jnp.float32)

    # ---- image tower (miniature ViT-style stand-in for CLIP RN50x64) ----
    k = jax.random.split(ki, 8)
    patch_w = _nrm(k[0], (CPP, DIM))
    cls = _nrm(k[1], (1, DIM))
    pos = _nrm(k[2], (S_IMG, DIM))
    image = {
        "poscls": pos.at[0].add(cls[0]),               # class emb folded into pos row 0
        "w_pack": _pack([(IW_PATCH, patch_w),
                         (IW_QKV, _nrm(k[3], (DIM, 3 * DIM))),
                         (IW_WO, _nrm(k[4], (DIM, DIM))),
                         (IW_FC1, _nrm(k[5], (DIM, MLP))),
                         (IW_FC2, _nrm(k[6], (MLP, DIM))),
                         (IW_PROJ, _nrm(k[7], (DIM, PROJ)))],
                        IW_ROWS, jnp.bfloat16),
        "v_pack": _pack([(IV_LNPRE_G, ones), (IV_LNPRE_B, zeros),
                         (IV_LN1_G, ones), (IV_LN1_B, zeros),
                         (IV_LN2_G, ones), (IV_LN2_B, zeros),
                         (IV_LNPOST_G, ones), (IV_LNPOST_B, zeros),
                         (IV_BQKV, jnp.zeros((1, 3 * DIM), jnp.float32)),
                         (IV_BO, zeros),
                         (IV_FC1B, jnp.zeros((1, MLP), jnp.float32)),
                         (IV_FC2B, zeros)],
                        IV_ROWS, jnp.float32),
    }

    # ---- text tower (miniature XLM-R-style stand-in) ----
    k = jax.random.split(kt, 7)
    text = {
        "tok_emb": _nrm(k[0], (VOCAB, DIM)),
        "pos_emb": _nrm(k[1], (SEQ_T, DIM)),
        "w_pack": _pack([(TW_QKV, _nrm(k[2], (DIM, 3 * DIM))),
                         (TW_WO, _nrm(k[3], (DIM, DIM))),
                         (TW_FC1, _nrm(k[4], (DIM, MLP))),
                         (TW_FC2, _nrm(k[5], (MLP, DIM))),
                         (TW_PROJ, _nrm(k[6], (DIM, PROJ)))],
                        TW_ROWS, jnp.bfloat16),
        "v_pack": _pack([(TV_EMBLN_G, ones), (TV_EMBLN_B, zeros),
                         (TV_LN1_G, ones), (TV_LN1_B, zeros),
                         (TV_LN2_G, ones), (TV_LN2_B, zeros),
                         (TV_BQKV, jnp.zeros((1, 3 * DIM), jnp.float32)),
                         (TV_BO, zeros),
                         (TV_FC1B, jnp.zeros((1, MLP), jnp.float32)),
                         (TV_FC2B, zeros),
                         (TV_PROJB, jnp.zeros((1, PROJ), jnp.float32))],
                        TV_ROWS, jnp.float32),
    }
    return {"image": image, "text": text}
    # TODO(synk): pretrained CLIP RN50x64 / HF tokenizer weights cannot be loaded here;
    # a miniature transformer with synthetic weights stands in for both towers.


if __name__ == "__main__":
    params = init_params(jax.random.PRNGKey(0))

    k1, k2 = jax.random.split(jax.random.PRNGKey(0))
    x_img = jax.random.normal(k1, (2, C, IMG, IMG), jnp.float32)              # image branch
    input_ids = jax.random.randint(k2, (2, SEQ_T), 0, VOCAB, dtype=jnp.int32)
    attention_mask = jnp.array([[1, 1, 1, 1, 1, 1, 0, 0],
                                [1, 1, 1, 1, 0, 0, 0, 0]], dtype=jnp.int32)

    img_feats = clip_res_forward(params, x_img)
    txt_feats = clip_res_forward(params, {"input_ids": input_ids,
                                          "attention_mask": attention_mask})
    jax.block_until_ready((img_feats, txt_feats))

    assert img_feats.shape == (2, PROJ) and txt_feats.shape == (2, PROJ)
    assert bool(jnp.all(jnp.isfinite(img_feats))) and bool(jnp.all(jnp.isfinite(txt_feats)))
    print("KERNEL_OK")
</pallas_src>

<mosaic_0001>
module attributes {stable_mosaic.version = 11 : i64} {
  func.func @_image_encoder_kernel(%arg0: memref<34x48xf32, #tpu.memory_space<vmem>>, %arg1: memref<17x32xf32, #tpu.memory_space<vmem>>, %arg2: memref<240x128xbf16, #tpu.memory_space<vmem>>, %arg3: memref<12x128xf32, #tpu.memory_space<vmem>>, %arg4: memref<2x16xf32, #tpu.memory_space<vmem>>) attributes {dimension_semantics = [], scalar_prefetch = 0 : i64, scratch_operands = 0 : i64, tpu.core_type = #tpu.core_type<tc>} {
    %c0 = arith.constant 0 : index
    %c0_0 = arith.constant 0 : index
    %0 = vector.load %arg0[%c0, %c0_0] : memref<34x48xf32, #tpu.memory_space<vmem>>, vector<34x48xf32>
    %1 = arith.truncf %0 : vector<34x48xf32> to vector<34x48xbf16>
    %c0_1 = arith.constant 0 : index
    %c0_2 = arith.constant 0 : index
    %2 = vector.load %arg2[%c0_1, %c0_2] : memref<240x128xbf16, #tpu.memory_space<vmem>>, vector<48x32xbf16>
    %cst = arith.constant dense<0.000000e+00> : vector<34x32xf32>
    %3 = tpu.matmul %1, %2, %cst {dimension_numbers = #tpu.dot_dimension_numbers<[1], [0], [0], [1], [0, 0, 1, 1], [], []>} : vector<34x48xbf16>, vector<48x32xbf16>, vector<34x32xf32> -> vector<34x32xf32>
    %c0_3 = arith.constant 0 : index
    %c0_4 = arith.constant 0 : index
    %4 = vector.load %arg1[%c0_3, %c0_4] : memref<17x32xf32, #tpu.memory_space<vmem>>, vector<17x32xf32>
    %5 = tpu.concatenate %4, %4 in 0 : vector<17x32xf32>, vector<17x32xf32> -> vector<34x32xf32>
    %6 = arith.addf %3, %5 : vector<34x32xf32>
    %c0_5 = arith.constant 0 : index
    %c0_6 = arith.constant 0 : index
    %7 = vector.load %arg3[%c0_5, %c0_6] : memref<12x128xf32, #tpu.memory_space<vmem>>, vector<1x32xf32>
    %c1 = arith.constant 1 : index
    %c0_7 = arith.constant 0 : index
    %8 = vector.load %arg3[%c1, %c0_7] : memref<12x128xf32, #tpu.memory_space<vmem>>, vector<1x32xf32>
    %cst_8 = arith.constant dense<0.000000e+00> : vector<34xf32>
    %9 = vector.multi_reduction <add>, %6, %cst_8 [1] : vector<34x32xf32> to vector<34xf32>
    %10 = vector.shape_cast %9 : vector<34xf32> to vector<34x1xf32>
    %cst_9 = arith.constant 3.200000e+01 : f32
    %11 = vector.broadcast %cst_9 : f32 to vector<34x1xf32>
    %12 = arith.divf %10, %11 : vector<34x1xf32>
    %13 = vector.broadcast %12 : vector<34x1xf32> to vector<34x32xf32>
    %14 = arith.subf %6, %13 : vector<34x32xf32>
    %15 = arith.mulf %14, %14 : vector<34x32xf32>
    %cst_10 = arith.constant dense<0.000000e+00> : vector<34xf32>
    %16 = vector.multi_reduction <add>, %15, %cst_10 [1] : vector<34x32xf32> to vector<34xf32>
    %17 = vector.shape_cast %16 : vector<34xf32> to vector<34x1xf32>
    %cst_11 = arith.constant 3.200000e+01 : f32
    %18 = vector.broadcast %cst_11 : f32 to vector<34x1xf32>
    %19 = arith.divf %17, %18 : vector<34x1xf32>
    %20 = vector.broadcast %12 : vector<34x1xf32> to vector<34x32xf32>
    %21 = arith.subf %6, %20 : vector<34x32xf32>
    %cst_12 = arith.constant 9.99999974E-6 : f32
    %22 = vector.broadcast %cst_12 : f32 to vector<34x1xf32>
    %23 = arith.addf %19, %22 : vector<34x1xf32>
    %24 = math.rsqrt %23 : vector<34x1xf32>
    %25 = vector.broadcast %24 : vector<34x1xf32> to vector<34x32xf32>
    %26 = arith.mulf %21, %25 : vector<34x32xf32>
    %27 = vector.broadcast %7 : vector<1x32xf32> to vector<34x32xf32>
    %28 = arith.mulf %26, %27 : vector<34x32xf32>
    %29 = vector.broadcast %8 : vector<1x32xf32> to vector<34x32xf32>
    %30 = arith.addf %28, %29 : vector<34x32xf32>
    %c2 = arith.constant 2 : index
    %c0_13 = arith.constant 0 : index
    %31 = vector.load %arg3[%c2, %c0_13] : memref<12x128xf32, #tpu.memory_space<vmem>>, vector<1x32xf32>
    %c3 = arith.constant 3 : index
    %c0_14 = arith.constant 0 : index
    %32 = vector.load %arg3[%c3, %c0_14] : memref<12x128xf32, #tpu.memory_space<vmem>>, vector<1x32xf32>
    %cst_15 = arith.constant dense<0.000000e+00> : vector<34xf32>
    %33 = vector.multi_reduction <add>, %30, %cst_15 [1] : vector<34x32xf32> to vector<34xf32>
    %34 = vector.shape_cast %33 : vector<34xf32> to vector<34x1xf32>
    %cst_16 = arith.constant 3.200000e+01 : f32
    %35 = vector.broadcast %cst_16 : f32 to vector<34x1xf32>
    %36 = arith.divf %34, %35 : vector<34x1xf32>
    %37 = vector.broadcast %36 : vector<34x1xf32> to vector<34x32xf32>
    %38 = arith.subf %30, %37 : vector<34x32xf32>
    %39 = arith.mulf %38, %38 : vector<34x32xf32>
    %cst_17 = arith.constant dense<0.000000e+00> : vector<34xf32>
    %40 = vector.multi_reduction <add>, %39, %cst_17 [1] : vector<34x32xf32> to vector<34xf32>
    %41 = vector.shape_cast %40 : vector<34xf32> to vector<34x1xf32>
    %cst_18 = arith.constant 3.200000e+01 : f32
    %42 = vector.broadcast %cst_18 : f32 to vector<34x1xf32>
    %43 = arith.divf %41, %42 : vector<34x1xf32>
    %44 = vector.broadcast %36 : vector<34x1xf32> to vector<34x32xf32>
    %45 = arith.subf %30, %44 : vector<34x32xf32>
    %cst_19 = arith.constant 9.99999974E-6 : f32
    %46 = vector.broadcast %cst_19 : f32 to vector<34x1xf32>
    %47 = arith.addf %43, %46 : vector<34x1xf32>
    %48 = math.rsqrt %47 : vector<34x1xf32>
    %49 = vector.broadcast %48 : vector<34x1xf32> to vector<34x32xf32>
    %50 = arith.mulf %45, %49 : vector<34x32xf32>
    %51 = vector.broadcast %31 : vector<1x32xf32> to vector<34x32xf32>
    %52 = arith.mulf %50, %51 : vector<34x32xf32>
    %53 = vector.broadcast %32 : vector<1x32xf32> to vector<34x32xf32>
    %54 = arith.addf %52, %53 : vector<34x32xf32>
    %c48 = arith.constant 48 : index
    %c0_20 = arith.constant 0 : index
    %55 = vector.load %arg2[%c48, %c0_20] : memref<240x128xbf16, #tpu.memory_space<vmem>>, vector<32x96xbf16>
    %c8 = arith.constant 8 : index
    %c0_21 = arith.constant 0 : index
    %56 = vector.load %arg3[%c8, %c0_21] : memref<12x128xf32, #tpu.memory_space<vmem>>, vector<1x96xf32>
    %c80 = arith.constant 80 : index
    %c0_22 = arith.constant 0 : index
    %57 = vector.load %arg2[%c80, %c0_22] : memref<240x128xbf16, #tpu.memory_space<vmem>>, vector<32x32xbf16>
    %c9 = arith.constant 9 : index
    %c0_23 = arith.constant 0 : index
    %58 = vector.load %arg3[%c9, %c0_23] : memref<12x128xf32, #tpu.memory_space<vmem>>, vector<1x32xf32>
    %59 = arith.truncf %54 : vector<34x32xf32> to vector<34x32xbf16>
    %cst_24 = arith.constant dense<0.000000e+00> : vector<34x96xf32>
    %60 = tpu.matmul %59, %55, %cst_24 {dimension_numbers = #tpu.dot_dimension_numbers<[1], [0], [0], [1], [0, 0, 1, 1], [], []>} : vector<34x32xbf16>, vector<32x96xbf16>, vector<34x96xf32> -> vector<34x96xf32>
    %61 = vector.broadcast %56 : vector<1x96xf32> to vector<34x96xf32>
    %62 = arith.addf %60, %61 : vector<34x96xf32>
    %63 = vector.extract_strided_slice %62 {offsets = [0, 0], sizes = [34, 8], strides = [1, 1]} : vector<34x96xf32> to vector<34x8xf32>
    %64 = vector.shape_cast %63 : vector<34x8xf32> to vector<2x17x8xf32>
    %65 = vector.extract_strided_slice %62 {offsets = [0, 8], sizes = [34, 8], strides = [1, 1]} : vector<34x96xf32> to vector<34x8xf32>
    %66 = vector.shape_cast %65 : vector<34x8xf32> to vector<2x17x8xf32>
    %67 = vector.extract_strided_slice %62 {offsets = [0, 16], sizes = [34, 8], strides = [1, 1]} : vector<34x96xf32> to vector<34x8xf32>
    %68 = vector.shape_cast %67 : vector<34x8xf32> to vector<2x17x8xf32>
    %69 = vector.extract_strided_slice %62 {offsets = [0, 24], sizes = [34, 8], strides = [1, 1]} : vector<34x96xf32> to vector<34x8xf32>
    %70 = vector.shape_cast %69 : vector<34x8xf32> to vector<2x17x8xf32>
    %71 = tpu.concatenate %64, %66, %68, %70 in 0 : vector<2x17x8xf32>, vector<2x17x8xf32>, vector<2x17x8xf32>, vector<2x17x8xf32> -> vector<8x17x8xf32>
    %cst_25 = arith.constant 0.353553385 : f32
    %72 = vector.broadcast %cst_25 : f32 to vector<8x17x8xf32>
    %73 = arith.mulf %71, %72 : vector<8x17x8xf32>
    %74 = vector.extract_strided_slice %62 {offsets = [0, 32], sizes = [34, 8], strides = [1, 1]} : vector<34x96xf32> to vector<34x8xf32>
    %75 = vector.shape_cast %74 : vector<34x8xf32> to vector<2x17x8xf32>
    %76 = vector.extract_strided_slice %62 {offsets = [0, 40], sizes = [34, 8], strides = [1, 1]} : vector<34x96xf32> to vector<34x8xf32>
    %77 = vector.shape_cast %76 : vector<34x8xf32> to vector<2x17x8xf32>
    %78 = vector.extract_strided_slice %62 {offsets = [0, 48], sizes = [34, 8], strides = [1, 1]} : vector<34x96xf32> to vector<34x8xf32>
    %79 = vector.shape_cast %78 : vector<34x8xf32> to vector<2x17x8xf32>
    %80 = vector.extract_strided_slice %62 {offsets = [0, 56], sizes = [34, 8], strides = [1, 1]} : vector<34x96xf32> to vector<34x8xf32>
    %81 = vector.shape_cast %80 : vector<34x8xf32> to vector<2x17x8xf32>
    %82 = tpu.concatenate %75, %77, %79, %81 in 0 : vector<2x17x8xf32>, vector<2x17x8xf32>, vector<2x17x8xf32>, vector<2x17x8xf32> -> vector<8x17x8xf32>
    %83 = vector.extract_strided_slice %62 {offsets = [0, 64], sizes = [34, 8], strides = [1, 1]} : vector<34x96xf32> to vector<34x8xf32>
    %84 = vector.shape_cast %83 : vector<34x8xf32> to vector<2x17x8xf32>
    %85 = vector.extract_strided_slice %62 {offsets = [0, 72], sizes = [34, 8], strides = [1, 1]} : vector<34x96xf32> to vector<34x8xf32>
    %86 = vector.shape_cast %85 : vector<34x8xf32> to vector<2x17x8xf32>
    %87 = vector.extract_strided_slice %62 {offsets = [0, 80], sizes = [34, 8], strides = [1, 1]} : vector<34x96xf32> to vector<34x8xf32>
    %88 = vector.shape_cast %87 : vector<34x8xf32> to vector<2x17x8xf32>
    %89 = vector.extract_strided_slice %62 {offsets = [0, 88], sizes = [34, 8], strides = [1, 1]} : vector<34x96xf32> to vector<34x8xf32>
    %90 = vector.shape_cast %89 : vector<34x8xf32> to vector<2x17x8xf32>
    %91 = tpu.concatenate %84, %86, %88, %90 in 0 : vector<2x17x8xf32>, vector<2x17x8xf32>, vector<2x17x8xf32>, vector<2x17x8xf32> -> vector<8x17x8xf32>
    %92 = arith.truncf %73 : vector<8x17x8xf32> to vector<8x17x8xbf16>
    %93 = arith.truncf %82 : vector<8x17x8xf32> to vector<8x17x8xbf16>
    "tpu.trace_start"() <{level = 10 : i32, message = "bqd,bkd->bqk"}> : () -> ()
    %cst_26 = arith.constant dense<0.000000e+00> : vector<8x17x17xf32>
    %94 = tpu.matmul %92, %93, %cst_26 {dimension_numbers = #tpu.dot_dimension_numbers<[2], [2], [1], [1], [0, 0, 0, 1, 1, 1], [0], [0]>} : vector<8x17x8xbf16>, vector<8x17x8xbf16>, vector<8x17x17xf32> -> vector<8x17x17xf32>
    "tpu.trace_stop"() : () -> ()
    %cst_27 = arith.constant dense<0xFF800000> : vector<8x17xf32>
    %95 = vector.multi_reduction <maximumf>, %94, %cst_27 [2] : vector<8x17x17xf32> to vector<8x17xf32>
    %96 = vector.shape_cast %95 : vector<8x17xf32> to vector<8x17x1xf32>
    %97 = vector.broadcast %96 : vector<8x17x1xf32> to vector<8x17x17xf32>
    %98 = arith.subf %94, %97 : vector<8x17x17xf32>
    %99 = math.exp %98 : vector<8x17x17xf32>
    %cst_28 = arith.constant dense<0.000000e+00> : vector<8x17xf32>
    %100 = vector.multi_reduction <add>, %99, %cst_28 [2] : vector<8x17x17xf32> to vector<8x17xf32>
    %101 = vector.shape_cast %100 : vector<8x17xf32> to vector<8x17x1xf32>
    %102 = tpu.reciprocal %101 {approx = true} : vector<8x17x1xf32> -> vector<8x17x1xf32>
    %103 = vector.broadcast %102 : vector<8x17x1xf32> to vector<8x17x17xf32>
    %104 = arith.mulf %99, %103 : vector<8x17x17xf32>
    %105 = arith.truncf %104 : vector<8x17x17xf32> to vector<8x17x17xbf16>
    %106 = arith.truncf %91 : vector<8x17x8xf32> to vector<8x17x8xbf16>
    "tpu.trace_start"() <{level = 10 : i32, message = "bqk,bkd->bqd"}> : () -> ()
    %cst_29 = arith.constant dense<0.000000e+00> : vector<8x17x8xf32>
    %107 = tpu.matmul %105, %106, %cst_29 {dimension_numbers = #tpu.dot_dimension_numbers<[2], [1], [1], [2], [0, 0, 0, 1, 1, 2], [0], [0]>} : vector<8x17x17xbf16>, vector<8x17x8xbf16>, vector<8x17x8xf32> -> vector<8x17x8xf32>
    "tpu.trace_stop"() : () -> ()
    %108 = vector.extract_strided_slice %107 {offsets = [0, 0, 0], sizes = [2, 17, 8], strides = [1, 1, 1]} : vector<8x17x8xf32> to vector<2x17x8xf32>
    %109 = vector.shape_cast %108 : vector<2x17x8xf32> to vector<34x8xf32>
    %110 = vector.extract_strided_slice %107 {offsets = [2, 0, 0], sizes = [2, 17, 8], strides = [1, 1, 1]} : vector<8x17x8xf32> to vector<2x17x8xf32>
    %111 = vector.shape_cast %110 : vector<2x17x8xf32> to vector<34x8xf32>
    %112 = vector.extract_strided_slice %107 {offsets = [4, 0, 0], sizes = [2, 17, 8], strides = [1, 1, 1]} : vector<8x17x8xf32> to vector<2x17x8xf32>
    %113 = vector.shape_cast %112 : vector<2x17x8xf32> to vector<34x8xf32>
    %114 = vector.extract_strided_slice %107 {offsets = [6, 0, 0], sizes = [2, 17, 8], strides = [1, 1, 1]} : vector<8x17x8xf32> to vector<2x17x8xf32>
    %115 = vector.shape_cast %114 : vector<2x17x8xf32> to vector<34x8xf32>
    %116 = tpu.concatenate %109, %111, %113, %115 in 1 : vector<34x8xf32>, vector<34x8xf32>, vector<34x8xf32>, vector<34x8xf32> -> vector<34x32xf32>
    %117 = arith.truncf %116 : vector<34x32xf32> to vector<34x32xbf16>
    %cst_30 = arith.constant dense<0.000000e+00> : vector<34x32xf32>
    %118 = tpu.matmul %117, %57, %cst_30 {dimension_numbers = #tpu.dot_dimension_numbers<[1], [0], [0], [1], [0, 0, 1, 1], [], []>} : vector<34x32xbf16>, vector<32x32xbf16>, vector<34x32xf32> -> vector<34x32xf32>
    %119 = vector.broadcast %58 : vector<1x32xf32> to vector<34x32xf32>
    %120 = arith.addf %118, %119 : vector<34x32xf32>
    %121 = arith.addf %30, %120 : vector<34x32xf32>
    %c4 = arith.constant 4 : index
    %c0_31 = arith.constant 0 : index
    %122 = vector.load %arg3[%c4, %c0_31] : memref<12x128xf32, #tpu.memory_space<vmem>>, vector<1x32xf32>
    %c5 = arith.constant 5 : index
    %c0_32 = arith.constant 0 : index
    %123 = vector.load %arg3[%c5, %c0_32] : memref<12x128xf32, #tpu.memory_space<vmem>>, vector<1x32xf32>
    %cst_33 = arith.constant dense<0.000000e+00> : vector<34xf32>
    %124 = vector.multi_reduction <add>, %121, %cst_33 [1] : vector<34x32xf32> to vector<34xf32>
    %125 = vector.shape_cast %124 : vector<34xf32> to vector<34x1xf32>
    %cst_34 = arith.constant 3.200000e+01 : f32
    %126 = vector.broadcast %cst_34 : f32 to vector<34x1xf32>
    %127 = arith.divf %125, %126 : vector<34x1xf32>
    %128 = vector.broadcast %127 : vector<34x1xf32> to vector<34x32xf32>
    %129 = arith.subf %121, %128 : vector<34x32xf32>
    %130 = arith.mulf %129, %129 : vector<34x32xf32>
    %cst_35 = arith.constant dense<0.000000e+00> : vector<34xf32>
    %131 = vector.multi_reduction <add>, %130, %cst_35 [1] : vector<34x32xf32> to vector<34xf32>
    %132 = vector.shape_cast %131 : vector<34xf32> to vector<34x1xf32>
    %cst_36 = arith.constant 3.200000e+01 : f32
    %133 = vector.broadcast %cst_36 : f32 to vector<34x1xf32>
    %134 = arith.divf %132, %133 : vector<34x1xf32>
    %135 = vector.broadcast %127 : vector<34x1xf32> to vector<34x32xf32>
    %136 = arith.subf %121, %135 : vector<34x32xf32>
    %cst_37 = arith.constant 9.99999974E-6 : f32
    %137 = vector.broadcast %cst_37 : f32 to vector<34x1xf32>
    %138 = arith.addf %134, %137 : vector<34x1xf32>
    %139 = math.rsqrt %138 : vector<34x1xf32>
    %140 = vector.broadcast %139 : vector<34x1xf32> to vector<34x32xf32>
    %141 = arith.mulf %136, %140 : vector<34x32xf32>
    %142 = vector.broadcast %122 : vector<1x32xf32> to vector<34x32xf32>
    %143 = arith.mulf %141, %142 : vector<34x32xf32>
    %144 = vector.broadcast %123 : vector<1x32xf32> to vector<34x32xf32>
    %145 = arith.addf %143, %144 : vector<34x32xf32>
    %146 = arith.truncf %145 : vector<34x32xf32> to vector<34x32xbf16>
    %c112 = arith.constant 112 : index
    %c0_38 = arith.constant 0 : index
    %147 = vector.load %arg2[%c112, %c0_38] : memref<240x128xbf16, #tpu.memory_space<vmem>>, vector<32x64xbf16>
    %cst_39 = arith.constant dense<0.000000e+00> : vector<34x64xf32>
    %148 = tpu.matmul %146, %147, %cst_39 {dimension_numbers = #tpu.dot_dimension_numbers<[1], [0], [0], [1], [0, 0, 1, 1], [], []>} : vector<34x32xbf16>, vector<32x64xbf16>, vector<34x64xf32> -> vector<34x64xf32>
    %c10 = arith.constant 10 : index
    %c0_40 = arith.constant 0 : index
    %149 = vector.load %arg3[%c10, %c0_40] : memref<12x128xf32, #tpu.memory_space<vmem>>, vector<1x64xf32>
    %150 = vector.broadcast %149 : vector<1x64xf32> to vector<34x64xf32>
    %151 = arith.addf %148, %150 : vector<34x64xf32>
    %cst_41 = arith.constant 1.702000e+00 : f32
    %152 = vector.broadcast %cst_41 : f32 to vector<34x64xf32>
    %153 = arith.mulf %152, %151 : vector<34x64xf32>
    %154 = arith.negf %153 : vector<34x64xf32>
    %155 = math.exp %154 : vector<34x64xf32>
    %cst_42 = arith.constant 1.000000e+00 : f32
    %156 = vector.broadcast %cst_42 : f32 to vector<34x64xf32>
    %157 = arith.addf %156, %155 : vector<34x64xf32>
    %158 = arith.divf %156, %157 : vector<34x64xf32>
    %159 = arith.mulf %151, %158 : vector<34x64xf32>
    %160 = arith.truncf %159 : vector<34x64xf32> to vector<34x64xbf16>
    %c144 = arith.constant 144 : index
    %c0_43 = arith.constant 0 : index
    %161 = vector.load %arg2[%c144, %c0_43] : memref<240x128xbf16, #tpu.memory_space<vmem>>, vector<64x32xbf16>
    %cst_44 = arith.constant dense<0.000000e+00> : vector<34x32xf32>
    %162 = tpu.matmul %160, %161, %cst_44 {dimension_numbers = #tpu.dot_dimension_numbers<[1], [0], [0], [1], [0, 0, 1, 1], [], []>} : vector<34x64xbf16>, vector<64x32xbf16>, vector<34x32xf32> -> vector<34x32xf32>
    %c11 = arith.constant 11 : index
    %c0_45 = arith.constant 0 : index
    %163 = vector.load %arg3[%c11, %c0_45] : memref<12x128xf32, #tpu.memory_space<vmem>>, vector<1x32xf32>
    %164 = vector.broadcast %163 : vector<1x32xf32> to vector<34x32xf32>
    %165 = arith.addf %162, %164 : vector<34x32xf32>
    %166 = arith.addf %121, %165 : vector<34x32xf32>
    %167 = vector.extract_strided_slice %166 {offsets = [0, 0], sizes = [1, 32], strides = [1, 1]} : vector<34x32xf32> to vector<1x32xf32>
    %168 = vector.extract_strided_slice %166 {offsets = [17, 0], sizes = [1, 32], strides = [1, 1]} : vector<34x32xf32> to vector<1x32xf32>
    %169 = tpu.concatenate %167, %168 in 0 : vector<1x32xf32>, vector<1x32xf32> -> vector<2x32xf32>
    %c6 = arith.constant 6 : index
    %c0_46 = arith.constant 0 : index
    %170 = vector.load %arg3[%c6, %c0_46] : memref<12x128xf32, #tpu.memory_space<vmem>>, vector<1x32xf32>
    %c7 = arith.constant 7 : index
    %c0_47 = arith.constant 0 : index
    %171 = vector.load %arg3[%c7, %c0_47] : memref<12x128xf32, #tpu.memory_space<vmem>>, vector<1x32xf32>
    %cst_48 = arith.constant dense<0.000000e+00> : vector<2xf32>
    %172 = vector.multi_reduction <add>, %169, %cst_48 [1] : vector<2x32xf32> to vector<2xf32>
    %173 = vector.shape_cast %172 : vector<2xf32> to vector<2x1xf32>
    %cst_49 = arith.constant 3.200000e+01 : f32
    %174 = vector.broadcast %cst_49 : f32 to vector<2x1xf32>
    %175 = arith.divf %173, %174 : vector<2x1xf32>
    %176 = vector.broadcast %175 : vector<2x1xf32> to vector<2x32xf32>
    %177 = arith.subf %169, %176 : vector<2x32xf32>
    %178 = arith.mulf %177, %177 : vector<2x32xf32>
    %cst_50 = arith.constant dense<0.000000e+00> : vector<2xf32>
    %179 = vector.multi_reduction <add>, %178, %cst_50 [1] : vector<2x32xf32> to vector<2xf32>
    %180 = vector.shape_cast %179 : vector<2xf32> to vector<2x1xf32>
    %cst_51 = arith.constant 3.200000e+01 : f32
    %181 = vector.broadcast %cst_51 : f32 to vector<2x1xf32>
    %182 = arith.divf %180, %181 : vector<2x1xf32>
    %183 = vector.broadcast %175 : vector<2x1xf32> to vector<2x32xf32>
    %184 = arith.subf %169, %183 : vector<2x32xf32>
    %cst_52 = arith.constant 9.99999974E-6 : f32
    %185 = vector.broadcast %cst_52 : f32 to vector<2x1xf32>
    %186 = arith.addf %182, %185 : vector<2x1xf32>
    %187 = math.rsqrt %186 : vector<2x1xf32>
    %188 = vector.broadcast %187 : vector<2x1xf32> to vector<2x32xf32>
    %189 = arith.mulf %184, %188 : vector<2x32xf32>
    %190 = vector.broadcast %170 : vector<1x32xf32> to vector<2x32xf32>
    %191 = arith.mulf %189, %190 : vector<2x32xf32>
    %192 = vector.broadcast %171 : vector<1x32xf32> to vector<2x32xf32>
    %193 = arith.addf %191, %192 : vector<2x32xf32>
    %194 = arith.truncf %193 : vector<2x32xf32> to vector<2x32xbf16>
    %c208 = arith.constant 208 : index
    %c0_53 = arith.constant 0 : index
    %195 = vector.load %arg2[%c208, %c0_53] : memref<240x128xbf16, #tpu.memory_space<vmem>>, vector<32x16xbf16>
    %cst_54 = arith.constant dense<0.000000e+00> : vector<2x16xf32>
    %196 = tpu.matmul %194, %195, %cst_54 {dimension_numbers = #tpu.dot_dimension_numbers<[1], [0], [0], [1], [0, 0, 1, 1], [], []>} : vector<2x32xbf16>, vector<32x16xbf16>, vector<2x16xf32> -> vector<2x16xf32>
    %c0_55 = arith.constant 0 : index
    %c0_56 = arith.constant 0 : index
    %197 = vector.load %arg4[%c0_55, %c0_56] : memref<2x16xf32, #tpu.memory_space<vmem>>, vector<2x16xf32>
    tpu.vector_store %arg4[%c0_55, %c0_56], %196 {strides = array<i32>} : memref<2x16xf32, #tpu.memory_space<vmem>>, vector<2x16xf32>,
    return
  }
}

</mosaic_0001>

<bundles_post_ra>
// kernel: pallas_image_encode.1
= control target key start
LH: loop header
LB: loop body
LE: loop exit
PB: predicated region body
PF: predicated region fallthrough
CT: control target
= control target key end

     0   :  { %s5947_s0 = inlined_call_operand.vmem [shape: f32[34,48], index: 0, kind: input, shape index: {}]   ;;  %s5948_s1 = inlined_call_operand.vmem [shape: f32[17,32], index: 1, kind: input, shape index: {}]   ;;  %s5949_s2 = inlined_call_operand.vmem [shape: bf16[240,128], index: 2, kind: input, shape index: {}]   ;;  %s5950_s3 = inlined_call_operand.vmem [shape: f32[12,128], index: 3, kind: input, shape index: {}]   ;;  %s5951_s4 = inlined_call_operand.hbm [shape: f32[2,16], index: 4, kind: output, shape index: {}]  }
   0x1   :  { %v3764_v0 = vld [vmem:[%s5949_s2 + $0x10] sm:$0xff]  ;;  %v3763_v1 = vld [vmem:[%s5949_s2 + $0x8] sm:$0xff]  ;;  %v3762_v2 = vld [vmem:[%s5949_s2] sm:$0xff] }
   0x2   :  { %82 = vmatpush.bf16.msra.mxu0 %v3764_v0  ;;  %v19_v3 = vld [vmem:[%s5947_s0] sm:$0xff]  ;;  %v20_v4 = vld [vmem:[%s5947_s0 + $0x8] sm:$0xff] }
   0x6   :  { %83 = vmatpush.bf16.msra.mxu0 %v3763_v1 }
   0x7   :  { %9 = vsyncpa [#allocation3], 0  ;;  %v24_v5 = vpack.c.bf16 %v20_v4, %v19_v3  ;;  %vm67_vm0 = vcmask 392192   ;;  %v21_v6 = vld [vmem:[%s5947_s0 + $0x10] sm:$0xff]  ;;  %v22_v7 = vld [vmem:[%s5947_s0 + $0x18] sm:$0xff]  ;;  %vm102_vm1 = vcmask 261120  }
   0x8   :  { %v25_v8 = vpack.c.bf16 %v22_v7, %v21_v6  ;;  %v23_v9 = vld [vmem:[%s5947_s0 + $0x20] sm:$0x3]  ;;  %v34_v15 = vld [vmem:[%s5948_s1 + $0x8] sm:$0xff]  ;;  %v35_v20 = vld [vmem:[%s5948_s1 + $0x10] sm:$0x1]  ;;  %vm39_vm2 = vcmask 1040384  }
   0x9   :  { %v26_v10 = vpack.c.bf16 %v23_v9, %v23_v9  ;;  %v33_v11 = vld [vmem:[%s5948_s1] sm:$0xff]  ;;  %v41_v24 = vrot.slane %v34_v15, 7  ;;  %v43_v29 = vrot.slane %v35_v20, 7  ;;  %vm115_vm3 = vcmask 254976   ;;  %s4009_s23 = smov 112   ;;  %s4010_s24 = smov 120  }
   0xa   :  { %84 = vmatpush.bf16.msra.mxu0 %v3762_v2  ;;  %v40_v18 = vrot.slane %v33_v11, 7  ;;  %v4008_v36 = vmov 32.0   ;;  %s4011_s25 = smov 104   ;;  %s4012_s26 = smov 96  }
   0xb   :  { %v44_v31 = vsel %vm39_vm2, %v41_v24, %v43_v29  ;;  %3832 = vrcp.f32 %v4008_v36  ;;  %s4013_s27 = smov 64   ;;  %s4015_s28 = smov 8  }
   0xc   :  { %v48_v21 = vsel %vm39_vm2, %v35_v20, %v40_v18  ;;  %v42_v26 = vsel %vm39_vm2, %v40_v18, %v41_v24  ;;  %s4016_s29 = smov 16   ;;  %s4017_s30 = smov 24  }
   0xd   :  { %3661 = vmatmul.msk.bf16.vlgmr.msra.gmra.mxu0 %vm67_vm0, %v24_v5  ;;  %s4018_s9 = smov [#allocation2]   ;;  %s3640_s12 = sshll.u32 %s5951_s4, 4  ;;  %s3641_s12 = int_to_ptr.hbm [resolvable:$true] %s3640_s12 }
   0xe   :  { %s3638_s1 = sshll.u32 %s4018_s9, 4  ;;  %s3639_s1 = int_to_ptr.vmem [resolvable:$true] %s3638_s1 }
  0x11   :  { %v3833_v37 = vpop.eup %3832 }
  0x12   :  { %v120_v38 = vmul.f32 32.0, %v3833_v37  ;;  %vm124_vm4 = vweird.f32 %v3833_v37 }
  0x14   :  { %v121_v39 = vsub.f32 1.0, %v120_v38 }
  0x16   :  { %v122_v40 = vmul.f32 %v3833_v37, %v121_v39 }
  0x18   :  { %v123_v41 = vadd.f32 %v3833_v37, %v122_v40 }
  0x1a   :  { %v4085_v42 = vsel %vm124_vm4, %v3833_v37, %v123_v41 }
  0x1b   :  { %6147 = vst [vmem:[#allocation5_spill] sm:$0xff] %v4085_v42 }
  0x1d   :  { %3662 = vmatmul.msk.bf16.gmra.mxu0 %vm67_vm0, %v25_v8 }
  0x2d   :  { %3663 = vmatmul.msk.bf16.gmra.mxu0 %vm67_vm0, %v26_v10 }
  0x8a   :  { %v86_v12 = vpop.f32.mrf.mxu0 }
  0x8b   :  { %v87_v13 = vadd.f32 %v86_v12, %v33_v11 }
  0x8d   :  { %v103_v14 = vsel %vm102_vm1, %v87_v13, 0.0 }
  0x8e   :  { %104 = vadd.xlane.f32.xlu0 %v103_v14 }
  0x92   :  { %v88_v16 = vpop.f32.mrf.mxu0 }
  0x93   :  { %v89_v17 = vadd.f32 %v88_v16, %v34_v15 }
  0x95   :  { %v106_v19 = vsel %vm102_vm1, %v89_v17, 0.0 }
  0x96   :  { %107 = vadd.xlane.f32.xlu0 %v106_v19 }
  0x9a   :  { %v91_v22 = vpop.f32.mrf.mxu0 }
  0x9b   :  { %v92_v23 = vadd.f32 %v91_v22, %v48_v21  ;;  %v4119_v21 = vld [vmem:[%s5950_s3] ss:$0 sm:$0xff] }
  0x9d   :  { %v109_v25 = vsel %vm102_vm1, %v92_v23, 0.0 }
  0x9e   :  { %110 = vadd.xlane.f32.xlu1 %v109_v25  ;;  %v4124_v25 = vld [vmem:[%s5950_s3 + $0x1] ss:$0 sm:$0xff] }
  0xa2   :  { %v93_v27 = vpop.f32.mrf.mxu0 }
  0xa3   :  { %v94_v28 = vadd.f32 %v93_v27, %v42_v26 }
  0xa5   :  { %v112_v30 = vsel %vm102_vm1, %v94_v28, 0.0 }
  0xa6   :  { %113 = vadd.xlane.f32.xlu1 %v112_v30 }
  0xaa   :  { %v96_v32 = vpop.f32.mrf.mxu0 }
  0xab   :  { %v97_v33 = vadd.f32 %v96_v32, %v44_v31 }
  0xad   :  { %v116_v34 = vsel %vm115_vm3, %v97_v33, 0.0 }
  0xae   :  { %117 = vadd.xlane.f32.xlu2 %v116_v34 }
  0xb2   :  { %v98_v35 = vpop.f32.mrf.mxu0 }
 0x101   :  { %v105_v43 = vpop.xlane.xlu0 %104 }
 0x102   :  { %v126_v44 = vmul.f32 %v4085_v42, %v105_v43 }
 0x104   :  { %v131_v45 = vsub.f32 %v87_v13, %v126_v44 }
 0x106   :  { %v136_v46 = vmul.f32 %v131_v45, %v131_v45 }
 0x108   :  { %v141_v47 = vsel %vm102_vm1, %v136_v46, 0.0 }
 0x109   :  { %142 = vadd.xlane.f32.xlu2 %v141_v47  ;;  %v108_v48 = vpop.xlane.xlu0 %107 }
 0x10a   :  { %v127_v49 = vmul.f32 %v4085_v42, %v108_v48 }
 0x10c   :  { %v4090_v50 = vsub.f32 %v89_v17, %v127_v49 }
 0x10e   :  { %v137_v51 = vmul.f32 %v4090_v50, %v4090_v50 }
 0x110   :  { %v144_v52 = vsel %vm102_vm1, %v137_v51, 0.0 }
 0x111   :  { %v111_v53 = vpop.xlane.xlu1 %110  ;;  %145 = vadd.xlane.f32.xlu0 %v144_v52 }
 0x112   :  { %v128_v54 = vmul.f32 %v4085_v42, %v111_v53 }
 0x114   :  { %v4096_v55 = vsub.f32 %v92_v23, %v128_v54 }
 0x116   :  { %v138_v56 = vmul.f32 %v4096_v55, %v4096_v55 }
 0x118   :  { %v147_v57 = vsel %vm102_vm1, %v138_v56, 0.0 }
 0x119   :  { %148 = vadd.xlane.f32.xlu1 %v147_v57  ;;  %v114_v58 = vpop.xlane.xlu1 %113 }
 0x11a   :  { %v129_v59 = vmul.f32 %v4085_v42, %v114_v58 }
 0x11c   :  { %v4102_v60 = vsub.f32 %v94_v28, %v129_v59 }
 0x11e   :  { %v139_v61 = vmul.f32 %v4102_v60, %v4102_v60 }
 0x120   :  { %v150_v62 = vsel %vm102_vm1, %v139_v61, 0.0 }
 0x121   :  { %v118_v63 = vpop.xlane.xlu2 %117  ;;  %151 = vadd.xlane.f32.xlu2 %v150_v62 }
 0x122   :  { %v130_v0 = vmul.f32 %v4085_v42, %v118_v63 }
 0x124   :  { %v4108_v1 = vsub.f32 %v97_v33, %v130_v0 }
 0x126   :  { %v140_v2 = vmul.f32 %v4108_v1, %v4108_v1 }
 0x128   :  { %v153_v3 = vsel %vm115_vm3, %v140_v2, 0.0 }
 0x129   :  { %154 = vadd.xlane.f32.xlu0 %v153_v3 }
 0x17c   :  { %v143_v4 = vpop.xlane.xlu2 %142 }
 0x17d   :  { %v156_v5 = vmul.f32 %v143_v4, %v4085_v42 }
 0x17f   :  { %v161_v6 = vadd.f32 1e-05, %v156_v5 }
 0x181   :  { %3834 = vrsqrt.f32 %v161_v6  ;;  %vm172_vm6 = vweird.f32 %v161_v6 }
 0x184   :  { %v146_v7 = vpop.xlane.xlu0 %145 }
 0x185   :  { %v157_v8 = vmul.f32 %v146_v7, %v4085_v42 }
 0x187   :  { %v3835_v9 = vpop.eup %3834  ;;  %v162_v10 = vadd.f32 1e-05, %v157_v8 }
 0x188   :  { %v167_v11 = vmul.f32 %v3835_v9, %v161_v6  ;;  %vm173_vm5 = vweird.f32 %v3835_v9 }
 0x189   :  { %3836 = vrsqrt.f32 %v162_v10  ;;  %vm174_vm7 = vmor %vm172_vm6, %vm173_vm5  ;;  %vm182_vm9 = vweird.f32 %v162_v10 }
 0x18a   :  { %v168_v12 = vmul.f32 %v3835_v9, %v167_v11 }
 0x18c   :  { %v169_v13 = vmul.f32 0.5, %v168_v12  ;;  %v149_v14 = vpop.xlane.xlu1 %148 }
 0x18d   :  { %v158_v15 = vmul.f32 %v149_v14, %v4085_v42 }
 0x18e   :  { %v170_v16 = vsub.f32 1.5, %v169_v13 }
 0x18f   :  { %v3837_v17 = vpop.eup %3836  ;;  %v163_v18 = vadd.f32 1e-05, %v158_v15 }
 0x190   :  { %v171_v19 = vmul.f32 %v3835_v9, %v170_v16  ;;  %v177_v20 = vmul.f32 %v3837_v17, %v162_v10  ;;  %vm183_vm8 = vweird.f32 %v3837_v17 }
 0x191   :  { %3838 = vrsqrt.f32 %v163_v18  ;;  %vm184_vm10 = vmor %vm182_vm9, %vm183_vm8  ;;  %vm192_vm12 = vweird.f32 %v163_v18 }
 0x192   :  { %v178_v22 = vmul.f32 %v3837_v17, %v177_v20  ;;  %v175_v23 = vsel %vm174_vm7, %v3835_v9, %v171_v19 }
 0x193   :  { %v216_v24 = vmul.f32 %v175_v23, %v131_v45 }
 0x194   :  { %v179_v26 = vmul.f32 0.5, %v178_v22  ;;  %v152_v27 = vpop.xlane.xlu2 %151 }
 0x195   :  { %v159_v28 = vmul.f32 %v152_v27, %v4085_v42  ;;  %v222_v29 = vmul.f32 %v4119_v21, %v216_v24 }
 0x196   :  { %v180_v30 = vsub.f32 1.5, %v179_v26 }
 0x197   :  { %v3839_v31 = vpop.eup %3838  ;;  %v164_v32 = vadd.f32 1e-05, %v159_v28  ;;  %v4129_v33 = vadd.f32 %v4124_v25, %v222_v29 }
 0x198   :  { %v181_v34 = vmul.f32 %v3837_v17, %v180_v30  ;;  %v187_v35 = vmul.f32 %v3839_v31, %v163_v18  ;;  %vm193_vm11 = vweird.f32 %v3839_v31 }
 0x199   :  { %6148 = vst [vmem:[#allocation6_spill] sm:$0xff] %v4129_v33  ;;  %3840 = vrsqrt.f32 %v164_v32  ;;  %v235_v36 = vsel %vm102_vm1, %v4129_v33, 0.0  ;;  %vm194_vm13 = vmor %vm192_vm12, %vm193_vm11  ;;  %vm202_vm15 = vweird.f32 %v164_v32 }
 0x19a   :  { %v188_v37 = vmul.f32 %v3839_v31, %v187_v35  ;;  %236 = vadd.xlane.f32.xlu1 %v235_v36  ;;  %v185_v38 = vsel %vm184_vm10, %v3837_v17, %v181_v34 }
 0x19b   :  { %v217_v39 = vmul.f32 %v185_v38, %v4090_v50 }
 0x19c   :  { %v189_v40 = vmul.f32 0.5, %v188_v37  ;;  %v155_v41 = vpop.xlane.xlu0 %154 }
 0x19d   :  { %v160_v43 = vmul.f32 %v155_v41, %v4085_v42  ;;  %v223_v44 = vmul.f32 %v4119_v21, %v217_v39  ;;  %v3766_v39 = vld [vmem:[%s5949_s2 + $0x20] sm:$0xff] }
 0x19e   :  { %v190_v45 = vsub.f32 1.5, %v189_v40  ;;  %398 = vmatpush.bf16.msra.mxu1 %v3766_v39 }
 0x19f   :  { %v3841_v46 = vpop.eup %3840  ;;  %v165_v47 = vadd.f32 1e-05, %v160_v43  ;;  %v4137_v48 = vadd.f32 %v4124_v25, %v223_v44  ;;  %v3765_v43 = vld [vmem:[%s5949_s2 + $0x18] sm:$0xff] }
 0x1a0   :  { %v191_v49 = vmul.f32 %v3839_v31, %v190_v45  ;;  %v197_v51 = vmul.f32 %v3841_v46, %v164_v32  ;;  %vm203_vm14 = vweird.f32 %v3841_v46 }
 0x1a1   :  { %6149 = vst [vmem:[#allocation7_spill] sm:$0xff] %v4137_v48  ;;  %3842 = vrsqrt.f32 %v165_v47  ;;  %v238_v50 = vsel %vm102_vm1, %v4137_v48, 0.0  ;;  %vm204_vm0 = vmor %vm202_vm15, %vm203_vm14  ;;  %vm212_vm5 = vweird.f32 %v165_v47 }
 0x1a2   :  { %v198_v52 = vmul.f32 %v3841_v46, %v197_v51  ;;  %239 = vadd.xlane.f32.xlu2 %v238_v50  ;;  %v195_v53 = vsel %vm194_vm13, %v3839_v31, %v191_v49  ;;  %399 = vmatpush.bf16.msra.mxu1 %v3765_v43 }
 0x1a3   :  { %v218_v54 = vmul.f32 %v195_v53, %v4096_v55 }
 0x1a4   :  { %v199_v56 = vmul.f32 0.5, %v198_v52 }
 0x1a5   :  { %v224_v57 = vmul.f32 %v4119_v21, %v218_v54 }
 0x1a6   :  { %v200_v58 = vsub.f32 1.5, %v199_v56 }
 0x1a7   :  { %v3843_v59 = vpop.eup %3842  ;;  %v4144_v61 = vadd.f32 %v4124_v25, %v224_v57 }
 0x1a8   :  { %v201_v62 = vmul.f32 %v3841_v46, %v200_v58  ;;  %v207_v63 = vmul.f32 %v3843_v59, %v165_v47  ;;  %vm213_vm4 = vweird.f32 %v3843_v59 }
 0x1a9   :  { %6150 = vst [vmem:[#allocation8_spill] sm:$0xff] %v4144_v61  ;;  %v241_v0 = vsel %vm102_vm1, %v4144_v61, 0.0  ;;  %vm214_vm6 = vmor %vm212_vm5, %vm213_vm4 }
 0x1aa   :  { %v208_v2 = vmul.f32 %v3843_v59, %v207_v63  ;;  %242 = vadd.xlane.f32.xlu0 %v241_v0  ;;  %v205_v3 = vsel %vm204_vm0, %v3841_v46, %v201_v62 }
 0x1ab   :  { %v219_v55 = vmul.f32 %v205_v3, %v4102_v60 }
 0x1ac   :  { %v209_v4 = vmul.f32 0.5, %v208_v2 }
 0x1ad   :  { %v225_v5 = vmul.f32 %v4119_v21, %v219_v55 }
 0x1ae   :  { %v210_v6 = vsub.f32 1.5, %v209_v4 }
 0x1af   :  { %v4151_v7 = vadd.f32 %v4124_v25, %v225_v5 }
 0x1b0   :  { %v211_v8 = vmul.f32 %v3843_v59, %v210_v6 }
 0x1b1   :  { %6151 = vst [vmem:[#allocation9_spill] sm:$0xff] %v4151_v7  ;;  %v244_v9 = vsel %vm102_vm1, %v4151_v7, 0.0 }
 0x1b2   :  { %245 = vadd.xlane.f32.xlu1 %v244_v9  ;;  %v215_v10 = vsel %vm214_vm6, %v3843_v59, %v211_v8  ;;  %v3822_v9 = vld [vmem:[%s5950_s3 + $0x2] ss:$0 sm:$0xff] }
 0x1b3   :  { %v220_v11 = vmul.f32 %v215_v10, %v4108_v1 }
 0x1b5   :  { %v226_v60 = vmul.f32 %v4119_v21, %v220_v11 }
 0x1b7   :  { %v4158_v12 = vadd.f32 %v4124_v25, %v226_v60 }
 0x1b9   :  { %6152 = vst [vmem:[#allocation10_spill] sm:$0xff] %v4158_v12  ;;  %v247_v13 = vsel %vm115_vm3, %v4158_v12, 0.0 }
 0x1ba   :  { %248 = vadd.xlane.f32.xlu2 %v247_v13 }
 0x20d   :  { %v237_v14 = vpop.xlane.xlu1 %236 }
 0x20e   :  { %v250_v15 = vmul.f32 %v237_v14, %v4085_v42 }
 0x210   :  { %v4164_v16 = vsub.f32 %v4129_v33, %v250_v15 }
 0x212   :  { %v260_v17 = vmul.f32 %v4164_v16, %v4164_v16 }
 0x214   :  { %v265_v1 = vsel %vm102_vm1, %v260_v17, 0.0  ;;  %v3823_v17 = vld [vmem:[%s5950_s3 + $0x3] ss:$0 sm:$0xff] }
 0x215   :  { %266 = vadd.xlane.f32.xlu0 %v265_v1  ;;  %v240_v18 = vpop.xlane.xlu2 %239 }
 0x216   :  { %v251_v19 = vmul.f32 %v240_v18, %v4085_v42 }
 0x218   :  { %v4171_v20 = vsub.f32 %v4137_v48, %v251_v19 }
 0x21a   :  { %v261_v21 = vmul.f32 %v4171_v20, %v4171_v20 }
 0x21c   :  { %v268_v22 = vsel %vm102_vm1, %v261_v21, 0.0 }
 0x21d   :  { %269 = vadd.xlane.f32.xlu1 %v268_v22  ;;  %v243_v23 = vpop.xlane.xlu0 %242 }
 0x21e   :  { %v252_v24 = vmul.f32 %v243_v23, %v4085_v42 }
 0x220   :  { %v4178_v25 = vsub.f32 %v4144_v61, %v252_v24 }
 0x222   :  { %v262_v26 = vmul.f32 %v4178_v25, %v4178_v25 }
 0x224   :  { %v271_v27 = vsel %vm102_vm1, %v262_v26, 0.0 }
 0x225   :  { %v246_v28 = vpop.xlane.xlu1 %245  ;;  %272 = vadd.xlane.f32.xlu2 %v271_v27 }
 0x226   :  { %v253_v29 = vmul.f32 %v246_v28, %v4085_v42 }
 0x228   :  { %v4185_v30 = vsub.f32 %v4151_v7, %v253_v29 }
 0x22a   :  { %v263_v31 = vmul.f32 %v4185_v30, %v4185_v30 }
 0x22c   :  { %v274_v32 = vsel %vm102_vm1, %v263_v31, 0.0 }
 0x22d   :  { %275 = vadd.xlane.f32.xlu0 %v274_v32  ;;  %v249_v34 = vpop.xlane.xlu2 %248 }
 0x22e   :  { %v254_v35 = vmul.f32 %v249_v34, %v4085_v42 }
 0x230   :  { %v4192_v36 = vsub.f32 %v4158_v12, %v254_v35 }
 0x232   :  { %v264_v37 = vmul.f32 %v4192_v36, %v4192_v36 }
 0x234   :  { %v277_v38 = vsel %vm115_vm3, %v264_v37, 0.0 }
 0x235   :  { %278 = vadd.xlane.f32.xlu1 %v277_v38 }
 0x288   :  { %v267_v40 = vpop.xlane.xlu0 %266 }
 0x289   :  { %v280_v41 = vmul.f32 %v267_v40, %v4085_v42 }
 0x28b   :  { %v285_v44 = vadd.f32 1e-05, %v280_v41 }
 0x28d   :  { %3844 = vrsqrt.f32 %v285_v44  ;;  %vm296_vm8 = vweird.f32 %v285_v44 }
 0x290   :  { %v270_v45 = vpop.xlane.xlu1 %269 }
 0x291   :  { %v281_v46 = vmul.f32 %v270_v45, %v4085_v42 }
 0x293   :  { %v3845_v47 = vpop.eup %3844  ;;  %v286_v49 = vadd.f32 1e-05, %v281_v46 }
 0x294   :  { %v291_v51 = vmul.f32 %v3845_v47, %v285_v44  ;;  %vm297_vm7 = vweird.f32 %v3845_v47 }
 0x295   :  { %3846 = vrsqrt.f32 %v286_v49  ;;  %vm298_vm9 = vmor %vm296_vm8, %vm297_vm7  ;;  %vm306_vm11 = vweird.f32 %v286_v49 }
 0x296   :  { %v292_v50 = vmul.f32 %v3845_v47, %v291_v51 }
 0x298   :  { %v293_v52 = vmul.f32 0.5, %v292_v50  ;;  %v273_v53 = vpop.xlane.xlu2 %272 }
 0x299   :  { %v282_v54 = vmul.f32 %v273_v53, %v4085_v42 }
 0x29a   :  { %v294_v56 = vsub.f32 1.5, %v293_v52 }
 0x29b   :  { %v3847_v57 = vpop.eup %3846  ;;  %v287_v58 = vadd.f32 1e-05, %v282_v54 }
 0x29c   :  { %v295_v59 = vmul.f32 %v3845_v47, %v294_v56  ;;  %v301_v62 = vmul.f32 %v3847_v57, %v286_v49  ;;  %vm307_vm10 = vweird.f32 %v3847_v57 }
 0x29d   :  { %3848 = vrsqrt.f32 %v287_v58  ;;  %vm308_vm12 = vmor %vm306_vm11, %vm307_vm10  ;;  %vm316_vm14 = vweird.f32 %v287_v58  ;;  %vm1887_vm10 = vcmask 138240   ;;  %vm1894_vm11 = vcmask 131072  }
 0x29e   :  { %v302_v63 = vmul.f32 %v3847_v57, %v301_v62  ;;  %v299_v0 = vsel %vm298_vm9, %v3845_v47, %v295_v59  ;;  %vm1506_vm9 = vcmask 64512  }
 0x29f   :  { %v340_v8 = vmul.f32 %v299_v0, %v4164_v16 }
 0x2a0   :  { %v303_v2 = vmul.f32 0.5, %v302_v63  ;;  %v276_v3 = vpop.xlane.xlu0 %275 }
 0x2a1   :  { %v283_v55 = vmul.f32 %v276_v3, %v4085_v42  ;;  %v346_v15 = vmul.f32 %v3822_v9, %v340_v8 }
 0x2a2   :  { %v304_v4 = vsub.f32 1.5, %v303_v2 }
 0x2a3   :  { %v3849_v5 = vpop.eup %3848  ;;  %v288_v6 = vadd.f32 1e-05, %v283_v55  ;;  %v352_v24 = vadd.f32 %v3823_v17, %v346_v15 }
 0x2a4   :  { %v305_v10 = vmul.f32 %v3847_v57, %v304_v4  ;;  %v311_v11 = vmul.f32 %v3849_v5, %v287_v58  ;;  %vm317_vm13 = vweird.f32 %v3849_v5 }
 0x2a5   :  { %3850 = vrsqrt.f32 %v288_v6  ;;  %vm318_vm15 = vmor %vm316_vm14, %vm317_vm13  ;;  %vm326_vm4 = vweird.f32 %v288_v6  ;;  %vm3159_vm13 = vcmask 195584  }
 0x2a6   :  { %v309_v60 = vsel %vm308_vm12, %v3847_v57, %v305_v10  ;;  %v312_v13 = vmul.f32 %v3849_v5, %v311_v11  ;;  %vm3153_vm12 = vcmask 130048  }
 0x2a7   :  { %v341_v14 = vmul.f32 %v309_v60, %v4171_v20 }
 0x2a8   :  { %v313_v1 = vmul.f32 0.5, %v312_v13  ;;  %v279_v16 = vpop.xlane.xlu1 %278 }
 0x2a9   :  { %v284_v18 = vmul.f32 %v279_v16, %v4085_v42  ;;  %v347_v19 = vmul.f32 %v3822_v9, %v341_v14 }
 0x2aa   :  { %v314_v21 = vsub.f32 1.5, %v313_v1 }
 0x2ab   :  { %v3851_v22 = vpop.eup %3850  ;;  %v289_v23 = vadd.f32 1e-05, %v284_v18  ;;  %v353_v26 = vadd.f32 %v3823_v17, %v347_v19 }
 0x2ac   :  { %v315_v27 = vmul.f32 %v3849_v5, %v314_v21  ;;  %v321_v28 = vmul.f32 %v3851_v22, %v288_v6  ;;  %vm327_vm0 = vweird.f32 %v3851_v22 }
 0x2ad   :  { %3852 = vrsqrt.f32 %v289_v23  ;;  %v367_v20 = vpack.c.bf16 %v353_v26, %v352_v24  ;;  %vm328_vm5 = vmor %vm326_vm4, %vm327_vm0  ;;  %vm336_vm7 = vweird.f32 %v289_v23 }
 0x2ae   :  { %v322_v29 = vmul.f32 %v3851_v22, %v321_v28  ;;  %v319_v31 = vsel %vm318_vm15, %v3849_v5, %v315_v27 }
 0x2af   :  { %3672 = vmatmul.msk.bf16.vlgmr.msra.gmra.mxu1 %vm102_vm1, %v367_v20  ;;  %v342_v37 = vmul.f32 %v319_v31, %v4178_v25 }
 0x2b0   :  { %v323_v32 = vmul.f32 0.5, %v322_v29 }
 0x2b1   :  { %v348_v44 = vmul.f32 %v3822_v9, %v342_v37 }
 0x2b2   :  { %v324_v34 = vsub.f32 1.5, %v323_v32 }
 0x2b3   :  { %v3853_v35 = vpop.eup %3852  ;;  %v354_v49 = vadd.f32 %v3823_v17, %v348_v44 }
 0x2b4   :  { %v325_v38 = vmul.f32 %v3851_v22, %v324_v34  ;;  %v331_v39 = vmul.f32 %v3853_v35, %v289_v23  ;;  %vm337_vm6 = vweird.f32 %v3853_v35 }
 0x2b5   :  { %vm338_vm8 = vmor %vm336_vm7, %vm337_vm6 }
 0x2b6   :  { %v329_v40 = vsel %vm328_vm5, %v3851_v22, %v325_v38  ;;  %v332_v41 = vmul.f32 %v3853_v35, %v331_v39 }
 0x2b7   :  { %v343_v43 = vmul.f32 %v329_v40, %v4185_v30  ;;  %v4225_v30 = vld [vmem:[%s5950_s3 + $0x8] ss:$0 sm:$0xff] }
 0x2b8   :  { %v333_v45 = vmul.f32 0.5, %v332_v41 }
 0x2b9   :  { %v349_v46 = vmul.f32 %v3822_v9, %v343_v43 }
 0x2ba   :  { %v334_v47 = vsub.f32 1.5, %v333_v45 }
 0x2bb   :  { %v355_v51 = vadd.f32 %v3823_v17, %v349_v46 }
 0x2bc   :  { %v335_v50 = vmul.f32 %v3853_v35, %v334_v47 }
 0x2bd   :  { %v368_v52 = vpack.c.bf16 %v355_v51, %v354_v49 }
 0x2be   :  { %v339_v25 = vsel %vm338_vm8, %v3853_v35, %v335_v50 }
 0x2bf   :  { %3673 = vmatmul.msk.bf16.gmra.mxu1 %vm102_vm1, %v368_v52  ;;  %v344_v53 = vmul.f32 %v339_v25, %v4192_v36 }
 0x2c1   :  { %v350_v54 = vmul.f32 %v3822_v9, %v344_v53 }
 0x2c3   :  { %v356_v56 = vadd.f32 %v3823_v17, %v350_v54 }
 0x2c5   :  { %v369_v57 = vpack.c.bf16 %v356_v56, %v356_v56 }
 0x2cf   :  { %3674 = vmatmul.msk.bf16.gmra.mxu1 %vm102_vm1, %v369_v57 }
 0x32c   :  { %v401_v58 = vpop.f32.mrf.mxu1 }
 0x32d   :  { %v4228_v59 = vadd.f32 %v4225_v30, %v401_v58 }
 0x32f   :  { %580 = vrot.lane.b32.xlu0 %v4228_v59, %s4009_s23  ;;  %478 = vrot.lane.b32.xlu2 %v4228_v59, %s4010_s24  ;;  %v4235_v36 = vrot.slane %v4228_v59, 2  ;;  %v4238_v62 = vrot.slane %v4228_v59, 3  ;;  %v4241_v63 = vrot.slane %v4228_v59, 1  ;;  %v4244_v0 = vrot.slane %v4228_v59, 6 }
 0x330   :  { %v4247_v2 = vrot.slane %v4228_v59, 5  ;;  %v4250_v3 = vrot.slane %v4228_v59, 4  ;;  %v4253_v55 = vrot.slane %v4228_v59, 7  ;;  %v784_v14 = vmul.f32 0.35355338, %v4228_v59 }
 0x331   :  { %482 = vrot.lane.b32.xlu1 %v4235_v36, %s4010_s24  ;;  %v786_v4 = vmul.f32 0.35355338, %v4235_v36  ;;  %v787_v5 = vmul.f32 0.35355338, %v4238_v62  ;;  %v785_v6 = vmul.f32 0.35355338, %v4241_v63 }
 0x332   :  { %v790_v8 = vmul.f32 0.35355338, %v4244_v0  ;;  %v789_v9 = vmul.f32 0.35355338, %v4247_v2  ;;  %v788_v11 = vmul.f32 0.35355338, %v4250_v3 }
 0x333   :  { %1060 = vst [vmem:[#allocation1 + $0x2] ss:$9 sm:$0xff] %v786_v4  ;;  %v791_v60 = vmul.f32 0.35355338, %v4253_v55 }
 0x334   :  { %v403_v10 = vpop.f32.mrf.mxu1  ;;  %1062 = vst [vmem:[#allocation1 + $0x3] ss:$9 sm:$0xff] %v787_v5 }
 0x335   :  { %1058 = vst [vmem:[#allocation1 + $0x1] ss:$9 sm:$0xff] %v785_v6  ;;  %v4265_v13 = vadd.f32 %v4225_v30, %v403_v10 }
 0x336   :  { %1068 = vst [vmem:[#allocation1 + $0x6] ss:$9 sm:$0xff] %v790_v8 }
 0x337   :  { %484 = vrot.lane.b32.xlu2 %v4238_v62, %s4010_s24  ;;  %480 = vrot.lane.b32.xlu0 %v4241_v63, %s4010_s24  ;;  %1066 = vst [vmem:[#allocation1 + $0x5] ss:$9 sm:$0xff] %v789_v9  ;;  %v4275_v15 = vrot.slane %v4265_v13, 1  ;;  %v4278_v17 = vrot.slane %v4265_v13, 2  ;;  %v4281_v16 = vrot.slane %v4265_v13, 4  ;;  %v4284_v18 = vrot.slane %v4265_v13, 3 }
 0x338   :  { %1064 = vst [vmem:[#allocation1 + $0x4] ss:$9 sm:$0xff] %v788_v11  ;;  %v4288_v21 = vrot.slane %v4265_v13, 5  ;;  %v4297_v24 = vrot.slane %v4265_v13, 6  ;;  %v4305_v28 = vrot.slane %v4265_v13, 7 }
 0x339   :  { %490 = vrot.lane.b32.xlu1 %v4244_v0, %s4010_s24  ;;  %1070 = vst [vmem:[#allocation1 + $0x7] ss:$9 sm:$0xff] %v791_v60  ;;  %v793_v19 = vmul.f32 0.35355338, %v4275_v15  ;;  %v794_v22 = vmul.f32 0.35355338, %v4278_v17 }
 0x33a   :  { %1056 = vst [vmem:[#allocation1] ss:$9 sm:$0xff] %v784_v14  ;;  %v796_v23 = vmul.f32 0.35355338, %v4281_v16  ;;  %v795_v27 = vmul.f32 0.35355338, %v4284_v18 }
 0x33b   :  { %6153 = vst [vmem:[#allocation11_spill] sm:$0xff] %v4278_v17  ;;  %v797_v20 = vmul.f32 0.35355338, %v4288_v21  ;;  %v798_v31 = vmul.f32 0.35355338, %v4297_v24 }
 0x33c   :  { %v406_v1 = vpop.f32.mrf.mxu1  ;;  %6154 = vst [vmem:[#allocation12_spill] sm:$0xff] %v4281_v16  ;;  %v792_v32 = vmul.f32 0.35355338, %v4265_v13  ;;  %v799_v34 = vmul.f32 0.35355338, %v4305_v28 }
 0x33d   :  { %6155 = vst [vmem:[#allocation13_spill] sm:$0xff] %v4284_v18  ;;  %v4318_v35 = vadd.f32 %v4225_v30, %v406_v1 }
 0x33e   :  { %6156 = vst [vmem:[#allocation14_spill] sm:$0xff] %v4288_v21 }
 0x33f   :  { %488 = vrot.lane.b32.xlu2 %v4247_v2, %s4010_s24  ;;  %486 = vrot.lane.b32.xlu0 %v4250_v3, %s4010_s24  ;;  %6157 = vst [vmem:[#allocation15_spill] sm:$0xff] %v4297_v24  ;;  %v800_v38 = vmul.f32 0.35355338, %v4318_v35  ;;  %v4333_v43 = vrot.slane %v4318_v35, 2  ;;  %v4336_v44 = vrot.slane %v4318_v35, 5  ;;  %v4339_v45 = vrot.slane %v4318_v35, 3 }
 0x340   :  { %6159 = vst [vmem:[#allocation17_spill] sm:$0xff] %v4305_v28  ;;  %v4347_v47 = vrot.slane %v4318_v35, 1  ;;  %v4353_v50 = vrot.slane %v4318_v35, 6  ;;  %v4359_v25 = vrot.slane %v4318_v35, 4  ;;  %v4363_v54 = vrot.slane %v4318_v35, 7 }
 0x341   :  { %584 = vrot.lane.b32.xlu1 %v4235_v36, %s4009_s23  ;;  %v4301_v26 = vld [vmem:[#allocation1] sm:$0xff]  ;;  %6160 = vst [vmem:[#allocation18_spill] sm:$0xff] %v4318_v35  ;;  %v802_v51 = vmul.f32 0.35355338, %v4333_v43  ;;  %v805_v52 = vmul.f32 0.35355338, %v4336_v44 }
 0x342   :  { %6158 = vst [vmem:[#allocation16_spill] sm:$0xff] %v4301_v26  ;;  %v803_v53 = vmul.f32 0.35355338, %v4339_v45  ;;  %v801_v56 = vmul.f32 0.35355338, %v4347_v47 }
 0x343   :  { %1073 = vst [vmem:[#allocation1 + $0x1] ss:$9 sm:$0xff] %v793_v19  ;;  %v806_v57 = vmul.f32 0.35355338, %v4353_v50  ;;  %v804_v58 = vmul.f32 0.35355338, %v4359_v25 }
 0x344   :  { %1074 = vst [vmem:[#allocation1 + $0x2] ss:$9 sm:$0xff] %v794_v22  ;;  %v408_v29 = vpop.f32.mrf.mxu1  ;;  %v807_v4 = vmul.f32 0.35355338, %v4363_v54 }
 0x345   :  { %1076 = vst [vmem:[#allocation1 + $0x4] ss:$9 sm:$0xff] %v796_v23  ;;  %v4330_v40 = vadd.f32 %v4225_v30, %v408_v29 }
 0x346   :  { %1075 = vst [vmem:[#allocation1 + $0x3] ss:$9 sm:$0xff] %v795_v27 }
 0x347   :  { %1077 = vst [vmem:[#allocation1 + $0x5] ss:$9 sm:$0xff] %v797_v20  ;;  %582 = vrot.lane.b32.xlu2 %v4241_v63, %s4009_s23  ;;  %492 = vrot.lane.b32.xlu0 %v4253_v55, %s4010_s24  ;;  %v808_v46 = vmul.f32 0.35355338, %v4330_v40  ;;  %v4379_v6 = vrot.slane %v4330_v40, 1  ;;  %v4382_v8 = vrot.slane %v4330_v40, 2 }
 0x348   :  { %1072 = vst [vmem:[#allocation1] ss:$9 sm:$0xff] %v792_v32  ;;  %v4385_v9 = vrot.slane %v4330_v40, 3  ;;  %v4389_v11 = vrot.slane %v4330_v40, 4  ;;  %v4398_v60 = vrot.slane %v4330_v40, 5  ;;  %v4402_v1 = vrot.slane %v4330_v40, 6 }
 0x349   :  { %1078 = vst [vmem:[#allocation1 + $0x6] ss:$9 sm:$0xff] %v798_v31  ;;  %590 = vrot.lane.b32.xlu1 %v4247_v2, %s4009_s23  ;;  %v809_v14 = vmul.f32 0.35355338, %v4379_v6  ;;  %v810_v19 = vmul.f32 0.35355338, %v4382_v8 }
 0x34a   :  { %1079 = vst [vmem:[#allocation1 + $0x7] ss:$9 sm:$0xff] %v799_v34  ;;  %v4408_v22 = vrot.slane %v4330_v40, 7  ;;  %v811_v23 = vmul.f32 0.35355338, %v4385_v9 }
 0x34b   :  { %6162 = vst [vmem:[#allocation20_spill] sm:$0xff] %v4330_v40  ;;  %v812_v27 = vmul.f32 0.35355338, %v4389_v11  ;;  %v813_v20 = vmul.f32 0.35355338, %v4398_v60 }
 0x34c   :  { %v411_v37 = vpop.f32.mrf.mxu1  ;;  %6163 = vst [vmem:[#allocation21_spill] sm:$0xff] %v4333_v43  ;;  %v814_v29 = vmul.f32 0.35355338, %v4402_v1  ;;  %v815_v31 = vmul.f32 0.35355338, %v4408_v22 }
 0x34d   :  { %6164 = vst [vmem:[#allocation22_spill] sm:$0xff] %v4336_v44  ;;  %v4376_v5 = vadd.f32 %v4225_v30, %v411_v37 }
 0x34e   :  { %6165 = vst [vmem:[#allocation23_spill] sm:$0xff] %v4339_v45 }
 0x34f   :  { %588 = vrot.lane.b32.xlu2 %v4250_v3, %s4009_s23  ;;  %586 = vrot.lane.b32.xlu0 %v4238_v62, %s4009_s23  ;;  %6166 = vst [vmem:[#allocation24_spill] sm:$0xff] %v4347_v47  ;;  %v816_v10 = vmul.f32 0.35355338, %v4376_v5  ;;  %v4422_v32 = vrot.slane %v4376_v5, 1 }
 0x350   :  { %6168 = vst [vmem:[#allocation26_spill] sm:$0xff] %v4353_v50 }
 0x351   :  { %v4325_v39 = vld [vmem:[#allocation1] sm:$0xff]  ;;  %596 = vrot.lane.b32.xlu1 %v4265_v13, %s4009_s23  ;;  %6169 = vst [vmem:[#allocation27_spill] sm:$0xff] %v4359_v25  ;;  %v817_v34 = vmul.f32 0.35355338, %v4422_v32 }
 0x352   :  { %6161 = vst [vmem:[#allocation19_spill] sm:$0xff] %v4325_v39 }
 0x353   :  { %1081 = vst [vmem:[#allocation1] ss:$9 sm:$0xff] %v800_v38 }
 0x354   :  { %v413_v41 = vpop.f32.mrf.mxu1  ;;  %6170 = vst [vmem:[#allocation28_spill] sm:$0xff] %v4363_v54 }
 0x355   :  { %6171 = vst [vmem:[#allocation29_spill] sm:$0xff] %v4376_v5 }
 0x356   :  { %6172 = vst [vmem:[#allocation30_spill] sm:$0xff] %v4379_v6 }
 0x357   :  { %594 = vrot.lane.b32.xlu2 %v4253_v55, %s4009_s23  ;;  %592 = vrot.lane.b32.xlu0 %v4244_v0, %s4009_s23  ;;  %6173 = vst [vmem:[#allocation31_spill] sm:$0xff] %v4382_v8 }
 0x358   :  { %6174 = vst [vmem:[#allocation32_spill] sm:$0xff] %v4385_v9 }
 0x359   :  { %496 = vrot.lane.b32.xlu1 %v4275_v15, %s4010_s24  ;;  %6175 = vst [vmem:[#allocation33_spill] sm:$0xff] %v4389_v11 }
 0x35a   :  { %v4349_v49 = vld [vmem:[#allocation1] sm:$0xff]  ;;  %6177 = vst [vmem:[#allocation35_spill] sm:$0xff] %v4398_v60 }
 0x35b   :  { %6167 = vst [vmem:[#allocation25_spill] sm:$0xff] %v4349_v49 }
 0x35c   :  { %1090 = vst [vmem:[#allocation1 + $0x7] ss:$9 sm:$0xff] %v808_v46 }
 0x35d   :  { %1084 = vst [vmem:[#allocation1 + $0x1] ss:$9 sm:$0xff] %v802_v51 }
 0x35e   :  { %1087 = vst [vmem:[#allocation1 + $0x4] ss:$9 sm:$0xff] %v805_v52 }
 0x35f   :  { %1085 = vst [vmem:[#allocation1 + $0x2] ss:$9 sm:$0xff] %v803_v53  ;;  %494 = vrot.lane.b32.xlu2 %v4265_v13, %s4010_s24  ;;  %498 = vrot.lane.b32.xlu0 %v4278_v17, %s4010_s24 }
 0x360   :  { %1083 = vst [vmem:[#allocation1] ss:$9 sm:$0xff] %v801_v56 }
 0x361   :  { %1088 = vst [vmem:[#allocation1 + $0x5] ss:$9 sm:$0xff] %v806_v57  ;;  %502 = vrot.lane.b32.xlu1 %v4281_v16, %s4010_s24 }
 0x362   :  { %1086 = vst [vmem:[#allocation1 + $0x3] ss:$9 sm:$0xff] %v804_v58 }
 0x363   :  { %1089 = vst [vmem:[#allocation1 + $0x6] ss:$9 sm:$0xff] %v807_v4 }
 0x364   :  { %6178 = vst [vmem:[#allocation36_spill] sm:$0xff] %v4402_v1 }
 0x365   :  { %6179 = vst [vmem:[#allocation37_spill] sm:$0xff] %v4408_v22 }
 0x366   :  { %6180 = vst [vmem:[#allocation38_spill] sm:$0xff] %v4422_v32 }
 0x367   :  { %500 = vrot.lane.b32.xlu2 %v4284_v18, %s4010_s24  ;;  %504 = vrot.lane.b32.xlu0 %v4288_v21, %s4010_s24 }
 0x369   :  { %508 = vrot.lane.b32.xlu1 %v4305_v28, %s4010_s24 }
 0x36a   :  { %v4395_v30 = vld [vmem:[#allocation1] sm:$0xff] }
 0x36b   :  { %6176 = vst [vmem:[#allocation34_spill] sm:$0xff] %v4395_v30 }
 0x36c   :  { %1099 = vst [vmem:[#allocation1 + $0x7] ss:$9 sm:$0xff] %v816_v10 }
 0x36d   :  { %1092 = vst [vmem:[#allocation1] ss:$9 sm:$0xff] %v809_v14 }
 0x36e   :  { %1093 = vst [vmem:[#allocation1 + $0x1] ss:$9 sm:$0xff] %v810_v19 }
 0x36f   :  { %1094 = vst [vmem:[#allocation1 + $0x2] ss:$9 sm:$0xff] %v811_v23  ;;  %506 = vrot.lane.b32.xlu2 %v4297_v24, %s4010_s24  ;;  %598 = vrot.lane.b32.xlu0 %v4275_v15, %s4009_s23 }
 0x370   :  { %1095 = vst [vmem:[#allocation1 + $0x3] ss:$9 sm:$0xff] %v812_v27 }
 0x371   :  { %1096 = vst [vmem:[#allocation1 + $0x4] ss:$9 sm:$0xff] %v813_v20  ;;  %602 = vrot.lane.b32.xlu1 %v4284_v18, %s4009_s23 }
 0x372   :  { %1097 = vst [vmem:[#allocation1 + $0x5] ss:$9 sm:$0xff] %v814_v29 }
 0x373   :  { %1098 = vst [vmem:[#allocation1 + $0x6] ss:$9 sm:$0xff] %v815_v31 }
 0x377   :  { %600 = vrot.lane.b32.xlu2 %v4278_v17, %s4009_s23  ;;  %604 = vrot.lane.b32.xlu0 %v4281_v16, %s4009_s23 }
 0x379   :  { %608 = vrot.lane.b32.xlu1 %v4297_v24, %s4009_s23 }
 0x37a   :  { %v4425_v37 = vld [vmem:[#allocation1] sm:$0xff] }
 0x37b   :  { %6181 = vst [vmem:[#allocation39_spill] sm:$0xff] %v4425_v37 }
 0x37c   :  { %1101 = vst [vmem:[#allocation1] ss:$9 sm:$0xff] %v817_v34 }
 0x37f   :  { %606 = vrot.lane.b32.xlu2 %v4288_v21, %s4009_s23  ;;  %610 = vrot.lane.b32.xlu0 %v4305_v28, %s4009_s23 }
 0x381   :  { %514 = vrot.lane.b32.xlu1 %v4333_v43, %s4010_s24 }
 0x383   :  { %v4448_v46 = vld [vmem:[#allocation1] sm:$0xff] }
 0x384   :  { %6183 = vst [vmem:[#allocation41_spill] sm:$0xff] %v4448_v46 }
 0x387   :  { %612 = vrot.lane.b32.xlu2 %v4318_v35, %s4009_s23  ;;  %510 = vrot.lane.b32.xlu0 %v4318_v35, %s4010_s24 }
 0x389   :  { %v4443_v38 = vpop.permute.xlu2 %478  ;;  %520 = vrot.lane.b32.xlu1 %v4336_v44, %s4010_s24 }
 0x38a   :  { %6182 = vst [vmem:[#allocation40_spill] sm:$0xff] %v4443_v38  ;;  %v818_v41 = vmul.f32 0.35355338, %v4443_v38 }
 0x38c   :  { %1103 = vst [vmem:[#allocation1] ss:$9 sm:$0xff] %v818_v41 }
 0x38f   :  { %516 = vrot.lane.b32.xlu0 %v4339_v45, %s4010_s24  ;;  %512 = vrot.lane.b32.xlu2 %v4347_v47, %s4010_s24 }
 0x391   :  { %v4454_v51 = vpop.permute.xlu2 %484  ;;  %614 = vrot.lane.b32.xlu1 %v4347_v47, %s4009_s23 }
 0x392   :  { %6184 = vst [vmem:[#allocation42_spill] sm:$0xff] %v4454_v51  ;;  %v821_v52 = vmul.f32 0.35355338, %v4454_v51 }
 0x394   :  { %1106 = vst [vmem:[#allocation1 + $0x3] ss:$9 sm:$0xff] %v821_v52 }
 0x397   :  { %522 = vrot.lane.b32.xlu0 %v4353_v50, %s4010_s24  ;;  %518 = vrot.lane.b32.xlu2 %v4359_v25, %s4010_s24 }
 0x399   :  { %v4463_v53 = vpop.permute.xlu2 %488  ;;  %620 = vrot.lane.b32.xlu1 %v4359_v25, %s4009_s23 }
 0x39a   :  { %6185 = vst [vmem:[#allocation43_spill] sm:$0xff] %v4463_v53  ;;  %v823_v56 = vmul.f32 0.35355338, %v4463_v53 }
 0x39c   :  { %1108 = vst [vmem:[#allocation1 + $0x5] ss:$9 sm:$0xff] %v823_v56 }
 0x39f   :  { %616 = vrot.lane.b32.xlu0 %v4333_v43, %s4009_s23  ;;  %524 = vrot.lane.b32.xlu2 %v4363_v54, %s4010_s24 }
 0x3a1   :  { %v4472_v57 = vpop.permute.xlu2 %582  ;;  %626 = vrot.lane.b32.xlu1 %v4363_v54, %s4009_s23  ;;  %v4476_v58 = vpop.permute.xlu0 %580 }
 0x3a2   :  { %6186 = vst [vmem:[#allocation44_spill] sm:$0xff] %v4472_v57 }
 0x3a3   :  { %v4478_v4 = vpop.permute.xlu1 %482 }
 0x3a4   :  { %6187 = vst [vmem:[#allocation45_spill] sm:$0xff] %v4478_v4  ;;  %v820_v10 = vmul.f32 0.35355338, %v4478_v4 }
 0x3a6   :  { %1105 = vst [vmem:[#allocation1 + $0x2] ss:$9 sm:$0xff] %v820_v10 }
 0x3a7   :  { %622 = vrot.lane.b32.xlu0 %v4336_v44, %s4009_s23  ;;  %618 = vrot.lane.b32.xlu2 %v4339_v45, %s4009_s23 }
 0x3a9   :  { %v4485_v14 = vpop.permute.xlu2 %588  ;;  %526 = vrot.lane.b32.xlu1 %v4330_v40, %s4010_s24  ;;  %v4489_v19 = vpop.permute.xlu0 %480 }
 0x3aa   :  { %6188 = vst [vmem:[#allocation46_spill] sm:$0xff] %v4485_v14  ;;  %v819_v23 = vmul.f32 0.35355338, %v4489_v19 }
 0x3ab   :  { %6189 = vst [vmem:[#allocation47_spill] sm:$0xff] %v4489_v19  ;;  %v4492_v27 = vpop.permute.xlu1 %490 }
 0x3ac   :  { %6190 = vst [vmem:[#allocation48_spill] sm:$0xff] %v4492_v27  ;;  %v824_v20 = vmul.f32 0.35355338, %v4492_v27 }
 0x3ad   :  { %1104 = vst [vmem:[#allocation1 + $0x1] ss:$9 sm:$0xff] %v819_v23 }
 0x3ae   :  { %1109 = vst [vmem:[#allocation1 + $0x6] ss:$9 sm:$0xff] %v824_v20 }
 0x3af   :  { %628 = vrot.lane.b32.xlu0 %v4330_v40, %s4009_s23  ;;  %624 = vrot.lane.b32.xlu2 %v4353_v50, %s4009_s23 }
 0x3b1   :  { %v4499_v29 = vpop.permute.xlu2 %594  ;;  %532 = vrot.lane.b32.xlu1 %v4385_v9, %s4010_s24  ;;  %v4503_v31 = vpop.permute.xlu0 %486 }
 0x3b2   :  { %6191 = vst [vmem:[#allocation49_spill] sm:$0xff] %v4499_v29  ;;  %v822_v34 = vmul.f32 0.35355338, %v4503_v31 }
 0x3b3   :  { %6192 = vst [vmem:[#allocation50_spill] sm:$0xff] %v4503_v31  ;;  %v4506_v41 = vpop.permute.xlu1 %584 }
 0x3b4   :  { %6193 = vst [vmem:[#allocation51_spill] sm:$0xff] %v4506_v41 }
 0x3b5   :  { %1107 = vst [vmem:[#allocation1 + $0x4] ss:$9 sm:$0xff] %v822_v34 }
 0x3b7   :  { %528 = vrot.lane.b32.xlu0 %v4379_v6, %s4010_s24  ;;  %530 = vrot.lane.b32.xlu2 %v4382_v8, %s4010_s24 }
 0x3b9   :  { %v4512_v52 = vpop.permute.xlu2 %494  ;;  %538 = vrot.lane.b32.xlu1 %v4402_v1, %s4010_s24  ;;  %v4516_v56 = vpop.permute.xlu0 %492 }
 0x3ba   :  { %6194 = vst [vmem:[#allocation52_spill] sm:$0xff] %v4512_v52  ;;  %v825_v10 = vmul.f32 0.35355338, %v4516_v56  ;;  %v826_v42 = vmul.f32 0.35355338, %v4512_v52 }
 0x3bb   :  { %6195 = vst [vmem:[#allocation53_spill] sm:$0xff] %v4516_v56  ;;  %v4519_v23 = vpop.permute.xlu1 %590 }
 0x3bc   :  { %6196 = vst [vmem:[#allocation54_spill] sm:$0xff] %v4519_v23 }
 0x3bd   :  { %1110 = vst [vmem:[#allocation1 + $0x7] ss:$9 sm:$0xff] %v825_v10 }
 0x3bf   :  { %534 = vrot.lane.b32.xlu0 %v4389_v11, %s4010_s24  ;;  %536 = vrot.lane.b32.xlu2 %v4398_v60, %s4010_s24 }
 0x3c1   :  { %v4525_v20 = vpop.permute.xlu2 %500  ;;  %632 = vrot.lane.b32.xlu1 %v4382_v8, %s4009_s23  ;;  %v4529_v34 = vpop.permute.xlu0 %586 }
 0x3c2   :  { %6197 = vst [vmem:[#allocation55_spill] sm:$0xff] %v4525_v20  ;;  %v829_v12 = vmul.f32 0.35355338, %v4525_v20 }
 0x3c3   :  { %6198 = vst [vmem:[#allocation56_spill] sm:$0xff] %v4529_v34  ;;  %v4535_v10 = vpop.permute.xlu1 %596 }
 0x3c4   :  { %v4533_v7 = vld [vmem:[#allocation1] sm:$0xff] }
 0x3c5   :  { %6199 = vst [vmem:[#allocation57_spill] sm:$0xff] %v4533_v7 }
 0x3c6   :  { %1115 = vst [vmem:[#allocation1 + $0x3] ss:$9 sm:$0xff] %v829_v12 }
 0x3c7   :  { %1112 = vst [vmem:[#allocation1] ss:$9 sm:$0xff] %v826_v42  ;;  %540 = vrot.lane.b32.xlu0 %v4408_v22, %s4010_s24  ;;  %630 = vrot.lane.b32.xlu2 %v4379_v6, %s4009_s23 }
 0x3c9   :  { %v4541_v61 = vpop.permute.xlu2 %506  ;;  %638 = vrot.lane.b32.xlu1 %v4398_v60, %s4009_s23  ;;  %v4545_v48 = vpop.permute.xlu0 %592 }
 0x3ca   :  { %6200 = vst [vmem:[#allocation58_spill] sm:$0xff] %v4541_v61  ;;  %v832_v33 = vmul.f32 0.35355338, %v4541_v61 }
 0x3cb   :  { %6201 = vst [vmem:[#allocation59_spill] sm:$0xff] %v4545_v48  ;;  %v4548_v7 = vpop.permute.xlu1 %496 }
 0x3cc   :  { %6202 = vst [vmem:[#allocation60_spill] sm:$0xff] %v4548_v7  ;;  %v827_v42 = vmul.f32 0.35355338, %v4548_v7 }
 0x3cd   :  { %1118 = vst [vmem:[#allocation1 + $0x6] ss:$9 sm:$0xff] %v832_v33 }
 0x3ce   :  { %1113 = vst [vmem:[#allocation1 + $0x1] ss:$9 sm:$0xff] %v827_v42 }
 0x3cf   :  { %634 = vrot.lane.b32.xlu0 %v4385_v9, %s4009_s23  ;;  %636 = vrot.lane.b32.xlu2 %v4389_v11, %s4009_s23 }
 0x3d1   :  { %v4555_v12 = vpop.permute.xlu2 %600  ;;  %644 = vrot.lane.b32.xlu1 %v4376_v5, %s4009_s23  ;;  %v4559_v46 = vpop.permute.xlu0 %498 }
 0x3d2   :  { %6203 = vst [vmem:[#allocation61_spill] sm:$0xff] %v4559_v46  ;;  %v828_v30 = vmul.f32 0.35355338, %v4559_v46 }
 0x3d3   :  { %v4562_v37 = vpop.permute.xlu1 %502 }
 0x3d4   :  { %6204 = vst [vmem:[#allocation62_spill] sm:$0xff] %v4562_v37  ;;  %v830_v33 = vmul.f32 0.35355338, %v4562_v37 }
 0x3d5   :  { %1114 = vst [vmem:[#allocation1 + $0x2] ss:$9 sm:$0xff] %v828_v30 }
 0x3d6   :  { %1116 = vst [vmem:[#allocation1 + $0x4] ss:$9 sm:$0xff] %v830_v33 }
 0x3d7   :  { %640 = vrot.lane.b32.xlu0 %v4402_v1, %s4009_s23  ;;  %542 = vrot.lane.b32.xlu2 %v4376_v5, %s4010_s24 }
 0x3d9   :  { %v4569_v42 = vpop.permute.xlu2 %606  ;;  %544 = vrot.lane.b32.xlu1 %v4422_v32, %s4010_s24  ;;  %v4573_v26 = vpop.permute.xlu0 %504 }
 0x3da   :  { %6205 = vst [vmem:[#allocation63_spill] sm:$0xff] %v4569_v42  ;;  %v831_v49 = vmul.f32 0.35355338, %v4573_v26 }
 0x3db   :  { %6206 = vst [vmem:[#allocation64_spill] sm:$0xff] %v4573_v26  ;;  %v4576_v39 = vpop.permute.xlu1 %508 }
 0x3dc   :  { %6207 = vst [vmem:[#allocation65_spill] sm:$0xff] %v4576_v39  ;;  %v833_v30 = vmul.f32 0.35355338, %v4576_v39 }
 0x3dd   :  { %1117 = vst [vmem:[#allocation1 + $0x5] ss:$9 sm:$0xff] %v831_v49 }
 0x3de   :  { %1119 = vst [vmem:[#allocation1 + $0x7] ss:$9 sm:$0xff] %v833_v30 }
 0x3df   :  { %686 = vrot.lane.b32.xlu0 %v4235_v36, %s4011_s25  ;;  %642 = vrot.lane.b32.xlu2 %v4408_v22, %s4009_s23 }
 0x3e1   :  { %v4583_v33 = vpop.permute.xlu2 %612  ;;  %684 = vrot.lane.b32.xlu1 %v4241_v63, %s4011_s25  ;;  %v4587_v61 = vpop.permute.xlu0 %598 }
 0x3e2   :  { %6208 = vst [vmem:[#allocation66_spill] sm:$0xff] %v4583_v33 }
 0x3e3   :  { %6209 = vst [vmem:[#allocation67_spill] sm:$0xff] %v4587_v61  ;;  %v4589_v26 = vpop.permute.xlu1 %602 }
 0x3e4   :  { %6210 = vst [vmem:[#allocation68_spill] sm:$0xff] %v4589_v26 }
 0x3e5   :  { %v4626_v27 = vld [vmem:[#allocation1] sm:$0xff] }
 0x3e6   :  { %6219 = vst [vmem:[#allocation77_spill] sm:$0xff] %v4626_v27 }
 0x3e7   :  { %692 = vrot.lane.b32.xlu0 %v4247_v2, %s4011_s25  ;;  %682 = vrot.lane.b32.xlu2 %v4228_v59, %s4011_s25 }
 0x3e9   :  { %690 = vrot.lane.b32.xlu1 %v4250_v3, %s4011_s25  ;;  %v4597_v49 = vpop.permute.xlu2 %512  ;;  %v4599_v30 = vpop.permute.xlu0 %604 }
 0x3ea   :  { %6211 = vst [vmem:[#allocation69_spill] sm:$0xff] %v4597_v49 }
 0x3eb   :  { %6212 = vst [vmem:[#allocation70_spill] sm:$0xff] %v4599_v30  ;;  %v4601_v39 = vpop.permute.xlu1 %608 }
 0x3ec   :  { %6213 = vst [vmem:[#allocation71_spill] sm:$0xff] %v4601_v39 }
 0x3ef   :  { %698 = vrot.lane.b32.xlu0 %v4265_v13, %s4011_s25  ;;  %688 = vrot.lane.b32.xlu2 %v4238_v62, %s4011_s25 }
 0x3f1   :  { %696 = vrot.lane.b32.xlu1 %v4253_v55, %s4011_s25  ;;  %v4609_v37 = vpop.permute.xlu2 %518  ;;  %v4611_v20 = vpop.permute.xlu0 %610 }
 0x3f2   :  { %6214 = vst [vmem:[#allocation72_spill] sm:$0xff] %v4609_v37  ;;  %v838_v19 = vmul.f32 0.35355338, %v4609_v37 }
 0x3f3   :  { %6215 = vst [vmem:[#allocation73_spill] sm:$0xff] %v4611_v20  ;;  %v4613_v46 = vpop.permute.xlu1 %514 }
 0x3f4   :  { %6216 = vst [vmem:[#allocation74_spill] sm:$0xff] %v4613_v46  ;;  %v836_v27 = vmul.f32 0.35355338, %v4613_v46 }
 0x3f7   :  { %704 = vrot.lane.b32.xlu0 %v4284_v18, %s4011_s25  ;;  %694 = vrot.lane.b32.xlu2 %v4244_v0, %s4011_s25 }
 0x3f9   :  { %702 = vrot.lane.b32.xlu1 %v4278_v17, %s4011_s25  ;;  %v4621_v7 = vpop.permute.xlu2 %524  ;;  %v4623_v52 = vpop.permute.xlu0 %510 }
 0x3fa   :  { %6217 = vst [vmem:[#allocation75_spill] sm:$0xff] %v4621_v7  ;;  %v834_v56 = vmul.f32 0.35355338, %v4623_v52  ;;  %v841_v38 = vmul.f32 0.35355338, %v4621_v7 }
 0x3fb   :  { %6218 = vst [vmem:[#allocation76_spill] sm:$0xff] %v4623_v52  ;;  %v4628_v53 = vpop.permute.xlu1 %520  ;;  %v835_v52 = vmul.f32 0.35355338, %v4597_v49 }
 0x3fc   :  { %6220 = vst [vmem:[#allocation78_spill] sm:$0xff] %v4628_v53 }
 0x3fd   :  { %1121 = vst [vmem:[#allocation1] ss:$9 sm:$0xff] %v834_v56 }
 0x3ff   :  { %710 = vrot.lane.b32.xlu0 %v4297_v24, %s4011_s25  ;;  %700 = vrot.lane.b32.xlu2 %v4275_v15, %s4011_s25 }
 0x401   :  { %708 = vrot.lane.b32.xlu1 %v4288_v21, %s4011_s25  ;;  %v4636_v31 = vpop.permute.xlu2 %618  ;;  %v4638_v51 = vpop.permute.xlu0 %516  ;;  %v839_v21 = vmul.f32 0.35355338, %v4628_v53 }
 0x402   :  { %6221 = vst [vmem:[#allocation79_spill] sm:$0xff] %v4638_v51  ;;  %v837_v24 = vmul.f32 0.35355338, %v4638_v51 }
 0x403   :  { %v4644_v56 = vpop.permute.xlu1 %614 }
 0x404   :  { %v4642_v4 = vld [vmem:[#allocation1] sm:$0xff] }
 0x405   :  { %6222 = vst [vmem:[#allocation80_spill] sm:$0xff] %v4642_v4 }
 0x406   :  { %1123 = vst [vmem:[#allocation1] ss:$9 sm:$0xff] %v835_v52 }
 0x407   :  { %1124 = vst [vmem:[#allocation1 + $0x1] ss:$9 sm:$0xff] %v836_v27  ;;  %716 = vrot.lane.b32.xlu0 %v4347_v47, %s4011_s25  ;;  %706 = vrot.lane.b32.xlu2 %v4281_v16, %s4011_s25 }
 0x408   :  { %1126 = vst [vmem:[#allocation1 + $0x3] ss:$9 sm:$0xff] %v838_v19 }
 0x409   :  { %1129 = vst [vmem:[#allocation1 + $0x6] ss:$9 sm:$0xff] %v841_v38  ;;  %714 = vrot.lane.b32.xlu1 %v4318_v35, %s4011_s25  ;;  %v4656_v52 = vpop.permute.xlu2 %624  ;;  %v4658_v27 = vpop.permute.xlu0 %522 }
 0x40a   :  { %1127 = vst [vmem:[#allocation1 + $0x4] ss:$9 sm:$0xff] %v839_v21  ;;  %v840_v19 = vmul.f32 0.35355338, %v4658_v27 }
 0x40b   :  { %1125 = vst [vmem:[#allocation1 + $0x2] ss:$9 sm:$0xff] %v837_v24  ;;  %v4661_v4 = vpop.permute.xlu1 %620 }
 0x40c   :  { %6223 = vst [vmem:[#allocation81_spill] sm:$0xff] %v4656_v52 }
 0x40d   :  { %6224 = vst [vmem:[#allocation82_spill] sm:$0xff] %v4658_v27 }
 0x40e   :  { %6225 = vst [vmem:[#allocation83_spill] sm:$0xff] %v4661_v4 }
 0x40f   :  { %1128 = vst [vmem:[#allocation1 + $0x5] ss:$9 sm:$0xff] %v840_v19  ;;  %646 = vrot.lane.b32.xlu0 %v4422_v32, %s4009_s23  ;;  %712 = vrot.lane.b32.xlu2 %v4305_v28, %s4011_s25 }
 0x411   :  { %720 = vrot.lane.b32.xlu1 %v4339_v45, %s4011_s25  ;;  %v4669_v21 = vpop.permute.xlu2 %530  ;;  %v4671_v24 = vpop.permute.xlu0 %616 }
 0x412   :  { %6226 = vst [vmem:[#allocation84_spill] sm:$0xff] %v4669_v21  ;;  %v844_v49 = vmul.f32 0.35355338, %v4669_v21 }
 0x413   :  { %6227 = vst [vmem:[#allocation85_spill] sm:$0xff] %v4671_v24  ;;  %v4673_v38 = vpop.permute.xlu1 %626 }
 0x414   :  { %6228 = vst [vmem:[#allocation86_spill] sm:$0xff] %v4673_v38 }
 0x417   :  { %722 = vrot.lane.b32.xlu0 %v4359_v25, %s4011_s25  ;;  %718 = vrot.lane.b32.xlu2 %v4333_v43, %s4011_s25 }
 0x419   :  { %726 = vrot.lane.b32.xlu1 %v4353_v50, %s4011_s25  ;;  %v4681_v19 = vpop.permute.xlu2 %536  ;;  %v4683_v7 = vpop.permute.xlu0 %622 }
 0x41a   :  { %6229 = vst [vmem:[#allocation87_spill] sm:$0xff] %v4681_v19 }
 0x41b   :  { %6230 = vst [vmem:[#allocation88_spill] sm:$0xff] %v4683_v7  ;;  %v4685_v27 = vpop.permute.xlu1 %526 }
 0x41c   :  { %6231 = vst [vmem:[#allocation89_spill] sm:$0xff] %v4685_v27  ;;  %v842_v53 = vmul.f32 0.35355338, %v4685_v27 }
 0x41e   :  { %1130 = vst [vmem:[#allocation1 + $0x7] ss:$9 sm:$0xff] %v842_v53  ;;  %v847_v53 = vmul.f32 0.35355338, %v4681_v19 }
 0x41f   :  { %728 = vrot.lane.b32.xlu0 %v4363_v54, %s4011_s25  ;;  %724 = vrot.lane.b32.xlu2 %v4336_v44, %s4011_s25 }
 0x421   :  { %732 = vrot.lane.b32.xlu1 %v4379_v6, %s4011_s25  ;;  %v4694_v37 = vpop.permute.xlu2 %630  ;;  %v4696_v51 = vpop.permute.xlu0 %628 }
 0x422   :  { %6232 = vst [vmem:[#allocation90_spill] sm:$0xff] %v4694_v37 }
 0x423   :  { %6233 = vst [vmem:[#allocation91_spill] sm:$0xff] %v4696_v51  ;;  %v4698_v46 = vpop.permute.xlu1 %532 }
 0x424   :  { %6234 = vst [vmem:[#allocation92_spill] sm:$0xff] %v4698_v46  ;;  %v845_v27 = vmul.f32 0.35355338, %v4698_v46 }
 0x425   :  { %v4703_v50 = vld [vmem:[#allocation1] sm:$0xff] }
 0x426   :  { %6235 = vst [vmem:[#allocation93_spill] sm:$0xff] %v4703_v50 }
 0x427   :  { %1133 = vst [vmem:[#allocation1 + $0x1] ss:$9 sm:$0xff] %v844_v49  ;;  %734 = vrot.lane.b32.xlu0 %v4382_v8, %s4011_s25  ;;  %730 = vrot.lane.b32.xlu2 %v4330_v40, %s4011_s25 }
 0x428   :  { %1136 = vst [vmem:[#allocation1 + $0x4] ss:$9 sm:$0xff] %v847_v53 }
 0x429   :  { %1134 = vst [vmem:[#allocation1 + $0x2] ss:$9 sm:$0xff] %v845_v27  ;;  %738 = vrot.lane.b32.xlu1 %v4389_v11, %s4011_s25  ;;  %v4711_v6 = vpop.permute.xlu2 %636  ;;  %v4713_v21 = vpop.permute.xlu0 %528  ;;  %v855_v11 = vmul.f32 0.35355338, %v4529_v34 }
 0x42a   :  { %6236 = vst [vmem:[#allocation94_spill] sm:$0xff] %v4711_v6  ;;  %v843_v19 = vmul.f32 0.35355338, %v4713_v21 }
 0x42b   :  { %6237 = vst [vmem:[#allocation95_spill] sm:$0xff] %v4713_v21  ;;  %v4716_v46 = vpop.permute.xlu1 %538 }
 0x42c   :  { %6238 = vst [vmem:[#allocation96_spill] sm:$0xff] %v4716_v46  ;;  %v848_v49 = vmul.f32 0.35355338, %v4716_v46 }
 0x42d   :  { %1132 = vst [vmem:[#allocation1] ss:$9 sm:$0xff] %v843_v19 }
 0x42e   :  { %1137 = vst [vmem:[#allocation1 + $0x5] ss:$9 sm:$0xff] %v848_v49 }
 0x42f   :  { %740 = vrot.lane.b32.xlu0 %v4398_v60, %s4011_s25  ;;  %736 = vrot.lane.b32.xlu2 %v4385_v9, %s4011_s25 }
 0x431   :  { %744 = vrot.lane.b32.xlu1 %v4408_v22, %s4011_s25  ;;  %v4725_v27 = vpop.permute.xlu2 %542  ;;  %v4727_v53 = vpop.permute.xlu0 %534 }
 0x432   :  { %6239 = vst [vmem:[#allocation97_spill] sm:$0xff] %v4725_v27  ;;  %v850_v50 = vmul.f32 0.35355338, %v4725_v27  ;;  %v846_v19 = vmul.f32 0.35355338, %v4727_v53 }
 0x433   :  { %6240 = vst [vmem:[#allocation98_spill] sm:$0xff] %v4727_v53  ;;  %v4731_v21 = vpop.permute.xlu1 %632 }
 0x434   :  { %6241 = vst [vmem:[#allocation99_spill] sm:$0xff] %v4731_v21 }
 0x435   :  { %1139 = vst [vmem:[#allocation1 + $0x7] ss:$9 sm:$0xff] %v850_v50 }
 0x436   :  { %1135 = vst [vmem:[#allocation1 + $0x3] ss:$9 sm:$0xff] %v846_v19 }
 0x437   :  { %746 = vrot.lane.b32.xlu0 %v4376_v5, %s4011_s25  ;;  %742 = vrot.lane.b32.xlu2 %v4402_v1, %s4011_s25 }
 0x439   :  { %v4737_v49 = vpop.permute.xlu0 %540 }
 0x43a   :  { %6242 = vst [vmem:[#allocation100_spill] sm:$0xff] %v4737_v49  ;;  %v849_v46 = vmul.f32 0.35355338, %v4737_v49  ;;  %v852_v49 = vmul.f32 0.35355338, %v4476_v58 }
 0x43b   :  { %v4740_v22 = vpop.permute.xlu1 %638 }
 0x43c   :  { %6243 = vst [vmem:[#allocation101_spill] sm:$0xff] %v4740_v22 }
 0x43d   :  { %1138 = vst [vmem:[#allocation1 + $0x6] ss:$9 sm:$0xff] %v849_v46  ;;  %v853_v46 = vmul.f32 0.35355338, %v4472_v57  ;;  %v859_v57 = vmul.f32 0.35355338, %v4499_v29 }
 0x43f   :  { %748 = vrot.lane.b32.xlu2 %v4422_v32, %s4011_s25  ;;  %v854_v32 = vmul.f32 0.35355338, %v4506_v41 }
 0x441   :  { %v4744_v27 = vpop.permute.xlu0 %634 }
 0x442   :  { %6244 = vst [vmem:[#allocation102_spill] sm:$0xff] %v4744_v27 }
 0x443   :  { %v4746_v50 = vpop.permute.xlu1 %644 }
 0x444   :  { %6245 = vst [vmem:[#allocation103_spill] sm:$0xff] %v4746_v50  ;;  %v4751_v5 = vld [vmem:[#allocation1] sm:$0xff] }
 0x445   :  { %6247 = vst [vmem:[#allocation105_spill] sm:$0xff] %v4751_v5  ;;  %v857_v5 = vmul.f32 0.35355338, %v4519_v23  ;;  %v4774_v23 = vpop.permute.xlu2 %642 }
 0x446   :  { %6252 = vst [vmem:[#allocation110_spill] sm:$0xff] %v4774_v23 }
 0x449   :  { %v4753_v1 = vpop.permute.xlu0 %640 }
 0x44b   :  { %v4748_v19 = vpop.permute.xlu1 %544 }
 0x44c   :  { %6246 = vst [vmem:[#allocation104_spill] sm:$0xff] %v4748_v19  ;;  %v851_v53 = vmul.f32 0.35355338, %v4748_v19  ;;  %v856_v19 = vmul.f32 0.35355338, %v4485_v14 }
 0x44e   :  { %1141 = vst [vmem:[#allocation1] ss:$9 sm:$0xff] %v851_v53  ;;  %v858_v53 = vmul.f32 0.35355338, %v4545_v48 }
 0x451   :  { %v4761_v9 = vpop.permute.xlu0 %686 }
 0x452   :  { %6249 = vst [vmem:[#allocation107_spill] sm:$0xff] %v4761_v9 }
 0x455   :  { %v4757_v60 = vld [vmem:[#allocation1] sm:$0xff] }
 0x456   :  { %6248 = vst [vmem:[#allocation106_spill] sm:$0xff] %v4757_v60  ;;  %v861_v60 = vmul.f32 0.35355338, %v4587_v61 }
 0x457   :  { %1143 = vst [vmem:[#allocation1] ss:$9 sm:$0xff] %v852_v49 }
 0x458   :  { %1144 = vst [vmem:[#allocation1 + $0x1] ss:$9 sm:$0xff] %v853_v46  ;;  %v860_v46 = vmul.f32 0.35355338, %v4535_v10 }
 0x459   :  { %1145 = vst [vmem:[#allocation1 + $0x2] ss:$9 sm:$0xff] %v854_v32  ;;  %v4767_v49 = vpop.permute.xlu0 %692  ;;  %v862_v32 = vmul.f32 0.35355338, %v4555_v12 }
 0x45a   :  { %1146 = vst [vmem:[#allocation1 + $0x3] ss:$9 sm:$0xff] %v855_v11  ;;  %v863_v11 = vmul.f32 0.35355338, %v4589_v26 }
 0x45b   :  { %1147 = vst [vmem:[#allocation1 + $0x4] ss:$9 sm:$0xff] %v856_v19  ;;  %v866_v19 = vmul.f32 0.35355338, %v4601_v39 }
 0x45c   :  { %1148 = vst [vmem:[#allocation1 + $0x5] ss:$9 sm:$0xff] %v857_v5  ;;  %v864_v5 = vmul.f32 0.35355338, %v4599_v30 }
 0x45d   :  { %1149 = vst [vmem:[#allocation1 + $0x6] ss:$9 sm:$0xff] %v858_v53  ;;  %v867_v53 = vmul.f32 0.35355338, %v4611_v20  ;;  %v874_v20 = vmul.f32 0.35355338, %v4656_v52 }
 0x45e   :  { %1150 = vst [vmem:[#allocation1 + $0x7] ss:$9 sm:$0xff] %v859_v57  ;;  %v865_v57 = vmul.f32 0.35355338, %v4569_v42 }
 0x45f   :  { %6250 = vst [vmem:[#allocation108_spill] sm:$0xff] %v4767_v49 }
 0x465   :  { %v4771_v34 = vld [vmem:[#allocation1] sm:$0xff] }
 0x466   :  { %6251 = vst [vmem:[#allocation109_spill] sm:$0xff] %v4771_v34  ;;  %v4781_v34 = vpop.permute.xlu0 %698 }
 0x467   :  { %1152 = vst [vmem:[#allocation1] ss:$9 sm:$0xff] %v860_v46  ;;  %v4783_v46 = vpop.permute.xlu2 %682 }
 0x468   :  { %1153 = vst [vmem:[#allocation1 + $0x1] ss:$9 sm:$0xff] %v861_v60  ;;  %v868_v60 = vmul.f32 0.35355338, %v4583_v33  ;;  %v872_v33 = vmul.f32 0.35355338, %v4661_v4 }
 0x469   :  { %1154 = vst [vmem:[#allocation1 + $0x2] ss:$9 sm:$0xff] %v862_v32  ;;  %v4788_v32 = vpop.permute.xlu1 %684 }
 0x46a   :  { %1155 = vst [vmem:[#allocation1 + $0x3] ss:$9 sm:$0xff] %v863_v11 }
 0x46b   :  { %1156 = vst [vmem:[#allocation1 + $0x4] ss:$9 sm:$0xff] %v864_v5  ;;  %v869_v5 = vmul.f32 0.35355338, %v4644_v56 }
 0x46c   :  { %1157 = vst [vmem:[#allocation1 + $0x5] ss:$9 sm:$0xff] %v865_v57  ;;  %v870_v57 = vmul.f32 0.35355338, %v4671_v24  ;;  %v875_v24 = vmul.f32 0.35355338, %v4673_v38 }
 0x46d   :  { %1158 = vst [vmem:[#allocation1 + $0x6] ss:$9 sm:$0xff] %v866_v19  ;;  %v879_v38 = vmul.f32 0.35355338, %v4744_v27 }
 0x46e   :  { %6253 = vst [vmem:[#allocation111_spill] sm:$0xff] %v4781_v34  ;;  %v4790_v11 = vpop.permute.xlu0 %704 }
 0x46f   :  { %1159 = vst [vmem:[#allocation1 + $0x7] ss:$9 sm:$0xff] %v867_v53  ;;  %v4792_v39 = vpop.permute.xlu2 %688  ;;  %v871_v53 = vmul.f32 0.35355338, %v4636_v31 }
 0x470   :  { %6254 = vst [vmem:[#allocation112_spill] sm:$0xff] %v4783_v46 }
 0x471   :  { %6256 = vst [vmem:[#allocation114_spill] sm:$0xff] %v4788_v32 }
 0x472   :  { %6257 = vst [vmem:[#allocation115_spill] sm:$0xff] %v4790_v11 }
 0x473   :  { %6258 = vst [vmem:[#allocation116_spill] sm:$0xff] %v4792_v39 }
 0x476   :  { %v4786_v26 = vld [vmem:[#allocation1] sm:$0xff]  ;;  %v4804_v42 = vpop.permute.xlu0 %710 }
 0x477   :  { %6255 = vst [vmem:[#allocation113_spill] sm:$0xff] %v4786_v26  ;;  %v4801_v26 = vpop.permute.xlu1 %690 }
 0x478   :  { %1161 = vst [vmem:[#allocation1] ss:$9 sm:$0xff] %v868_v60  ;;  %v873_v60 = vmul.f32 0.35355338, %v4683_v7 }
 0x479   :  { %6260 = vst [vmem:[#allocation118_spill] sm:$0xff] %v4801_v26 }
 0x47a   :  { %6261 = vst [vmem:[#allocation119_spill] sm:$0xff] %v4804_v42 }
 0x47e   :  { %v4813_v7 = vpop.permute.xlu0 %716 }
 0x47f   :  { %v4796_v19 = vld [vmem:[#allocation1] sm:$0xff]  ;;  %6263 = vst [vmem:[#allocation121_spill] sm:$0xff] %v4813_v7 }
 0x480   :  { %6259 = vst [vmem:[#allocation117_spill] sm:$0xff] %v4796_v19  ;;  %v876_v19 = vmul.f32 0.35355338, %v4696_v51 }
 0x481   :  { %1163 = vst [vmem:[#allocation1] ss:$9 sm:$0xff] %v869_v5  ;;  %v4808_v5 = vpop.permute.xlu2 %694 }
 0x482   :  { %1164 = vst [vmem:[#allocation1 + $0x1] ss:$9 sm:$0xff] %v870_v57  ;;  %v4810_v57 = vpop.permute.xlu1 %696 }
 0x483   :  { %1165 = vst [vmem:[#allocation1 + $0x2] ss:$9 sm:$0xff] %v871_v53  ;;  %v877_v53 = vmul.f32 0.35355338, %v4694_v37  ;;  %v883_v37 = vmul.f32 0.35355338, %v4774_v23 }
 0x484   :  { %1166 = vst [vmem:[#allocation1 + $0x3] ss:$9 sm:$0xff] %v872_v33  ;;  %v878_v33 = vmul.f32 0.35355338, %v4731_v21  ;;  %v884_v21 = vmul.f32 0.35355338, %v4746_v50 }
 0x485   :  { %1167 = vst [vmem:[#allocation1 + $0x4] ss:$9 sm:$0xff] %v873_v60  ;;  %v880_v60 = vmul.f32 0.35355338, %v4711_v6  ;;  %v887_v50 = vmul.f32 0.35355338, %v4788_v32 }
 0x486   :  { %1168 = vst [vmem:[#allocation1 + $0x5] ss:$9 sm:$0xff] %v874_v20  ;;  %v881_v20 = vmul.f32 0.35355338, %v4740_v22  ;;  %v890_v23 = vmul.f32 0.35355338, %v4801_v26 }
 0x487   :  { %1169 = vst [vmem:[#allocation1 + $0x6] ss:$9 sm:$0xff] %v875_v24  ;;  %v893_v32 = vmul.f32 0.35355338, %v4810_v57 }
 0x488   :  { %1170 = vst [vmem:[#allocation1 + $0x7] ss:$9 sm:$0xff] %v876_v19  ;;  %v882_v19 = vmul.f32 0.35355338, %v4753_v1 }
 0x489   :  { %6262 = vst [vmem:[#allocation120_spill] sm:$0xff] %v4808_v5  ;;  %v4821_v24 = vpop.permute.xlu2 %700 }
 0x48f   :  { %v4816_v52 = vld [vmem:[#allocation1] sm:$0xff] }
 0x490   :  { %6264 = vst [vmem:[#allocation122_spill] sm:$0xff] %v4816_v52  ;;  %v4828_v52 = vpop.permute.xlu0 %646 }
 0x491   :  { %1172 = vst [vmem:[#allocation1] ss:$9 sm:$0xff] %v877_v53  ;;  %v4826_v53 = vpop.permute.xlu1 %702 }
 0x492   :  { %1173 = vst [vmem:[#allocation1 + $0x1] ss:$9 sm:$0xff] %v878_v33  ;;  %v885_v33 = vmul.f32 0.35355338, %v4828_v52 }
 0x493   :  { %1174 = vst [vmem:[#allocation1 + $0x2] ss:$9 sm:$0xff] %v879_v38  ;;  %v4831_v38 = vpop.permute.xlu2 %706 }
 0x494   :  { %1175 = vst [vmem:[#allocation1 + $0x3] ss:$9 sm:$0xff] %v880_v60 }
 0x495   :  { %1176 = vst [vmem:[#allocation1 + $0x4] ss:$9 sm:$0xff] %v881_v20  ;;  %v886_v20 = vmul.f32 0.35355338, %v4783_v46 }
 0x496   :  { %1177 = vst [vmem:[#allocation1 + $0x5] ss:$9 sm:$0xff] %v882_v19 }
 0x497   :  { %1178 = vst [vmem:[#allocation1 + $0x6] ss:$9 sm:$0xff] %v883_v37 }
 0x498   :  { %1179 = vst [vmem:[#allocation1 + $0x7] ss:$9 sm:$0xff] %v884_v21  ;;  %v888_v21 = vmul.f32 0.35355338, %v4761_v9 }
 0x499   :  { %6265 = vst [vmem:[#allocation123_spill] sm:$0xff] %v4826_v53  ;;  %v4835_v60 = vpop.permute.xlu1 %708 }
 0x49a   :  { %6266 = vst [vmem:[#allocation124_spill] sm:$0xff] %v4828_v52  ;;  %v889_v52 = vmul.f32 0.35355338, %v4792_v39 }
 0x49b   :  { %6267 = vst [vmem:[#allocation125_spill] sm:$0xff] %v4831_v38  ;;  %v4839_v19 = vpop.permute.xlu2 %712 }
 0x49c   :  { %6269 = vst [vmem:[#allocation127_spill] sm:$0xff] %v4835_v60 }
 0x49d   :  { %6270 = vst [vmem:[#allocation128_spill] sm:$0xff] %v4839_v19 }
 0x49f   :  { %v4833_v22 = vld [vmem:[#allocation1] sm:$0xff] }
 0x4a0   :  { %6268 = vst [vmem:[#allocation126_spill] sm:$0xff] %v4833_v22  ;;  %v892_v22 = vmul.f32 0.35355338, %v4808_v5  ;;  %v896_v5 = vmul.f32 0.35355338, %v4826_v53 }
 0x4a1   :  { %1181 = vst [vmem:[#allocation1] ss:$9 sm:$0xff] %v885_v33  ;;  %v891_v33 = vmul.f32 0.35355338, %v4767_v49  ;;  %v4848_v46 = vpop.permute.xlu1 %714 }
 0x4a2   :  { %6272 = vst [vmem:[#allocation130_spill] sm:$0xff] %v4848_v46 }
 0x4a8   :  { %v4841_v37 = vld [vmem:[#allocation1] sm:$0xff] }
 0x4a9   :  { %6271 = vst [vmem:[#allocation129_spill] sm:$0xff] %v4841_v37  ;;  %v4854_v37 = vpop.permute.xlu0 %722 }
 0x4aa   :  { %1183 = vst [vmem:[#allocation1] ss:$9 sm:$0xff] %v886_v20  ;;  %v4851_v20 = vpop.permute.xlu2 %718 }
 0x4ab   :  { %1184 = vst [vmem:[#allocation1 + $0x1] ss:$9 sm:$0xff] %v887_v50  ;;  %v894_v50 = vmul.f32 0.35355338, %v4781_v34 }
 0x4ac   :  { %1185 = vst [vmem:[#allocation1 + $0x2] ss:$9 sm:$0xff] %v888_v21  ;;  %v895_v21 = vmul.f32 0.35355338, %v4821_v24 }
 0x4ad   :  { %1186 = vst [vmem:[#allocation1 + $0x3] ss:$9 sm:$0xff] %v889_v52  ;;  %v4859_v52 = vpop.permute.xlu1 %720 }
 0x4ae   :  { %1187 = vst [vmem:[#allocation1 + $0x4] ss:$9 sm:$0xff] %v890_v23  ;;  %v897_v23 = vmul.f32 0.35355338, %v4790_v11 }
 0x4af   :  { %1188 = vst [vmem:[#allocation1 + $0x5] ss:$9 sm:$0xff] %v891_v33  ;;  %v900_v33 = vmul.f32 0.35355338, %v4804_v42 }
 0x4b0   :  { %1189 = vst [vmem:[#allocation1 + $0x6] ss:$9 sm:$0xff] %v892_v22  ;;  %v898_v22 = vmul.f32 0.35355338, %v4831_v38 }
 0x4b1   :  { %1190 = vst [vmem:[#allocation1 + $0x7] ss:$9 sm:$0xff] %v893_v32  ;;  %v899_v32 = vmul.f32 0.35355338, %v4835_v60 }
 0x4b2   :  { %6273 = vst [vmem:[#allocation131_spill] sm:$0xff] %v4851_v20  ;;  %v4866_v34 = vpop.permute.xlu2 %724 }
 0x4b5   :  { %v4871_v11 = vpop.permute.xlu1 %726 }
 0x4b8   :  { %v4857_v49 = vld [vmem:[#allocation1] sm:$0xff] }
 0x4b9   :  { %6274 = vst [vmem:[#allocation132_spill] sm:$0xff] %v4857_v49  ;;  %v901_v49 = vmul.f32 0.35355338, %v4839_v19 }
 0x4ba   :  { %1192 = vst [vmem:[#allocation1] ss:$9 sm:$0xff] %v894_v50  ;;  %v4869_v50 = vpop.permute.xlu0 %728 }
 0x4bb   :  { %1193 = vst [vmem:[#allocation1 + $0x1] ss:$9 sm:$0xff] %v895_v21  ;;  %v902_v21 = vmul.f32 0.35355338, %v4848_v46 }
 0x4bc   :  { %1194 = vst [vmem:[#allocation1 + $0x2] ss:$9 sm:$0xff] %v896_v5  ;;  %v4874_v5 = vpop.permute.xlu2 %730 }
 0x4bd   :  { %1195 = vst [vmem:[#allocation1 + $0x3] ss:$9 sm:$0xff] %v897_v23  ;;  %v4880_v42 = vpop.permute.xlu1 %732  ;;  %v910_v46 = vmul.f32 0.35355338, %v4874_v5 }
 0x4be   :  { %1196 = vst [vmem:[#allocation1 + $0x4] ss:$9 sm:$0xff] %v898_v22  ;;  %v903_v22 = vmul.f32 0.35355338, %v4813_v7  ;;  %v908_v7 = vmul.f32 0.35355338, %v4871_v11 }
 0x4bf   :  { %1197 = vst [vmem:[#allocation1 + $0x5] ss:$9 sm:$0xff] %v899_v32  ;;  %v904_v32 = vmul.f32 0.35355338, %v4851_v20 }
 0x4c0   :  { %1198 = vst [vmem:[#allocation1 + $0x6] ss:$9 sm:$0xff] %v900_v33  ;;  %v907_v33 = vmul.f32 0.35355338, %v4866_v34 }
 0x4c1   :  { %1199 = vst [vmem:[#allocation1 + $0x7] ss:$9 sm:$0xff] %v901_v49 }
 0x4c2   :  { %6275 = vst [vmem:[#allocation133_spill] sm:$0xff] %v4869_v50  ;;  %v4878_v23 = vpop.permute.xlu0 %734 }
 0x4c3   :  { %6276 = vst [vmem:[#allocation134_spill] sm:$0xff] %v4874_v5 }
 0x4c4   :  { %6278 = vst [vmem:[#allocation136_spill] sm:$0xff] %v4878_v23  ;;  %v4888_v19 = vpop.permute.xlu2 %736 }
 0x4c5   :  { %6280 = vst [vmem:[#allocation138_spill] sm:$0xff] %v4888_v19 }
 0x4c8   :  { %v4876_v60 = vld [vmem:[#allocation1] sm:$0xff] }
 0x4c9   :  { %6277 = vst [vmem:[#allocation135_spill] sm:$0xff] %v4876_v60  ;;  %v906_v60 = vmul.f32 0.35355338, %v4854_v37 }
 0x4ca   :  { %1201 = vst [vmem:[#allocation1] ss:$9 sm:$0xff] %v902_v21  ;;  %v905_v21 = vmul.f32 0.35355338, %v4859_v52  ;;  %v4894_v20 = vpop.permute.xlu0 %740 }
 0x4d1   :  { %v4884_v49 = vld [vmem:[#allocation1] sm:$0xff] }
 0x4d2   :  { %6279 = vst [vmem:[#allocation137_spill] sm:$0xff] %v4884_v49  ;;  %v909_v49 = vmul.f32 0.35355338, %v4869_v50  ;;  %v912_v50 = vmul.f32 0.35355338, %v4878_v23 }
 0x4d3   :  { %1203 = vst [vmem:[#allocation1] ss:$9 sm:$0xff] %v903_v22  ;;  %v4896_v22 = vpop.permute.xlu1 %738 }
 0x4d4   :  { %1204 = vst [vmem:[#allocation1 + $0x1] ss:$9 sm:$0xff] %v904_v32  ;;  %v4898_v32 = vpop.permute.xlu2 %742 }
 0x4d5   :  { %1207 = vst [vmem:[#allocation1 + $0x4] ss:$9 sm:$0xff] %v907_v33  ;;  %v913_v33 = vmul.f32 0.35355338, %v4888_v19  ;;  %v915_v19 = vmul.f32 0.35355338, %v4894_v20 }
 0x4d6   :  { %1210 = vst [vmem:[#allocation1 + $0x7] ss:$9 sm:$0xff] %v910_v46  ;;  %v916_v46 = vmul.f32 0.35355338, %v4898_v32 }
 0x4d7   :  { %1205 = vst [vmem:[#allocation1 + $0x2] ss:$9 sm:$0xff] %v905_v21  ;;  %v911_v21 = vmul.f32 0.35355338, %v4880_v42 }
 0x4d8   :  { %1206 = vst [vmem:[#allocation1 + $0x3] ss:$9 sm:$0xff] %v906_v60  ;;  %v4905_v60 = vpop.permute.xlu0 %746 }
 0x4d9   :  { %1208 = vst [vmem:[#allocation1 + $0x5] ss:$9 sm:$0xff] %v908_v7 }
 0x4da   :  { %1209 = vst [vmem:[#allocation1 + $0x6] ss:$9 sm:$0xff] %v909_v49  ;;  %v914_v49 = vmul.f32 0.35355338, %v4896_v22 }
 0x4db   :  { %6281 = vst [vmem:[#allocation139_spill] sm:$0xff] %v4898_v32  ;;  %v4908_v7 = vpop.permute.xlu1 %744  ;;  %v918_v32 = vmul.f32 0.35355338, %v4905_v60 }
 0x4e1   :  { %v4902_v5 = vld [vmem:[#allocation1] sm:$0xff] }
 0x4e2   :  { %6282 = vst [vmem:[#allocation140_spill] sm:$0xff] %v4902_v5  ;;  %v4914_v5 = vpop.permute.xlu2 %748 }
 0x4e3   :  { %1214 = vst [vmem:[#allocation1 + $0x2] ss:$9 sm:$0xff] %v913_v33  ;;  %v917_v33 = vmul.f32 0.35355338, %v4908_v7 }
 0x4e4   :  { %1217 = vst [vmem:[#allocation1 + $0x5] ss:$9 sm:$0xff] %v916_v46  ;;  %v919_v46 = vmul.f32 0.35355338, %v4914_v5 }
 0x4e5   :  { %1212 = vst [vmem:[#allocation1] ss:$9 sm:$0xff] %v911_v21 }
 0x4e6   :  { %1213 = vst [vmem:[#allocation1 + $0x1] ss:$9 sm:$0xff] %v912_v50  ;;  %v6285_v50 = vld [vmem:[#allocation14_spill] sm:$0xff] }
 0x4e7   :  { %1215 = vst [vmem:[#allocation1 + $0x3] ss:$9 sm:$0xff] %v914_v49 }
 0x4e8   :  { %1216 = vst [vmem:[#allocation1 + $0x4] ss:$9 sm:$0xff] %v915_v19 }
 0x4e9   :  { %1218 = vst [vmem:[#allocation1 + $0x6] ss:$9 sm:$0xff] %v917_v33 }
 0x4ea   :  { %1219 = vst [vmem:[#allocation1 + $0x7] ss:$9 sm:$0xff] %v918_v32  ;;  %v6286_v32 = vld [vmem:[#allocation15_spill] sm:$0xff] }
 0x4f1   :  { %v4917_v23 = vld [vmem:[#allocation1] sm:$0xff] }
 0x4f2   :  { %6283 = vst [vmem:[#allocation141_spill] sm:$0xff] %v4917_v23  ;;  %v6288_v23 = vld [vmem:[#allocation30_spill] sm:$0xff] }
 0x4f3   :  { %1221 = vst [vmem:[#allocation1] ss:$9 sm:$0xff] %v919_v46  ;;  %v6287_v46 = vld [vmem:[#allocation26_spill] sm:$0xff] }
 0x4fa   :  { %v4919_v21 = vld [vmem:[#allocation1] sm:$0xff] }
 0x4fb   :  { %6284 = vst [vmem:[#allocation142_spill] sm:$0xff] %v4919_v21 }
 0x4fc   :  { %1271 = vst [vmem:[#allocation1] ss:$9 sm:$0xff] %v4228_v59 }
 0x4fd   :  { %1273 = vst [vmem:[#allocation1 + $0x1] ss:$9 sm:$0xff] %v4241_v63 }
 0x4fe   :  { %1275 = vst [vmem:[#allocation1 + $0x2] ss:$9 sm:$0xff] %v4235_v36 }
 0x4ff   :  { %1277 = vst [vmem:[#allocation1 + $0x3] ss:$9 sm:$0xff] %v4238_v62 }
 0x500   :  { %1279 = vst [vmem:[#allocation1 + $0x4] ss:$9 sm:$0xff] %v4250_v3 }
 0x501   :  { %1281 = vst [vmem:[#allocation1 + $0x5] ss:$9 sm:$0xff] %v4247_v2 }
 0x502   :  { %1283 = vst [vmem:[#allocation1 + $0x6] ss:$9 sm:$0xff] %v4244_v0 }
 0x503   :  { %1285 = vst [vmem:[#allocation1 + $0x7] ss:$9 sm:$0xff] %v4253_v55 }
 0x50a   :  { %v4929_v19 = vld [vmem:[#allocation1] sm:$0xff] }
 0x50b   :  { %1287 = vst [vmem:[#allocation1] ss:$9 sm:$0xff] %v4265_v13 }
 0x50c   :  { %1288 = vst [vmem:[#allocation1 + $0x1] ss:$9 sm:$0xff] %v4275_v15 }
 0x50d   :  { %1289 = vst [vmem:[#allocation1 + $0x2] ss:$9 sm:$0xff] %v4278_v17 }
 0x50e   :  { %1290 = vst [vmem:[#allocation1 + $0x3] ss:$9 sm:$0xff] %v4284_v18  ;;  %v6322_v18 = vld [vmem:[#allocation84_spill] sm:$0xff] }
 0x50f   :  { %1291 = vst [vmem:[#allocation1 + $0x4] ss:$9 sm:$0xff] %v4281_v16 }
 0x510   :  { %1292 = vst [vmem:[#allocation1 + $0x5] ss:$9 sm:$0xff] %v6285_v50 }
 0x511   :  { %1293 = vst [vmem:[#allocation1 + $0x6] ss:$9 sm:$0xff] %v6286_v32  ;;  %v6305_v32 = vld [vmem:[#allocation60_spill] sm:$0xff] }
 0x512   :  { %1294 = vst [vmem:[#allocation1 + $0x7] ss:$9 sm:$0xff] %v4305_v28 }
 0x519   :  { %v4939_v49 = vld [vmem:[#allocation1] sm:$0xff] }
 0x51a   :  { %1296 = vst [vmem:[#allocation1] ss:$9 sm:$0xff] %v4318_v35 }
 0x521   :  { %v4942_v33 = vld [vmem:[#allocation1] sm:$0xff] }
 0x522   :  { %1298 = vst [vmem:[#allocation1] ss:$9 sm:$0xff] %v4347_v47  ;;  %v6289_v47 = vld [vmem:[#allocation32_spill] sm:$0xff] }
 0x523   :  { %1299 = vst [vmem:[#allocation1 + $0x1] ss:$9 sm:$0xff] %v4333_v43  ;;  %v6290_v43 = vld [vmem:[#allocation33_spill] sm:$0xff] }
 0x524   :  { %1300 = vst [vmem:[#allocation1 + $0x2] ss:$9 sm:$0xff] %v4339_v45  ;;  %v6291_v45 = vld [vmem:[#allocation35_spill] sm:$0xff] }
 0x525   :  { %1301 = vst [vmem:[#allocation1 + $0x3] ss:$9 sm:$0xff] %v4359_v25  ;;  %v6292_v25 = vld [vmem:[#allocation36_spill] sm:$0xff] }
 0x526   :  { %1302 = vst [vmem:[#allocation1 + $0x4] ss:$9 sm:$0xff] %v4336_v44  ;;  %v6293_v44 = vld [vmem:[#allocation37_spill] sm:$0xff] }
 0x527   :  { %1303 = vst [vmem:[#allocation1 + $0x5] ss:$9 sm:$0xff] %v6287_v46  ;;  %v6294_v46 = vld [vmem:[#allocation29_spill] sm:$0xff] }
 0x528   :  { %1304 = vst [vmem:[#allocation1 + $0x6] ss:$9 sm:$0xff] %v4363_v54 }
 0x529   :  { %1305 = vst [vmem:[#allocation1 + $0x7] ss:$9 sm:$0xff] %v4330_v40  ;;  %v6295_v40 = vld [vmem:[#allocation38_spill] sm:$0xff] }
 0x530   :  { %v4952_v21 = vld [vmem:[#allocation1] sm:$0xff] }
 0x531   :  { %1307 = vst [vmem:[#allocation1] ss:$9 sm:$0xff] %v6288_v23  ;;  %v6296_v23 = vld [vmem:[#allocation40_spill] sm:$0xff] }
 0x532   :  { %1308 = vst [vmem:[#allocation1 + $0x1] ss:$9 sm:$0xff] %v4382_v8  ;;  %v6297_v8 = vld [vmem:[#allocation47_spill] sm:$0xff] }
 0x533   :  { %1309 = vst [vmem:[#allocation1 + $0x2] ss:$9 sm:$0xff] %v6289_v47  ;;  %v6298_v47 = vld [vmem:[#allocation45_spill] sm:$0xff] }
 0x534   :  { %1310 = vst [vmem:[#allocation1 + $0x3] ss:$9 sm:$0xff] %v6290_v43  ;;  %v6299_v43 = vld [vmem:[#allocation42_spill] sm:$0xff] }
 0x535   :  { %1311 = vst [vmem:[#allocation1 + $0x4] ss:$9 sm:$0xff] %v6291_v45  ;;  %v6300_v45 = vld [vmem:[#allocation50_spill] sm:$0xff] }
 0x536   :  { %1312 = vst [vmem:[#allocation1 + $0x5] ss:$9 sm:$0xff] %v6292_v25  ;;  %v6301_v25 = vld [vmem:[#allocation43_spill] sm:$0xff] }
 0x537   :  { %1313 = vst [vmem:[#allocation1 + $0x6] ss:$9 sm:$0xff] %v6293_v44  ;;  %v6302_v44 = vld [vmem:[#allocation48_spill] sm:$0xff] }
 0x538   :  { %1314 = vst [vmem:[#allocation1 + $0x7] ss:$9 sm:$0xff] %v6294_v46  ;;  %v6303_v46 = vld [vmem:[#allocation53_spill] sm:$0xff] }
 0x53f   :  { %v4962_v54 = vld [vmem:[#allocation1] sm:$0xff] }
 0x540   :  { %1316 = vst [vmem:[#allocation1] ss:$9 sm:$0xff] %v6295_v40  ;;  %v6304_v40 = vld [vmem:[#allocation52_spill] sm:$0xff] }
 0x547   :  { %v4965_v35 = vld [vmem:[#allocation1] sm:$0xff] }
 0x548   :  { %1318 = vst [vmem:[#allocation1] ss:$9 sm:$0xff] %v6296_v23  ;;  %v6306_v23 = vld [vmem:[#allocation61_spill] sm:$0xff] }
 0x549   :  { %1319 = vst [vmem:[#allocation1 + $0x1] ss:$9 sm:$0xff] %v6297_v8  ;;  %v6307_v8 = vld [vmem:[#allocation55_spill] sm:$0xff] }
 0x54a   :  { %1320 = vst [vmem:[#allocation1 + $0x2] ss:$9 sm:$0xff] %v6298_v47  ;;  %v6308_v47 = vld [vmem:[#allocation62_spill] sm:$0xff] }
 0x54b   :  { %1321 = vst [vmem:[#allocation1 + $0x3] ss:$9 sm:$0xff] %v6299_v43  ;;  %v6309_v43 = vld [vmem:[#allocation64_spill] sm:$0xff] }
 0x54c   :  { %1322 = vst [vmem:[#allocation1 + $0x4] ss:$9 sm:$0xff] %v6300_v45  ;;  %v6310_v45 = vld [vmem:[#allocation58_spill] sm:$0xff] }
 0x54d   :  { %1323 = vst [vmem:[#allocation1 + $0x5] ss:$9 sm:$0xff] %v6301_v25  ;;  %v6311_v25 = vld [vmem:[#allocation65_spill] sm:$0xff] }
 0x54e   :  { %1324 = vst [vmem:[#allocation1 + $0x6] ss:$9 sm:$0xff] %v6302_v44 }
 0x54f   :  { %1325 = vst [vmem:[#allocation1 + $0x7] ss:$9 sm:$0xff] %v6303_v46  ;;  %v6312_v46 = vld [vmem:[#allocation76_spill] sm:$0xff] }
 0x556   :  { %v4975_v28 = vld [vmem:[#allocation1] sm:$0xff] }
 0x557   :  { %1327 = vst [vmem:[#allocation1] ss:$9 sm:$0xff] %v6304_v40  ;;  %v6313_v40 = vld [vmem:[#allocation69_spill] sm:$0xff] }
 0x558   :  { %1328 = vst [vmem:[#allocation1 + $0x1] ss:$9 sm:$0xff] %v6305_v32  ;;  %v6314_v32 = vld [vmem:[#allocation74_spill] sm:$0xff] }
 0x559   :  { %1329 = vst [vmem:[#allocation1 + $0x2] ss:$9 sm:$0xff] %v6306_v23  ;;  %v6315_v23 = vld [vmem:[#allocation79_spill] sm:$0xff] }
 0x55a   :  { %1330 = vst [vmem:[#allocation1 + $0x3] ss:$9 sm:$0xff] %v6307_v8  ;;  %v6316_v8 = vld [vmem:[#allocation72_spill] sm:$0xff] }
 0x55b   :  { %1331 = vst [vmem:[#allocation1 + $0x4] ss:$9 sm:$0xff] %v6308_v47  ;;  %v6317_v47 = vld [vmem:[#allocation78_spill] sm:$0xff] }
 0x55c   :  { %1332 = vst [vmem:[#allocation1 + $0x5] ss:$9 sm:$0xff] %v6309_v43  ;;  %v6318_v43 = vld [vmem:[#allocation82_spill] sm:$0xff] }
 0x55d   :  { %1333 = vst [vmem:[#allocation1 + $0x6] ss:$9 sm:$0xff] %v6310_v45  ;;  %v6319_v45 = vld [vmem:[#allocation75_spill] sm:$0xff] }
 0x55e   :  { %1334 = vst [vmem:[#allocation1 + $0x7] ss:$9 sm:$0xff] %v6311_v25  ;;  %v6320_v25 = vld [vmem:[#allocation89_spill] sm:$0xff] }
 0x565   :  { %v4985_v44 = vld [vmem:[#allocation1] sm:$0xff] }
 0x566   :  { %1336 = vst [vmem:[#allocation1] ss:$9 sm:$0xff] %v6312_v46  ;;  %v6321_v46 = vld [vmem:[#allocation95_spill] sm:$0xff] }
 0x56d   :  { %v4988_v50 = vld [vmem:[#allocation1] sm:$0xff] }
 0x56e   :  { %1338 = vst [vmem:[#allocation1] ss:$9 sm:$0xff] %v6313_v40  ;;  %v6323_v40 = vld [vmem:[#allocation92_spill] sm:$0xff] }
 0x56f   :  { %1339 = vst [vmem:[#allocation1 + $0x1] ss:$9 sm:$0xff] %v6314_v32  ;;  %v6324_v32 = vld [vmem:[#allocation98_spill] sm:$0xff] }
 0x570   :  { %1340 = vst [vmem:[#allocation1 + $0x2] ss:$9 sm:$0xff] %v6315_v23  ;;  %v6325_v23 = vld [vmem:[#allocation87_spill] sm:$0xff] }
 0x571   :  { %1341 = vst [vmem:[#allocation1 + $0x3] ss:$9 sm:$0xff] %v6316_v8  ;;  %v6326_v8 = vld [vmem:[#allocation96_spill] sm:$0xff] }
 0x572   :  { %1342 = vst [vmem:[#allocation1 + $0x4] ss:$9 sm:$0xff] %v6317_v47  ;;  %v6327_v47 = vld [vmem:[#allocation100_spill] sm:$0xff] }
 0x573   :  { %1343 = vst [vmem:[#allocation1 + $0x5] ss:$9 sm:$0xff] %v6318_v43  ;;  %v6328_v43 = vld [vmem:[#allocation97_spill] sm:$0xff] }
 0x574   :  { %1344 = vst [vmem:[#allocation1 + $0x6] ss:$9 sm:$0xff] %v6319_v45 }
 0x575   :  { %1345 = vst [vmem:[#allocation1 + $0x7] ss:$9 sm:$0xff] %v6320_v25  ;;  %v6329_v25 = vld [vmem:[#allocation104_spill] sm:$0xff] }
 0x57c   :  { %v4998_v16 = vld [vmem:[#allocation1] sm:$0xff] }
 0x57d   :  { %1347 = vst [vmem:[#allocation1] ss:$9 sm:$0xff] %v6321_v46 }
 0x57e   :  { %1348 = vst [vmem:[#allocation1 + $0x1] ss:$9 sm:$0xff] %v6322_v18  ;;  %v6330_v18 = vld [vmem:[#allocation44_spill] sm:$0xff] }
 0x57f   :  { %1349 = vst [vmem:[#allocation1 + $0x2] ss:$9 sm:$0xff] %v6323_v40 }
 0x580   :  { %1350 = vst [vmem:[#allocation1 + $0x3] ss:$9 sm:$0xff] %v6324_v32  ;;  %v6331_v32 = vld [vmem:[#allocation56_spill] sm:$0xff] }
 0x581   :  { %1351 = vst [vmem:[#allocation1 + $0x4] ss:$9 sm:$0xff] %v6325_v23 }
 0x582   :  { %1352 = vst [vmem:[#allocation1 + $0x5] ss:$9 sm:$0xff] %v6326_v8  ;;  %v6332_v8 = vld [vmem:[#allocation54_spill] sm:$0xff] }
 0x583   :  { %1353 = vst [vmem:[#allocation1 + $0x6] ss:$9 sm:$0xff] %v6327_v47 }
 0x584   :  { %1354 = vst [vmem:[#allocation1 + $0x7] ss:$9 sm:$0xff] %v6328_v43 }
 0x58b   :  { %v5008_v45 = vld [vmem:[#allocation1] sm:$0xff] }
 0x58c   :  { %1356 = vst [vmem:[#allocation1] ss:$9 sm:$0xff] %v6329_v25 }
 0x593   :  { %v5011_v17 = vld [vmem:[#allocation1] sm:$0xff] }
 0x594   :  { %1358 = vst [vmem:[#allocation1] ss:$9 sm:$0xff] %v4476_v58 }
 0x595   :  { %1359 = vst [vmem:[#allocation1 + $0x1] ss:$9 sm:$0xff] %v6330_v18  ;;  %v6333_v18 = vld [vmem:[#allocation68_spill] sm:$0xff] }
 0x596   :  { %1360 = vst [vmem:[#allocation1 + $0x2] ss:$9 sm:$0xff] %v4506_v41 }
 0x597   :  { %1361 = vst [vmem:[#allocation1 + $0x3] ss:$9 sm:$0xff] %v6331_v32  ;;  %v6334_v32 = vld [vmem:[#allocation63_spill] sm:$0xff] }
 0x598   :  { %1362 = vst [vmem:[#allocation1 + $0x4] ss:$9 sm:$0xff] %v4485_v14  ;;  %v6335_v14 = vld [vmem:[#allocation71_spill] sm:$0xff] }
 0x599   :  { %1363 = vst [vmem:[#allocation1 + $0x5] ss:$9 sm:$0xff] %v6332_v8  ;;  %v6336_v8 = vld [vmem:[#allocation73_spill] sm:$0xff] }
 0x59a   :  { %1364 = vst [vmem:[#allocation1 + $0x6] ss:$9 sm:$0xff] %v4545_v48 }
 0x59b   :  { %1365 = vst [vmem:[#allocation1 + $0x7] ss:$9 sm:$0xff] %v4499_v29  ;;  %v6337_v29 = vld [vmem:[#allocation66_spill] sm:$0xff] }
 0x5a2   :  { %v5021_v43 = vld [vmem:[#allocation1] sm:$0xff] }
 0x5a3   :  { %1367 = vst [vmem:[#allocation1] ss:$9 sm:$0xff] %v4535_v10 }
 0x5a4   :  { %1368 = vst [vmem:[#allocation1 + $0x1] ss:$9 sm:$0xff] %v4587_v61  ;;  %v6338_v61 = vld [vmem:[#allocation85_spill] sm:$0xff] }
 0x5a5   :  { %1369 = vst [vmem:[#allocation1 + $0x2] ss:$9 sm:$0xff] %v4555_v12 }
 0x5a6   :  { %1370 = vst [vmem:[#allocation1 + $0x3] ss:$9 sm:$0xff] %v6333_v18  ;;  %v6343_v18 = vld [vmem:[#allocation99_spill] sm:$0xff] }
 0x5a7   :  { %1371 = vst [vmem:[#allocation1 + $0x4] ss:$9 sm:$0xff] %v4599_v30  ;;  %v6339_v30 = vld [vmem:[#allocation88_spill] sm:$0xff] }
 0x5a8   :  { %1372 = vst [vmem:[#allocation1 + $0x5] ss:$9 sm:$0xff] %v6334_v32  ;;  %v6340_v32 = vld [vmem:[#allocation81_spill] sm:$0xff] }
 0x5a9   :  { %1373 = vst [vmem:[#allocation1 + $0x6] ss:$9 sm:$0xff] %v6335_v14  ;;  %v6341_v14 = vld [vmem:[#allocation86_spill] sm:$0xff] }
 0x5aa   :  { %1374 = vst [vmem:[#allocation1 + $0x7] ss:$9 sm:$0xff] %v6336_v8 }
 0x5b1   :  { %v5031_v48 = vld [vmem:[#allocation1] sm:$0xff] }
 0x5b2   :  { %1376 = vst [vmem:[#allocation1] ss:$9 sm:$0xff] %v6337_v29  ;;  %v6342_v29 = vld [vmem:[#allocation90_spill] sm:$0xff] }
 0x5b9   :  { %v5034_v41 = vld [vmem:[#allocation1] sm:$0xff] }
 0x5ba   :  { %1378 = vst [vmem:[#allocation1] ss:$9 sm:$0xff] %v4644_v56 }
 0x5bb   :  { %1379 = vst [vmem:[#allocation1 + $0x1] ss:$9 sm:$0xff] %v6338_v61  ;;  %v1462_v61 = vpack.c.bf16 %v4929_v19, %v4929_v19  ;;  %v1464_v19 = vpack.c.bf16 %v4942_v33, %v4942_v33 }
 0x5bc   :  { %1380 = vst [vmem:[#allocation1 + $0x2] ss:$9 sm:$0xff] %v4636_v31 }
 0x5bd   :  { %1381 = vst [vmem:[#allocation1 + $0x3] ss:$9 sm:$0xff] %v4661_v4  ;;  %v6345_v4 = vld [vmem:[#allocation110_spill] sm:$0xff] }
 0x5be   :  { %1382 = vst [vmem:[#allocation1 + $0x4] ss:$9 sm:$0xff] %v6339_v30  ;;  %v6344_v30 = vld [vmem:[#allocation101_spill] sm:$0xff] }
 0x5bf   :  { %1383 = vst [vmem:[#allocation1 + $0x5] ss:$9 sm:$0xff] %v6340_v32  ;;  %v1463_v32 = vpack.c.bf16 %v4939_v49, %v4939_v49  ;;  %v6347_v49 = vld [vmem:[#allocation124_spill] sm:$0xff] }
 0x5c0   :  { %1384 = vst [vmem:[#allocation1 + $0x6] ss:$9 sm:$0xff] %v6341_v14 }
 0x5c1   :  { %1385 = vst [vmem:[#allocation1 + $0x7] ss:$9 sm:$0xff] %v4696_v51  ;;  %v1497_v51 = vunpack.c.l.b16 %v1462_v61  ;;  %v1498_v14 = vunpack.c.l.b16 %v1463_v32  ;;  %v6348_v32 = vld [vmem:[#allocation112_spill] sm:$0xff] }
 0x5c8   :  { %v5044_v8 = vld [vmem:[#allocation1] sm:$0xff] }
 0x5c9   :  { %1387 = vst [vmem:[#allocation1] ss:$9 sm:$0xff] %v6342_v29  ;;  %v6346_v29 = vld [vmem:[#allocation103_spill] sm:$0xff] }
 0x5ca   :  { %1388 = vst [vmem:[#allocation1 + $0x1] ss:$9 sm:$0xff] %v6343_v18  ;;  %v1500_v18 = vpack.c.b16 %v1498_v14, %v1497_v51  ;;  %v6350_v51 = vld [vmem:[#allocation108_spill] sm:$0xff] }
 0x5cb   :  { %1389 = vst [vmem:[#allocation1 + $0x2] ss:$9 sm:$0xff] %v4744_v27  ;;  %v6351_v14 = vld [vmem:[#allocation120_spill] sm:$0xff] }
 0x5cc   :  { %1390 = vst [vmem:[#allocation1 + $0x3] ss:$9 sm:$0xff] %v4711_v6  ;;  %1502 = vrot.lane.b32.xlu0 %v1500_v18, %s4012_s26  ;;  %v1499_v6 = vunpack.c.l.b16 %v1464_v19  ;;  %v1465_v18 = vpack.c.bf16 %v4952_v21, %v4952_v21  ;;  %v1467_v21 = vpack.c.bf16 %v4965_v35, %v4965_v35  ;;  %v6356_v35 = vld [vmem:[#allocation128_spill] sm:$0xff] }
 0x5cd   :  { %1391 = vst [vmem:[#allocation1 + $0x4] ss:$9 sm:$0xff] %v6344_v30 }
 0x5ce   :  { %1392 = vst [vmem:[#allocation1 + $0x5] ss:$9 sm:$0xff] %v4753_v1  ;;  %v1501_v30 = vpack.c.b16 %v1499_v6, %v1499_v6  ;;  %v1466_v6 = vpack.c.bf16 %v4962_v54, %v4962_v54 }
 0x5cf   :  { %1393 = vst [vmem:[#allocation1 + $0x6] ss:$9 sm:$0xff] %v6345_v4 }
 0x5d0   :  { %1394 = vst [vmem:[#allocation1 + $0x7] ss:$9 sm:$0xff] %v6346_v29  ;;  %1504 = vrot.lane.b32.xlu1 %v1501_v30, %s4012_s26  ;;  %v6349_v29 = vld [vmem:[#allocation114_spill] sm:$0xff]  ;;  %v1548_v30 = vunpack.c.l.b16 %v1465_v18  ;;  %v1549_v33 = vunpack.c.l.b16 %v1466_v6  ;;  %v6353_v18 = vld [vmem:[#allocation115_spill] sm:$0xff] }
 0x5d1   :  { %v6354_v6 = vld [vmem:[#allocation127_spill] sm:$0xff] }
 0x5d2   :  { %v1551_v19 = vpack.c.b16 %v1549_v33, %v1548_v30  ;;  %v6355_v30 = vld [vmem:[#allocation119_spill] sm:$0xff]  ;;  %v1468_v33 = vpack.c.bf16 %v4975_v28, %v4975_v28 }
 0x5d7   :  { %v5061_v27 = vld [vmem:[#allocation1] sm:$0xff] }
 0x5d8   :  { %1396 = vst [vmem:[#allocation1] ss:$9 sm:$0xff] %v6347_v49  ;;  %1553 = vrot.lane.b32.xlu1 %v1551_v19, %s4012_s26 }
 0x5df   :  { %v5065_v61 = vld [vmem:[#allocation1] sm:$0xff] }
 0x5e0   :  { %1398 = vst [vmem:[#allocation1] ss:$9 sm:$0xff] %v6348_v32 }
 0x5e1   :  { %1399 = vst [vmem:[#allocation1 + $0x1] ss:$9 sm:$0xff] %v6349_v29 }
 0x5e2   :  { %1400 = vst [vmem:[#allocation1 + $0x2] ss:$9 sm:$0xff] %v4761_v9  ;;  %v6352_v9 = vld [vmem:[#allocation111_spill] sm:$0xff] }
 0x5e3   :  { %1401 = vst [vmem:[#allocation1 + $0x3] ss:$9 sm:$0xff] %v4792_v39 }
 0x5e4   :  { %1402 = vst [vmem:[#allocation1 + $0x4] ss:$9 sm:$0xff] %v4801_v26  ;;  %v1550_v26 = vunpack.c.l.b16 %v1467_v21  ;;  %v6357_v21 = vld [vmem:[#allocation130_spill] sm:$0xff] }
 0x5e5   :  { %1403 = vst [vmem:[#allocation1 + $0x5] ss:$9 sm:$0xff] %v6350_v51 }
 0x5e6   :  { %1404 = vst [vmem:[#allocation1 + $0x6] ss:$9 sm:$0xff] %v6351_v14  ;;  %v1552_v54 = vpack.c.b16 %v1550_v26, %v1550_v26  ;;  %v1469_v26 = vpack.c.bf16 %v4985_v44, %v4985_v44 }
 0x5e7   :  { %1405 = vst [vmem:[#allocation1 + $0x7] ss:$9 sm:$0xff] %v4810_v57 }
 0x5e8   :  { %1555 = vrot.lane.b32.xlu2 %v1552_v54, %s4012_s26  ;;  %v1599_v54 = vunpack.c.l.b16 %v1469_v26  ;;  %v6362_v26 = vld [vmem:[#allocation136_spill] sm:$0xff] }
 0x5ee   :  { %v5082_v39 = vld [vmem:[#allocation1] sm:$0xff] }
 0x5ef   :  { %1407 = vst [vmem:[#allocation1] ss:$9 sm:$0xff] %v6352_v9 }
 0x5f0   :  { %1408 = vst [vmem:[#allocation1 + $0x1] ss:$9 sm:$0xff] %v4821_v24 }
 0x5f1   :  { %1409 = vst [vmem:[#allocation1 + $0x2] ss:$9 sm:$0xff] %v4826_v53 }
 0x5f2   :  { %1410 = vst [vmem:[#allocation1 + $0x3] ss:$9 sm:$0xff] %v6353_v18  ;;  %v1598_v18 = vunpack.c.l.b16 %v1468_v33  ;;  %v1472_v33 = vpack.c.bf16 %v5008_v45, %v5008_v45 }
 0x5f3   :  { %1411 = vst [vmem:[#allocation1 + $0x4] ss:$9 sm:$0xff] %v4831_v38  ;;  %v6359_v38 = vld [vmem:[#allocation131_spill] sm:$0xff] }
 0x5f4   :  { %1412 = vst [vmem:[#allocation1 + $0x5] ss:$9 sm:$0xff] %v6354_v6  ;;  %v1601_v53 = vpack.c.b16 %v1599_v54, %v1598_v18  ;;  %v1471_v18 = vpack.c.bf16 %v4998_v16, %v4998_v16  ;;  %v1473_v16 = vpack.c.bf16 %v5011_v17, %v5011_v17 }
 0x5f5   :  { %1413 = vst [vmem:[#allocation1 + $0x6] ss:$9 sm:$0xff] %v6355_v30  ;;  %v1470_v30 = vpack.c.bf16 %v4988_v50, %v4988_v50  ;;  %v6361_v50 = vld [vmem:[#allocation134_spill] sm:$0xff] }
 0x5f6   :  { %1414 = vst [vmem:[#allocation1 + $0x7] ss:$9 sm:$0xff] %v6356_v35  ;;  %1603 = vrot.lane.b32.xlu2 %v1601_v53, %s4012_s26  ;;  %v6358_v35 = vld [vmem:[#allocation121_spill] sm:$0xff]  ;;  %v1648_v54 = vunpack.c.l.b16 %v1471_v18  ;;  %v1650_v45 = vunpack.c.l.b16 %v1473_v16 }
 0x5f7   :  { %v1600_v28 = vunpack.c.l.b16 %v1470_v30  ;;  %v6360_v53 = vld [vmem:[#allocation133_spill] sm:$0xff] }
 0x5f8   :  { %v1652_v18 = vpack.c.b16 %v1650_v45, %v1650_v45 }
 0x5f9   :  { %v1602_v44 = vpack.c.b16 %v1600_v28, %v1600_v28  ;;  %v1649_v28 = vunpack.c.l.b16 %v1472_v33 }
 0x5fa   :  { %1655 = vrot.lane.b32.xlu1 %v1652_v18, %s4012_s26 }
 0x5fb   :  { %1605 = vrot.lane.b32.xlu0 %v1602_v44, %s4012_s26  ;;  %v6363_v44 = vld [vmem:[#allocation138_spill] sm:$0xff] }
 0x5fd   :  { %v5097_v19 = vld [vmem:[#allocation1] sm:$0xff] }
 0x5fe   :  { %1416 = vst [vmem:[#allocation1] ss:$9 sm:$0xff] %v6357_v21 }
 0x605   :  { %v5103_v6 = vld [vmem:[#allocation1] sm:$0xff] }
 0x606   :  { %1418 = vst [vmem:[#allocation1] ss:$9 sm:$0xff] %v6358_v35 }
 0x607   :  { %1419 = vst [vmem:[#allocation1 + $0x1] ss:$9 sm:$0xff] %v6359_v38 }
 0x608   :  { %1420 = vst [vmem:[#allocation1 + $0x2] ss:$9 sm:$0xff] %v4859_v52 }
 0x609   :  { %1421 = vst [vmem:[#allocation1 + $0x3] ss:$9 sm:$0xff] %v4854_v37 }
 0x60a   :  { %1422 = vst [vmem:[#allocation1 + $0x4] ss:$9 sm:$0xff] %v4866_v34 }
 0x60b   :  { %1423 = vst [vmem:[#allocation1 + $0x5] ss:$9 sm:$0xff] %v4871_v11 }
 0x60c   :  { %1424 = vst [vmem:[#allocation1 + $0x6] ss:$9 sm:$0xff] %v6360_v53  ;;  %v1651_v53 = vpack.c.b16 %v1649_v28, %v1648_v54  ;;  %v1474_v54 = vpack.c.bf16 %v5021_v43, %v5021_v43  ;;  %v6370_v43 = vld [vmem:[#allocation17_spill] sm:$0xff] }
 0x60d   :  { %1425 = vst [vmem:[#allocation1 + $0x7] ss:$9 sm:$0xff] %v6361_v50  ;;  %v6364_v50 = vld [vmem:[#allocation139_spill] sm:$0xff] }
 0x60e   :  { %1653 = vrot.lane.b32.xlu0 %v1651_v53, %s4012_s26  ;;  %v1475_v53 = vpack.c.bf16 %v5031_v48, %v5031_v48  ;;  %v1698_v17 = vunpack.c.l.b16 %v1474_v54  ;;  %v1476_v48 = vpack.c.bf16 %v5034_v41, %v5034_v41  ;;  %v1477_v41 = vpack.c.bf16 %v5044_v8, %v5044_v8 }
 0x610   :  { %v1699_v16 = vunpack.c.l.b16 %v1475_v53  ;;  %v1748_v18 = vunpack.c.l.b16 %v1477_v41  ;;  %v6376_v41 = vld [vmem:[#allocation23_spill] sm:$0xff] }
 0x612   :  { %v1701_v45 = vpack.c.b16 %v1699_v16, %v1698_v17  ;;  %v6371_v17 = vld [vmem:[#allocation18_spill] sm:$0xff] }
 0x614   :  { %v5116_v30 = vld [vmem:[#allocation1] sm:$0xff]  ;;  %1703 = vrot.lane.b32.xlu1 %v1701_v45, %s4012_s26  ;;  %v1479_v45 = vpack.c.bf16 %v5065_v61, %v5065_v61  ;;  %v6375_v61 = vld [vmem:[#allocation25_spill] sm:$0xff] }
 0x615   :  { %1427 = vst [vmem:[#allocation1] ss:$9 sm:$0xff] %v4880_v42 }
 0x616   :  { %1428 = vst [vmem:[#allocation1 + $0x1] ss:$9 sm:$0xff] %v6362_v26  ;;  %v1750_v8 = vunpack.c.l.b16 %v1479_v45  ;;  %v6380_v45 = vld [vmem:[#allocation26_spill] sm:$0xff] }
 0x617   :  { %1429 = vst [vmem:[#allocation1 + $0x2] ss:$9 sm:$0xff] %v6363_v44 }
 0x618   :  { %1430 = vst [vmem:[#allocation1 + $0x3] ss:$9 sm:$0xff] %v4896_v22 }
 0x619   :  { %1431 = vst [vmem:[#allocation1 + $0x4] ss:$9 sm:$0xff] %v4894_v20 }
 0x61a   :  { %1432 = vst [vmem:[#allocation1 + $0x5] ss:$9 sm:$0xff] %v6364_v50 }
 0x61b   :  { %1433 = vst [vmem:[#allocation1 + $0x6] ss:$9 sm:$0xff] %v4908_v7 }
 0x61c   :  { %1434 = vst [vmem:[#allocation1 + $0x7] ss:$9 sm:$0xff] %v4905_v60 }
 0x623   :  { %v5132_v33 = vld [vmem:[#allocation1] sm:$0xff] }
 0x624   :  { %1436 = vst [vmem:[#allocation1] ss:$9 sm:$0xff] %v4914_v5 }
 0x62b   :  { %v5137_v28 = vld [vmem:[#allocation1] sm:$0xff] }
 0x62c   :  { %2177 = vst [vmem:[#allocation1] ss:$9 sm:$0xff] %v4228_v59  ;;  %v1700_v59 = vunpack.c.l.b16 %v1476_v48 }
 0x62d   :  { %2179 = vst [vmem:[#allocation1 + $0x1] ss:$9 sm:$0xff] %v4241_v63 }
 0x62e   :  { %2181 = vst [vmem:[#allocation1 + $0x2] ss:$9 sm:$0xff] %v4235_v36  ;;  %v1702_v36 = vpack.c.b16 %v1700_v59, %v1700_v59 }
 0x62f   :  { %2183 = vst [vmem:[#allocation1 + $0x3] ss:$9 sm:$0xff] %v4238_v62  ;;  %v6365_v62 = vld [vmem:[#allocation11_spill] sm:$0xff] }
 0x630   :  { %2185 = vst [vmem:[#allocation1 + $0x4] ss:$9 sm:$0xff] %v4250_v3  ;;  %1705 = vrot.lane.b32.xlu2 %v1702_v36, %s4012_s26  ;;  %v6368_v3 = vld [vmem:[#allocation14_spill] sm:$0xff]  ;;  %v6372_v36 = vld [vmem:[#allocation24_spill] sm:$0xff] }
 0x631   :  { %2187 = vst [vmem:[#allocation1 + $0x5] ss:$9 sm:$0xff] %v4247_v2  ;;  %v6367_v2 = vld [vmem:[#allocation12_spill] sm:$0xff] }
 0x632   :  { %2189 = vst [vmem:[#allocation1 + $0x6] ss:$9 sm:$0xff] %v4244_v0  ;;  %v6366_v0 = vld [vmem:[#allocation13_spill] sm:$0xff] }
 0x633   :  { %2191 = vst [vmem:[#allocation1 + $0x7] ss:$9 sm:$0xff] %v4253_v55  ;;  %v6369_v55 = vld [vmem:[#allocation15_spill] sm:$0xff] }
 0x63a   :  { %v5152_v63 = vld [vmem:[#allocation1] sm:$0xff] }
 0x63b   :  { %2193 = vst [vmem:[#allocation1] ss:$9 sm:$0xff] %v4265_v13  ;;  %v1478_v13 = vpack.c.bf16 %v5061_v27, %v5061_v27  ;;  %v1752_v27 = vpack.c.b16 %v1750_v8, %v1750_v8 }
 0x63c   :  { %2194 = vst [vmem:[#allocation1 + $0x1] ss:$9 sm:$0xff] %v4275_v15 }
 0x63d   :  { %2195 = vst [vmem:[#allocation1 + $0x2] ss:$9 sm:$0xff] %v6365_v62  ;;  %v1749_v15 = vunpack.c.l.b16 %v1478_v13  ;;  %1755 = vrot.lane.b32.xlu0 %v1752_v27, %s4012_s26  ;;  %v6377_v13 = vld [vmem:[#allocation27_spill] sm:$0xff]  ;;  %v6381_v27 = vld [vmem:[#allocation28_spill] sm:$0xff] }
 0x63e   :  { %2196 = vst [vmem:[#allocation1 + $0x3] ss:$9 sm:$0xff] %v6366_v0  ;;  %v1503_v62 = vpop.permute.xlu0 %1502  ;;  %v6373_v0 = vld [vmem:[#allocation21_spill] sm:$0xff] }
 0x63f   :  { %2197 = vst [vmem:[#allocation1 + $0x4] ss:$9 sm:$0xff] %v6367_v2  ;;  %v1751_v54 = vpack.c.b16 %v1749_v15, %v1748_v18  ;;  %v1514_v18 = vsel %vm1506_vm9, %v1503_v62, 0  ;;  %v6378_v15 = vld [vmem:[#allocation16_spill] sm:$0xff]  ;;  %v1480_v62 = vpack.c.bf16 %v5082_v39, %v5082_v39  ;;  %v6384_v39 = vld [vmem:[#allocation31_spill] sm:$0xff] }
 0x640   :  { %2198 = vst [vmem:[#allocation1 + $0x5] ss:$9 sm:$0xff] %v6368_v3  ;;  %v6374_v3 = vld [vmem:[#allocation19_spill] sm:$0xff] }
 0x641   :  { %2199 = vst [vmem:[#allocation1 + $0x6] ss:$9 sm:$0xff] %v6369_v55  ;;  %1753 = vrot.lane.b32.xlu2 %v1751_v54, %s4012_s26  ;;  %v1248_v55 = vpack.c.bf16 %v6374_v3, %v6374_v3  ;;  %v1247_v54 = vpack.c.bf16 %v6378_v15, %v6378_v15 }
 0x642   :  { %2200 = vst [vmem:[#allocation1 + $0x7] ss:$9 sm:$0xff] %v6370_v43  ;;  %v1505_v16 = vpop.permute.xlu1 %1504  ;;  %v1556_v2 = vpop.permute.xlu2 %1555  ;;  %v1249_v43 = vpack.c.bf16 %v6375_v61, %v6375_v61 }
 0x643   :  { %v1517_v48 = vsel %vm1506_vm9, %v1505_v16, 0  ;;  %v1567_v16 = vsel %vm1506_vm9, %v1556_v2, 0 }
 0x644   :  { %1525 = vmatpush.bf16.xpose.msra.mxu2 %v1517_v48  ;;  %3777 = vmatpush.bf16.xpose.msra.mxu3 %v1517_v48  ;;  %v1490_v48 = vunpack.c.l.b16 %v1248_v55  ;;  %v1491_v8 = vunpack.c.l.b16 %v1249_v43  ;;  %v1798_v55 = vunpack.c.l.b16 %v1480_v62 }
 0x646   :  { %v1493_v61 = vpack.c.b16 %v1491_v8, %v1491_v8  ;;  %v6388_v8 = vld [vmem:[#allocation35_spill] sm:$0xff] }
 0x649   :  { %v5167_v53 = vld [vmem:[#allocation1] sm:$0xff] }
 0x64a   :  { %2202 = vst [vmem:[#allocation1] ss:$9 sm:$0xff] %v6371_v17  ;;  %v6379_v17 = vld [vmem:[#allocation22_spill] sm:$0xff] }
 0x64c   :  { %1526 = vmatpush.bf16.xpose.msra.mxu2 %v1514_v18  ;;  %3778 = vmatpush.bf16.xpose.msra.mxu3 %v1514_v18 }
 0x651   :  { %v5174_v59 = vld [vmem:[#allocation1] sm:$0xff] }
 0x652   :  { %2204 = vst [vmem:[#allocation1] ss:$9 sm:$0xff] %v6372_v36  ;;  %v6382_v36 = vld [vmem:[#allocation20_spill] sm:$0xff] }
 0x653   :  { %2205 = vst [vmem:[#allocation1 + $0x1] ss:$9 sm:$0xff] %v6373_v0  ;;  %v1489_v0 = vunpack.c.l.b16 %v1247_v54  ;;  %3676 = vmatmul.msk.bf16.vlgmr.msra.gmra.mxu3 %vm1506_vm9, %v1493_v61  ;;  %v6383_v54 = vld [vmem:[#allocation30_spill] sm:$0xff] }
 0x654   :  { %2206 = vst [vmem:[#allocation1 + $0x2] ss:$9 sm:$0xff] %v6376_v41  ;;  %1575 = vmatpush.bf16.xpose.msrb.mxu3 %v1567_v16  ;;  %v1554_v41 = vpop.permute.xlu1 %1553 }
 0x655   :  { %2207 = vst [vmem:[#allocation1 + $0x3] ss:$9 sm:$0xff] %v6377_v13  ;;  %v1492_v3 = vpack.c.b16 %v1490_v48, %v1489_v0  ;;  %v1481_v13 = vpack.c.bf16 %v5097_v19, %v5097_v19  ;;  %v1564_v2 = vsel %vm1506_vm9, %v1554_v41, 0  ;;  %v6386_v19 = vld [vmem:[#allocation39_spill] sm:$0xff]  ;;  %v1482_v48 = vpack.c.bf16 %v5103_v6, %v5103_v6  ;;  %v6390_v0 = vld [vmem:[#allocation36_spill] sm:$0xff]  ;;  %v6392_v41 = vld [vmem:[#allocation29_spill] sm:$0xff] }
 0x656   :  { %2208 = vst [vmem:[#allocation1 + $0x4] ss:$9 sm:$0xff] %v6379_v17  ;;  %v6385_v17 = vld [vmem:[#allocation32_spill] sm:$0xff]  ;;  %v1251_v16 = vpack.c.bf16 %v6386_v19, %v6386_v19 }
 0x657   :  { %2209 = vst [vmem:[#allocation1 + $0x5] ss:$9 sm:$0xff] %v6380_v45  ;;  %3675 = vmatmul.msk.bf16.vlgmr.msra.gmra.mxu2 %vm1506_vm9, %v1492_v3  ;;  %v1799_v43 = vunpack.c.l.b16 %v1481_v13  ;;  %v6387_v45 = vld [vmem:[#allocation33_spill] sm:$0xff]  ;;  %v1800_v62 = vunpack.c.l.b16 %v1482_v48 }
 0x658   :  { %2210 = vst [vmem:[#allocation1 + $0x6] ss:$9 sm:$0xff] %v6381_v27  ;;  %v6389_v27 = vld [vmem:[#allocation34_spill] sm:$0xff]  ;;  %v6391_v3 = vld [vmem:[#allocation37_spill] sm:$0xff]  ;;  %v1541_v61 = vunpack.c.l.b16 %v1251_v16 }
 0x659   :  { %2211 = vst [vmem:[#allocation1 + $0x7] ss:$9 sm:$0xff] %v6382_v36  ;;  %v1801_v15 = vpack.c.b16 %v1799_v43, %v1798_v55  ;;  %v1250_v36 = vpack.c.bf16 %v6389_v27, %v6389_v27  ;;  %v1802_v13 = vpack.c.b16 %v1800_v62, %v1800_v62  ;;  %v6393_v43 = vld [vmem:[#allocation38_spill] sm:$0xff] }
 0x65b   :  { %1803 = vrot.lane.b32.xlu0 %v1801_v15, %s4012_s26  ;;  %1805 = vrot.lane.b32.xlu1 %v1802_v13, %s4012_s26  ;;  %v1483_v15 = vpack.c.bf16 %v5116_v30, %v5116_v30  ;;  %v6398_v30 = vld [vmem:[#allocation42_spill] sm:$0xff] }
 0x65c   :  { %1576 = vmatpush.bf16.xpose.msrb.mxu3 %v1564_v2  ;;  %v1540_v2 = vunpack.c.l.b16 %v1250_v36  ;;  %v6396_v36 = vld [vmem:[#allocation47_spill] sm:$0xff] }
 0x65d   :  { %v1848_v19 = vunpack.c.l.b16 %v1483_v15 }
 0x65e   :  { %v1543_v55 = vpack.c.b16 %v1541_v61, %v1540_v2  ;;  %v1485_v61 = vpack.c.bf16 %v5137_v28, %v5137_v28  ;;  %v6401_v2 = vld [vmem:[#allocation48_spill] sm:$0xff] }
 0x660   :  { %v5200_v18 = vld [vmem:[#allocation1] sm:$0xff] }
 0x661   :  { %2213 = vst [vmem:[#allocation1] ss:$9 sm:$0xff] %v6383_v54  ;;  %v6394_v54 = vld [vmem:[#allocation41_spill] sm:$0xff] }
 0x662   :  { %2214 = vst [vmem:[#allocation1 + $0x1] ss:$9 sm:$0xff] %v6384_v39  ;;  %v1252_v39 = vpack.c.bf16 %v6394_v54, %v6394_v54  ;;  %v1604_v54 = vpop.permute.xlu2 %1603 }
 0x663   :  { %2215 = vst [vmem:[#allocation1 + $0x2] ss:$9 sm:$0xff] %v6385_v17  ;;  %3677 = vmatmul.msk.bf16.vlgmr.msrb.gmra.mxu3 %vm1506_vm9, %v1543_v55  ;;  %v1484_v17 = vpack.c.bf16 %v5132_v33, %v5132_v33  ;;  %v1850_v55 = vunpack.c.l.b16 %v1485_v61  ;;  %v1614_v28 = vsel %vm1506_vm9, %v1604_v54, 0 }
 0x664   :  { %2216 = vst [vmem:[#allocation1 + $0x3] ss:$9 sm:$0xff] %v6387_v45  ;;  %v1542_v48 = vunpack.c.l.b16 %v1252_v39  ;;  %v6403_v39 = vld [vmem:[#allocation77_spill] sm:$0xff] }
 0x665   :  { %2217 = vst [vmem:[#allocation1 + $0x4] ss:$9 sm:$0xff] %v6388_v8  ;;  %v1849_v16 = vunpack.c.l.b16 %v1484_v17  ;;  %v6395_v8 = vld [vmem:[#allocation40_spill] sm:$0xff]  ;;  %v1852_v15 = vpack.c.b16 %v1850_v55, %v1850_v55  ;;  %v1254_v17 = vpack.c.bf16 %v6403_v39, %v6403_v39  ;;  %v6412_v55 = vld [vmem:[#allocation65_spill] sm:$0xff] }
 0x666   :  { %2218 = vst [vmem:[#allocation1 + $0x5] ss:$9 sm:$0xff] %v6390_v0  ;;  %v6397_v0 = vld [vmem:[#allocation45_spill] sm:$0xff]  ;;  %v1544_v62 = vpack.c.b16 %v1542_v48, %v1542_v48 }
 0x667   :  { %2219 = vst [vmem:[#allocation1 + $0x6] ss:$9 sm:$0xff] %v6391_v3  ;;  %v1851_v27 = vpack.c.b16 %v1849_v16, %v1848_v19  ;;  %v6399_v3 = vld [vmem:[#allocation50_spill] sm:$0xff]  ;;  %1855 = vrot.lane.b32.xlu2 %v1852_v15, %s4012_s26  ;;  %v6404_v19 = vld [vmem:[#allocation57_spill] sm:$0xff] }
 0x668   :  { %2220 = vst [vmem:[#allocation1 + $0x7] ss:$9 sm:$0xff] %v6392_v41  ;;  %v6400_v41 = vld [vmem:[#allocation43_spill] sm:$0xff]  ;;  %v1253_v16 = vpack.c.bf16 %v6404_v19, %v6404_v19 }
 0x669   :  { %1853 = vrot.lane.b32.xlu1 %v1851_v27, %s4012_s26  ;;  %v1591_v27 = vunpack.c.l.b16 %v1254_v17 }
 0x66c   :  { %v1656_v17 = vpop.permute.xlu1 %1655 }
 0x66d   :  { %v1606_v33 = vpop.permute.xlu0 %1605 }
 0x66e   :  { %v1617_v13 = vsel %vm1506_vm9, %v1606_v33, 0  ;;  %v6409_v33 = vld [vmem:[#allocation62_spill] sm:$0xff] }
 0x66f   :  { %v5219_v6 = vld [vmem:[#allocation1] sm:$0xff]  ;;  %1625 = vmatpush.bf16.xpose.msrb.mxu2 %v1617_v13  ;;  %v2369_v13 = vpack.c.bf16 %v5167_v53, %v5167_v53  ;;  %v2370_v53 = vpack.c.bf16 %v5174_v59, %v5174_v59 }
 0x670   :  { %2222 = vst [vmem:[#allocation1] ss:$9 sm:$0xff] %v6393_v43  ;;  %v6402_v43 = vld [vmem:[#allocation53_spill] sm:$0xff] }
 0x671   :  { %v2404_v15 = vunpack.c.l.b16 %v2369_v13  ;;  %v6416_v13 = vld [vmem:[#allocation93_spill] sm:$0xff] }
 0x673   :  { %3678 = vmatmul.msk.bf16.gmra.mxu3 %vm1506_vm9, %v1544_v62  ;;  %v6408_v62 = vld [vmem:[#allocation55_spill] sm:$0xff] }
 0x677   :  { %v5228_v45 = vld [vmem:[#allocation1] sm:$0xff]  ;;  %1626 = vmatpush.bf16.xpose.msrb.mxu2 %v1614_v28 }
 0x678   :  { %2224 = vst [vmem:[#allocation1] ss:$9 sm:$0xff] %v6395_v8  ;;  %v6405_v8 = vld [vmem:[#allocation52_spill] sm:$0xff] }
 0x679   :  { %2225 = vst [vmem:[#allocation1 + $0x1] ss:$9 sm:$0xff] %v6396_v36  ;;  %v6406_v36 = vld [vmem:[#allocation60_spill] sm:$0xff] }
 0x67a   :  { %2226 = vst [vmem:[#allocation1 + $0x2] ss:$9 sm:$0xff] %v6397_v0  ;;  %v6407_v0 = vld [vmem:[#allocation61_spill] sm:$0xff] }
 0x67b   :  { %2227 = vst [vmem:[#allocation1 + $0x3] ss:$9 sm:$0xff] %v6398_v30  ;;  %v1590_v30 = vunpack.c.l.b16 %v1253_v16  ;;  %v1667_v16 = vsel %vm1506_vm9, %v1656_v17, 0  ;;  %v6421_v17 = vld [vmem:[#allocation78_spill] sm:$0xff] }
 0x67c   :  { %2228 = vst [vmem:[#allocation1 + $0x4] ss:$9 sm:$0xff] %v6399_v3  ;;  %v2368_v3 = vpack.c.bf16 %v5152_v63, %v5152_v63  ;;  %v6413_v63 = vld [vmem:[#allocation80_spill] sm:$0xff]  ;;  %1675 = vmatpush.bf16.xpose.msra.mxu3 %v1667_v16 }
 0x67d   :  { %2229 = vst [vmem:[#allocation1 + $0x5] ss:$9 sm:$0xff] %v6400_v41  ;;  %v1593_v61 = vpack.c.b16 %v1591_v27, %v1590_v30  ;;  %v6410_v41 = vld [vmem:[#allocation64_spill] sm:$0xff]  ;;  %v1255_v39 = vpack.c.bf16 %v6413_v63, %v6413_v63 }
 0x67e   :  { %2230 = vst [vmem:[#allocation1 + $0x6] ss:$9 sm:$0xff] %v6401_v2  ;;  %v6411_v2 = vld [vmem:[#allocation58_spill] sm:$0xff]  ;;  %v6414_v27 = vld [vmem:[#allocation76_spill] sm:$0xff] }
 0x67f   :  { %2231 = vst [vmem:[#allocation1 + $0x7] ss:$9 sm:$0xff] %v6402_v43  ;;  %3679 = vmatmul.msk.bf16.vlgmr.msrb.gmra.mxu2 %vm1506_vm9, %v1593_v61  ;;  %v2403_v43 = vunpack.c.l.b16 %v2368_v3  ;;  %v6420_v63 = vld [vmem:[#allocation72_spill] sm:$0xff] }
 0x681   :  { %v2406_v54 = vpack.c.b16 %v2404_v15, %v2403_v43  ;;  %v6418_v43 = vld [vmem:[#allocation74_spill] sm:$0xff] }
 0x683   :  { %2408 = vrot.lane.b32.xlu1 %v2406_v54, %s4013_s27  ;;  %v6419_v54 = vld [vmem:[#allocation79_spill] sm:$0xff] }
 0x686   :  { %v5249_v48 = vld [vmem:[#allocation1] sm:$0xff] }
 0x687   :  { %2233 = vst [vmem:[#allocation1] ss:$9 sm:$0xff] %v6405_v8 }
 0x688   :  { %2234 = vst [vmem:[#allocation1 + $0x1] ss:$9 sm:$0xff] %v6406_v36  ;;  %v2405_v36 = vunpack.c.l.b16 %v2370_v53  ;;  %v6422_v53 = vld [vmem:[#allocation82_spill] sm:$0xff] }
 0x689   :  { %2235 = vst [vmem:[#allocation1 + $0x2] ss:$9 sm:$0xff] %v6407_v0  ;;  %v1592_v0 = vunpack.c.l.b16 %v1255_v39 }
 0x68a   :  { %2236 = vst [vmem:[#allocation1 + $0x3] ss:$9 sm:$0xff] %v6408_v62  ;;  %v1706_v28 = vpop.permute.xlu2 %1705  ;;  %v2407_v30 = vpack.c.b16 %v2405_v36, %v2405_v36  ;;  %v1654_v62 = vpop.permute.xlu0 %1653  ;;  %v6424_v36 = vld [vmem:[#allocation75_spill] sm:$0xff] }
 0x68b   :  { %2237 = vst [vmem:[#allocation1 + $0x4] ss:$9 sm:$0xff] %v6409_v33  ;;  %v1717_v8 = vsel %vm1506_vm9, %v1706_v28, 0  ;;  %v1594_v3 = vpack.c.b16 %v1592_v0, %v1592_v0  ;;  %v6415_v33 = vld [vmem:[#allocation105_spill] sm:$0xff]  ;;  %v2371_v28 = vpack.c.bf16 %v5200_v18, %v5200_v18  ;;  %v1704_v0 = vpop.permute.xlu1 %1703 }
 0x68c   :  { %2238 = vst [vmem:[#allocation1 + $0x5] ss:$9 sm:$0xff] %v6410_v41  ;;  %1725 = vmatpush.bf16.xpose.msrb.mxu1 %v1717_v8  ;;  %2410 = vrot.lane.b32.xlu2 %v2407_v30, %s4013_s27  ;;  %v1257_v59 = vpack.c.bf16 %v6415_v33, %v6415_v33  ;;  %v1664_v41 = vsel %vm1506_vm9, %v1654_v62, 0  ;;  %v6423_v8 = vld [vmem:[#allocation113_spill] sm:$0xff]  ;;  %v2372_v30 = vpack.c.bf16 %v5219_v6, %v5219_v6 }
 0x68d   :  { %2239 = vst [vmem:[#allocation1 + $0x6] ss:$9 sm:$0xff] %v6411_v2  ;;  %v1256_v2 = vpack.c.bf16 %v6416_v13, %v6416_v13  ;;  %1676 = vmatpush.bf16.xpose.msra.mxu3 %v1664_v41  ;;  %v6425_v62 = vld [vmem:[#allocation89_spill] sm:$0xff] }
 0x68e   :  { %2240 = vst [vmem:[#allocation1 + $0x7] ss:$9 sm:$0xff] %v6412_v55  ;;  %v6417_v55 = vld [vmem:[#allocation69_spill] sm:$0xff]  ;;  %v1641_v15 = vunpack.c.l.b16 %v1257_v59  ;;  %v2453_v59 = vunpack.c.l.b16 %v2371_v28  ;;  %v2454_v41 = vunpack.c.l.b16 %v2372_v30 }
 0x68f   :  { %3680 = vmatmul.msk.bf16.gmra.mxu2 %vm1506_vm9, %v1594_v3  ;;  %v1640_v39 = vunpack.c.l.b16 %v1256_v2  ;;  %v1714_v3 = vsel %vm1506_vm9, %v1704_v0, 0  ;;  %v6426_v33 = vld [vmem:[#allocation109_spill] sm:$0xff]  ;;  %v2374_v0 = vpack.c.bf16 %v5249_v48, %v5249_v48 }
 0x690   :  { %v1259_v18 = vpack.c.bf16 %v6426_v33, %v6426_v33  ;;  %v2456_v2 = vpack.c.b16 %v2454_v41, %v2453_v59  ;;  %v6433_v41 = vld [vmem:[#allocation44_spill] sm:$0xff] }
 0x691   :  { %v1643_v16 = vpack.c.b16 %v1641_v15, %v1640_v39  ;;  %v6427_v15 = vld [vmem:[#allocation106_spill] sm:$0xff]  ;;  %v6428_v39 = vld [vmem:[#allocation84_spill] sm:$0xff] }
 0x692   :  { %2458 = vrot.lane.b32.xlu0 %v2456_v2, %s4013_s27  ;;  %v1258_v6 = vpack.c.bf16 %v6427_v15, %v6427_v15  ;;  %v6435_v2 = vld [vmem:[#allocation56_spill] sm:$0xff]  ;;  %v6437_v15 = vld [vmem:[#allocation54_spill] sm:$0xff] }
 0x694   :  { %3681 = vmatmul.msk.bf16.vlgmr.msra.gmra.mxu3 %vm1506_vm9, %v1643_v16  ;;  %1726 = vmatpush.bf16.xpose.msrb.mxu1 %v1714_v3  ;;  %v1642_v28 = vunpack.c.l.b16 %v1258_v6 }
 0x695   :  { %v5269_v19 = vld [vmem:[#allocation1] sm:$0xff] }
 0x696   :  { %2242 = vst [vmem:[#allocation1] ss:$9 sm:$0xff] %v6414_v27  ;;  %v1260_v27 = vpack.c.bf16 %v6423_v8, %v6423_v8  ;;  %v6430_v8 = vld [vmem:[#allocation96_spill] sm:$0xff] }
 0x698   :  { %v1691_v13 = vunpack.c.l.b16 %v1260_v27 }
 0x69b   :  { %v1754_v6 = vpop.permute.xlu2 %1753 }
 0x69d   :  { %v5277_v61 = vld [vmem:[#allocation1] sm:$0xff] }
 0x69e   :  { %2244 = vst [vmem:[#allocation1] ss:$9 sm:$0xff] %v6417_v55  ;;  %v1690_v55 = vunpack.c.l.b16 %v1259_v18  ;;  %v2376_v48 = vpack.c.bf16 %v5277_v61, %v5277_v61  ;;  %v6439_v61 = vld [vmem:[#allocation49_spill] sm:$0xff] }
 0x69f   :  { %2245 = vst [vmem:[#allocation1 + $0x1] ss:$9 sm:$0xff] %v6418_v43 }
 0x6a0   :  { %2246 = vst [vmem:[#allocation1 + $0x2] ss:$9 sm:$0xff] %v6419_v54  ;;  %v1693_v43 = vpack.c.b16 %v1691_v13, %v1690_v55  ;;  %v2503_v13 = vunpack.c.l.b16 %v2376_v48  ;;  %v6436_v55 = vld [vmem:[#allocation46_spill] sm:$0xff] }
 0x6a1   :  { %2247 = vst [vmem:[#allocation1 + $0x3] ss:$9 sm:$0xff] %v6420_v63  ;;  %v2373_v63 = vpack.c.bf16 %v5228_v45, %v5228_v45  ;;  %v6431_v45 = vld [vmem:[#allocation117_spill] sm:$0xff] }
 0x6a2   :  { %2248 = vst [vmem:[#allocation1 + $0x4] ss:$9 sm:$0xff] %v6421_v17  ;;  %3683 = vmatmul.msk.bf16.vlgmr.msrb.gmra.mxu1 %vm1506_vm9, %v1693_v43  ;;  %v1261_v27 = vpack.c.bf16 %v6431_v45, %v6431_v45  ;;  %v2505_v43 = vpack.c.b16 %v2503_v13, %v2503_v13 }
 0x6a3   :  { %2249 = vst [vmem:[#allocation1 + $0x5] ss:$9 sm:$0xff] %v6422_v53  ;;  %v2455_v17 = vunpack.c.l.b16 %v2373_v63  ;;  %v6429_v53 = vld [vmem:[#allocation98_spill] sm:$0xff] }
 0x6a4   :  { %2250 = vst [vmem:[#allocation1 + $0x6] ss:$9 sm:$0xff] %v6424_v36  ;;  %v6432_v36 = vld [vmem:[#allocation97_spill] sm:$0xff]  ;;  %v6440_v63 = vld [vmem:[#allocation126_spill] sm:$0xff] }
 0x6a5   :  { %2251 = vst [vmem:[#allocation1 + $0x7] ss:$9 sm:$0xff] %v6425_v62  ;;  %v2457_v16 = vpack.c.b16 %v2455_v17, %v2455_v17  ;;  %v2375_v62 = vpack.c.bf16 %v5269_v19, %v5269_v19  ;;  %v6434_v19 = vld [vmem:[#allocation51_spill] sm:$0xff]  ;;  %v1764_v17 = vsel %vm1506_vm9, %v1754_v6, 0 }
 0x6a7   :  { %2460 = vrot.lane.b32.xlu1 %v2457_v16, %s4013_s27  ;;  %v2502_v3 = vunpack.c.l.b16 %v2375_v62 }
 0x6ac   :  { %v2252_v54 = vld [vmem:[#allocation1] sm:$0xff] }
 0x6ad   :  { %2253 = vst [vmem:[#allocation1] ss:$9 sm:$0xff] %v6321_v46  ;;  %v1644_v46 = vpack.c.b16 %v1642_v28, %v1642_v28  ;;  %v6441_v28 = vld [vmem:[#allocation122_spill] sm:$0xff]  ;;  %v2377_v45 = vpack.c.bf16 %v2252_v54, %v2252_v54  ;;  %v6446_v54 = vld [vmem:[#allocation71_spill] sm:$0xff] }
 0x6ae   :  { %2254 = vst [vmem:[#allocation1 + $0x1] ss:$9 sm:$0xff] %v6428_v39  ;;  %v1263_v39 = vpack.c.bf16 %v6440_v63, %v6440_v63  ;;  %v6451_v63 = vld [vmem:[#allocation132_spill] sm:$0xff] }
 0x6af   :  { %2255 = vst [vmem:[#allocation1 + $0x2] ss:$9 sm:$0xff] %v6323_v40  ;;  %3682 = vmatmul.msk.bf16.gmra.mxu3 %vm1506_vm9, %v1644_v46  ;;  %v1692_v40 = vunpack.c.l.b16 %v1261_v27  ;;  %v1756_v59 = vpop.permute.xlu0 %1755  ;;  %2508 = vrot.lane.b32.xlu1 %v2505_v43, %s4013_s27 }
 0x6b0   :  { %2256 = vst [vmem:[#allocation1 + $0x3] ss:$9 sm:$0xff] %v6429_v53  ;;  %v1262_v53 = vpack.c.bf16 %v6441_v28, %v6441_v28  ;;  %v1741_v16 = vunpack.c.l.b16 %v1263_v39  ;;  %v1265_v39 = vpack.c.bf16 %v6451_v63, %v6451_v63 }
 0x6b1   :  { %2257 = vst [vmem:[#allocation1 + $0x4] ss:$9 sm:$0xff] %v6325_v23  ;;  %v1694_v23 = vpack.c.b16 %v1692_v40, %v1692_v40 }
 0x6b2   :  { %2258 = vst [vmem:[#allocation1 + $0x5] ss:$9 sm:$0xff] %v6430_v8  ;;  %v1740_v8 = vunpack.c.l.b16 %v1262_v53 }
 0x6b3   :  { %2259 = vst [vmem:[#allocation1 + $0x6] ss:$9 sm:$0xff] %v6327_v47  ;;  %3684 = vmatmul.msk.bf16.gmra.mxu1 %vm1506_vm9, %v1694_v23  ;;  %v2501_v47 = vunpack.c.l.b16 %v2374_v0  ;;  %v6443_v0 = vld [vmem:[#allocation68_spill] sm:$0xff]  ;;  %v2549_v23 = vunpack.c.l.b16 %v2377_v45  ;;  %v6452_v45 = vld [vmem:[#allocation85_spill] sm:$0xff] }
 0x6b4   :  { %2260 = vst [vmem:[#allocation1 + $0x7] ss:$9 sm:$0xff] %v6432_v36  ;;  %v1743_v27 = vpack.c.b16 %v1741_v16, %v1740_v8  ;;  %v6442_v36 = vld [vmem:[#allocation67_spill] sm:$0xff]  ;;  %v1790_v8 = vunpack.c.l.b16 %v1265_v39 }
 0x6b5   :  { %v2504_v33 = vpack.c.b16 %v2502_v3, %v2501_v47  ;;  %v6444_v47 = vld [vmem:[#allocation70_spill] sm:$0xff]  ;;  %v6445_v3 = vld [vmem:[#allocation63_spill] sm:$0xff] }
 0x6b7   :  { %2506 = vrot.lane.b32.xlu0 %v2504_v33, %s4013_s27 }
 0x6bb   :  { %v2261_v30 = vld [vmem:[#allocation1] sm:$0xff] }
 0x6bc   :  { %2262 = vst [vmem:[#allocation1] ss:$9 sm:$0xff] %v6329_v25  ;;  %v1767_v25 = vsel %vm1506_vm9, %v1756_v59, 0  ;;  %v2378_v40 = vpack.c.bf16 %v2261_v30, %v2261_v30  ;;  %v6448_v30 = vld [vmem:[#allocation129_spill] sm:$0xff] }
 0x6bd   :  { %1775 = vmatpush.bf16.xpose.msrb.mxu0 %v1767_v25 }
 0x6be   :  { %v2550_v62 = vunpack.c.l.b16 %v2378_v40  ;;  %v6453_v40 = vld [vmem:[#allocation141_spill] sm:$0xff] }
 0x6c0   :  { %v2552_v33 = vpack.c.b16 %v2550_v62, %v2549_v23  ;;  %v6454_v62 = vld [vmem:[#allocation83_spill] sm:$0xff] }
 0x6c1   :  { %v1856_v48 = vpop.permute.xlu2 %1855 }
 0x6c2   :  { %2554 = vrot.lane.b32.xlu2 %v2552_v33, %s4013_s27  ;;  %v1867_v25 = vsel %vm1506_vm9, %v1856_v48, 0  ;;  %v6456_v33 = vld [vmem:[#allocation88_spill] sm:$0xff]  ;;  %v4014_v48 = vmov 0  }
 0x6c3   :  { %v5326_v18 = vld [vmem:[#allocation1] sm:$0xff]  ;;  %1875 = vmatpush.bf16.xpose.msrb.mxu3 %v1867_v25 }
 0x6c4   :  { %2264 = vst [vmem:[#allocation1] ss:$9 sm:$0xff] %v4476_v58  ;;  %v6438_v58 = vld [vmem:[#allocation59_spill] sm:$0xff] }
 0x6c5   :  { %2265 = vst [vmem:[#allocation1 + $0x1] ss:$9 sm:$0xff] %v6433_v41  ;;  %1776 = vmatpush.bf16.xpose.msrb.mxu0 %v1764_v17 }
 0x6c6   :  { %2266 = vst [vmem:[#allocation1 + $0x2] ss:$9 sm:$0xff] %v6434_v19 }
 0x6c7   :  { %2267 = vst [vmem:[#allocation1 + $0x3] ss:$9 sm:$0xff] %v6435_v2 }
 0x6c8   :  { %2268 = vst [vmem:[#allocation1 + $0x4] ss:$9 sm:$0xff] %v6436_v55  ;;  %v6449_v55 = vld [vmem:[#allocation66_spill] sm:$0xff] }
 0x6c9   :  { %2269 = vst [vmem:[#allocation1 + $0x5] ss:$9 sm:$0xff] %v6437_v15 }
 0x6ca   :  { %2270 = vst [vmem:[#allocation1 + $0x6] ss:$9 sm:$0xff] %v6438_v58  ;;  %v6450_v58 = vld [vmem:[#allocation135_spill] sm:$0xff] }
 0x6cb   :  { %2271 = vst [vmem:[#allocation1 + $0x7] ss:$9 sm:$0xff] %v6439_v61  ;;  %v1266_v6 = vpack.c.bf16 %v6450_v58, %v6450_v58 }
 0x6cc   :  { %3685 = vmatmul.msk.bf16.vlgmr.msrb.gmra.mxu0 %vm1506_vm9, %v1743_v27 }
 0x6cd   :  { %v1806_v59 = vpop.permute.xlu1 %1805  ;;  %v1804_v43 = vpop.permute.xlu0 %1803  ;;  %v1791_v17 = vunpack.c.l.b16 %v1266_v6  ;;  %v2379_v6 = vpack.c.bf16 %v5326_v18, %v5326_v18  ;;  %v6466_v18 = vld [vmem:[#allocation101_spill] sm:$0xff] }
 0x6ce   :  { %v1817_v41 = vsel %vm1506_vm9, %v1806_v59, 0  ;;  %v1814_v61 = vsel %vm1506_vm9, %v1804_v43, 0 }
 0x6cf   :  { %1825 = vmatpush.bf16.xpose.msra.mxu2 %v1817_v41  ;;  %v5395_v41 = vsel %vm39_vm2, 65535, %v4014_v48 }
 0x6d2   :  { %v5345_v46 = vld [vmem:[#allocation1] sm:$0xff] }
 0x6d3   :  { %2273 = vst [vmem:[#allocation1] ss:$9 sm:$0xff] %v4535_v10  ;;  %v6447_v10 = vld [vmem:[#allocation73_spill] sm:$0xff] }
 0x6d4   :  { %2274 = vst [vmem:[#allocation1 + $0x1] ss:$9 sm:$0xff] %v6442_v36  ;;  %v1793_v36 = vpack.c.b16 %v1791_v17, %v1790_v8  ;;  %v6461_v17 = vld [vmem:[#allocation90_spill] sm:$0xff]  ;;  %v2551_v8 = vunpack.c.l.b16 %v2379_v6 }
 0x6d5   :  { %2275 = vst [vmem:[#allocation1 + $0x2] ss:$9 sm:$0xff] %v4555_v12  ;;  %v1264_v12 = vpack.c.bf16 %v6448_v30, %v6448_v30  ;;  %v6458_v30 = vld [vmem:[#allocation86_spill] sm:$0xff] }
 0x6d6   :  { %2276 = vst [vmem:[#allocation1 + $0x3] ss:$9 sm:$0xff] %v6443_v0  ;;  %v5361_v13 = vpop.f32.mrf.mxu3  ;;  %v1269_v0 = vpack.c.bf16 %v6453_v40, %v6453_v40 }
 0x6d7   :  { %2277 = vst [vmem:[#allocation1 + $0x4] ss:$9 sm:$0xff] %v6444_v47  ;;  %v1742_v19 = vunpack.c.l.b16 %v1264_v12  ;;  %1826 = vmatpush.bf16.xpose.msra.mxu2 %v1814_v61  ;;  %v6459_v12 = vld [vmem:[#allocation91_spill] sm:$0xff] }
 0x6d8   :  { %2278 = vst [vmem:[#allocation1 + $0x5] ss:$9 sm:$0xff] %v6445_v3 }
 0x6d9   :  { %2279 = vst [vmem:[#allocation1 + $0x6] ss:$9 sm:$0xff] %v6446_v54  ;;  %v1744_v15 = vpack.c.b16 %v1742_v19, %v1742_v19  ;;  %v6457_v54 = vld [vmem:[#allocation81_spill] sm:$0xff] }
 0x6da   :  { %2280 = vst [vmem:[#allocation1 + $0x7] ss:$9 sm:$0xff] %v6447_v10  ;;  %v5372_v28 = vpop.f32.mrf.mxu2  ;;  %v1841_v10 = vunpack.c.l.b16 %v1269_v0  ;;  %v6465_v0 = vld [vmem:[#allocation94_spill] sm:$0xff] }
 0x6db   :  { %v1888_v27 = vsel %vm1887_vm10, %v5372_v28, -inf  ;;  %v1854_v23 = vpop.permute.xlu1 %1853 }
 0x6dc   :  { %3686 = vmatmul.msk.bf16.gmra.mxu0 %vm1506_vm9, %v1744_v15  ;;  %v1864_v47 = vsel %vm1506_vm9, %v1854_v23, 0  ;;  %v2553_v23 = vpack.c.b16 %v2551_v8, %v2551_v8 }
 0x6dd   :  { %1876 = vmatpush.bf16.xpose.msrb.mxu3 %v1864_v47  ;;  %v6467_v47 = vld [vmem:[#allocation103_spill] sm:$0xff] }
 0x6de   :  { %v1535_v53 = vpop.f32.mrf.mxu3  ;;  %3687 = vmatmul.msk.bf16.vlgmr.msra.gmra.mxu2 %vm1506_vm9, %v1793_v36  ;;  %v6464_v36 = vld [vmem:[#allocation142_spill] sm:$0xff] }
 0x6df   :  { %v6462_v53 = vld [vmem:[#allocation99_spill] sm:$0xff]  ;;  %v1270_v40 = vpack.c.bf16 %v6464_v36, %v6464_v36 }
 0x6e1   :  { %v5363_v2 = vld [vmem:[#allocation1] sm:$0xff]  ;;  %1889 = vmax.xlane.f32.xlu0 %v1888_v27 }
 0x6e2   :  { %2282 = vst [vmem:[#allocation1] ss:$9 sm:$0xff] %v6449_v55  ;;  %v6460_v55 = vld [vmem:[#allocation137_spill] sm:$0xff] }
 0x6e3   :  { %v1267_v43 = vpack.c.bf16 %v6460_v55, %v6460_v55  ;;  %v6470_v55 = vld [vmem:[#allocation118_spill] sm:$0xff] }
 0x6e5   :  { %v1792_v61 = vunpack.c.l.b16 %v1267_v43 }
 0x6e6   :  { %v2411_v15 = vpop.permute.xlu2 %2410 }
 0x6e7   :  { %v2422_v58 = vand.u32 %v5395_v41, %v2411_v15  ;;  %v1794_v27 = vpack.c.b16 %v1792_v61, %v1792_v61  ;;  %v6471_v15 = vld [vmem:[#allocation123_spill] sm:$0xff] }
 0x6e8   :  { %v6475_v61 = vld [vmem:[#allocation119_spill] sm:$0xff] }
 0x6e9   :  { %v5374_v16 = vld [vmem:[#allocation1] sm:$0xff]  ;;  %2430 = vmatpush.bf16.msra.mxu1 %v2422_v58 }
 0x6ea   :  { %2284 = vst [vmem:[#allocation1] ss:$9 sm:$0xff] %v4644_v56  ;;  %v6455_v56 = vld [vmem:[#allocation140_spill] sm:$0xff]  ;;  %v6474_v58 = vld [vmem:[#allocation127_spill] sm:$0xff] }
 0x6eb   :  { %2285 = vst [vmem:[#allocation1 + $0x1] ss:$9 sm:$0xff] %v6452_v45  ;;  %v1268_v3 = vpack.c.bf16 %v6455_v56, %v6455_v56  ;;  %v6463_v45 = vld [vmem:[#allocation102_spill] sm:$0xff] }
 0x6ec   :  { %2286 = vst [vmem:[#allocation1 + $0x2] ss:$9 sm:$0xff] %v4636_v31  ;;  %v5391_v31 = vpop.f32.mrf.mxu3 }
 0x6ed   :  { %2287 = vst [vmem:[#allocation1 + $0x3] ss:$9 sm:$0xff] %v6454_v62  ;;  %v1840_v59 = vunpack.c.l.b16 %v1268_v3  ;;  %v1898_v25 = vsel %vm1887_vm10, %v5391_v31, -inf  ;;  %v1842_v62 = vunpack.c.l.b16 %v1270_v40 }
 0x6ee   :  { %2288 = vst [vmem:[#allocation1 + $0x4] ss:$9 sm:$0xff] %v6456_v33  ;;  %1899 = vmax.xlane.f32.xlu1 %v1898_v25  ;;  %3688 = vmatmul.msk.bf16.gmra.mxu2 %vm1506_vm9, %v1794_v27  ;;  %v1895_v33 = vsel %vm1894_vm11, %v5361_v13, -inf  ;;  %v6468_v25 = vld [vmem:[#allocation107_spill] sm:$0xff] }
 0x6ef   :  { %2289 = vst [vmem:[#allocation1 + $0x5] ss:$9 sm:$0xff] %v6457_v54  ;;  %v1843_v19 = vpack.c.b16 %v1841_v10, %v1840_v59  ;;  %1896 = vmax.xlane.f32.xlu2 %v1895_v33  ;;  %v5430_v10 = vpop.f32.mrf.mxu2 }
 0x6f0   :  { %2290 = vst [vmem:[#allocation1 + $0x6] ss:$9 sm:$0xff] %v6458_v30 }
 0x6f1   :  { %2291 = vst [vmem:[#allocation1 + $0x7] ss:$9 sm:$0xff] %v6459_v12  ;;  %3689 = vmatmul.msk.bf16.vlgmr.msrb.gmra.mxu3 %vm1506_vm9, %v1843_v19  ;;  %v1891_v12 = vsel %vm1887_vm10, %v5430_v10, -inf  ;;  %v6469_v19 = vld [vmem:[#allocation116_spill] sm:$0xff] }
 0x6f4   :  { %v5407_v39 = vpop.f32.mrf.mxu3 }
 0x6f5   :  { %2556 = vrot.lane.b32.xlu0 %v2553_v23, %s4013_s27  ;;  %v2409_v54 = vpop.permute.xlu1 %2408 }
 0x6f6   :  { %2431 = vmatpush.bf16.msra.mxu1 %v2409_v54 }
 0x6f7   :  { %1892 = vmax.xlane.f32.xlu2 %v1891_v12 }
 0x6f8   :  { %v5405_v63 = vld [vmem:[#allocation1] sm:$0xff] }
 0x6f9   :  { %2293 = vst [vmem:[#allocation1] ss:$9 sm:$0xff] %v6461_v17 }
 0x6fa   :  { %2294 = vst [vmem:[#allocation1 + $0x1] ss:$9 sm:$0xff] %v6462_v53 }
 0x6fb   :  { %2295 = vst [vmem:[#allocation1 + $0x2] ss:$9 sm:$0xff] %v6463_v45  ;;  %v1901_v45 = vsel %vm1887_vm10, %v5407_v39, -inf }
 0x6fc   :  { %2296 = vst [vmem:[#allocation1 + $0x3] ss:$9 sm:$0xff] %v6465_v0  ;;  %v5420_v56 = vpop.f32.mrf.mxu3 }
 0x6fd   :  { %2297 = vst [vmem:[#allocation1 + $0x4] ss:$9 sm:$0xff] %v6466_v18  ;;  %v1904_v3 = vsel %vm1894_vm11, %v5420_v56, -inf }
 0x6fe   :  { %2298 = vst [vmem:[#allocation1 + $0x5] ss:$9 sm:$0xff] %v4753_v1  ;;  %1905 = vmax.xlane.f32.xlu1 %v1904_v3  ;;  %v1844_v1 = vpack.c.b16 %v1842_v62, %v1842_v62 }
 0x6ff   :  { %2299 = vst [vmem:[#allocation1 + $0x6] ss:$9 sm:$0xff] %v6345_v4 }
 0x700   :  { %2300 = vst [vmem:[#allocation1 + $0x7] ss:$9 sm:$0xff] %v6467_v47 }
 0x701   :  { %3690 = vmatmul.msk.bf16.gmra.mxu3 %vm1506_vm9, %v1844_v1  ;;  %v6478_v1 = vld [vmem:[#allocation134_spill] sm:$0xff] }
 0x702   :  { %v5438_v48 = vpop.f32.mrf.mxu2 }
 0x703   :  { %v1907_v18 = vsel %vm1887_vm10, %v5438_v48, -inf }
 0x704   :  { %v1585_v30 = vpop.f32.mrf.mxu3  ;;  %v2459_v27 = vpop.permute.xlu0 %2458 }
 0x707   :  { %v5428_v4 = vld [vmem:[#allocation1] sm:$0xff] }
 0x708   :  { %2302 = vst [vmem:[#allocation1] ss:$9 sm:$0xff] %v6347_v49 }
 0x70a   :  { %v5447_v49 = vpop.f32.mrf.mxu2 }
 0x70f   :  { %v5435_v59 = vld [vmem:[#allocation1] sm:$0xff] }
 0x710   :  { %2304 = vst [vmem:[#allocation1] ss:$9 sm:$0xff] %v6348_v32  ;;  %v1910_v32 = vsel %vm1887_vm10, %v5447_v49, -inf }
 0x711   :  { %2305 = vst [vmem:[#allocation1 + $0x1] ss:$9 sm:$0xff] %v6349_v29  ;;  %1911 = vmax.xlane.f32.xlu2 %v1910_v32 }
 0x712   :  { %2306 = vst [vmem:[#allocation1 + $0x2] ss:$9 sm:$0xff] %v6468_v25  ;;  %v5455_v29 = vpop.f32.mrf.mxu2 }
 0x713   :  { %2307 = vst [vmem:[#allocation1 + $0x3] ss:$9 sm:$0xff] %v6469_v19 }
 0x714   :  { %2308 = vst [vmem:[#allocation1 + $0x4] ss:$9 sm:$0xff] %v6470_v55 }
 0x715   :  { %2309 = vst [vmem:[#allocation1 + $0x5] ss:$9 sm:$0xff] %v6350_v51  ;;  %v1913_v51 = vsel %vm1894_vm11, %v5455_v29, -inf }
 0x716   :  { %2310 = vst [vmem:[#allocation1 + $0x6] ss:$9 sm:$0xff] %v6351_v14  ;;  %v6473_v14 = vld [vmem:[#allocation125_spill] sm:$0xff] }
 0x717   :  { %2311 = vst [vmem:[#allocation1 + $0x7] ss:$9 sm:$0xff] %v4810_v57  ;;  %v6472_v57 = vld [vmem:[#allocation115_spill] sm:$0xff]  ;;  %v5466_v53 = vpop.f32.mrf.mxu3 }
 0x718   :  { %v1916_v8 = vsel %vm1887_vm10, %v5466_v53, -inf }
 0x719   :  { %1914 = vmax.xlane.f32.xlu2 %v1913_v51  ;;  %v2461_v6 = vpop.permute.xlu1 %2460  ;;  %1917 = vmax.xlane.f32.xlu1 %v1916_v8 }
 0x71a   :  { %v1635_v17 = vpop.f32.mrf.mxu2 }
 0x71e   :  { %v5451_v43 = vld [vmem:[#allocation1] sm:$0xff] }
 0x71f   :  { %2313 = vst [vmem:[#allocation1] ss:$9 sm:$0xff] %v6352_v9  ;;  %v2470_v9 = vand.u32 %v2461_v6, %v5395_v41  ;;  %v5472_v36 = vpop.f32.mrf.mxu1  ;;  %1902 = vmax.xlane.f32.xlu0 %v1901_v45  ;;  %v5477_v0 = vpop.f32.mrf.mxu3 }
 0x720   :  { %2314 = vst [vmem:[#allocation1 + $0x1] ss:$9 sm:$0xff] %v4821_v24  ;;  %v6476_v24 = vld [vmem:[#allocation128_spill] sm:$0xff]  ;;  %v1919_v3 = vsel %vm1887_vm10, %v5477_v0, -inf  ;;  %v1925_v25 = vsel %vm1887_vm10, %v5472_v36, -inf }
 0x721   :  { %2315 = vst [vmem:[#allocation1 + $0x2] ss:$9 sm:$0xff] %v6471_v15  ;;  %2478 = vmatpush.bf16.msra.mxu0 %v2470_v9 }
 0x722   :  { %2316 = vst [vmem:[#allocation1 + $0x3] ss:$9 sm:$0xff] %v6472_v57  ;;  %v2385_v57 = vpack.c.bf16 %v5435_v59, %v5435_v59  ;;  %v2382_v59 = vpack.c.bf16 %v5374_v16, %v5374_v16 }
 0x723   :  { %2317 = vst [vmem:[#allocation1 + $0x4] ss:$9 sm:$0xff] %v6473_v14 }
 0x724   :  { %2318 = vst [vmem:[#allocation1 + $0x5] ss:$9 sm:$0xff] %v6474_v58  ;;  %v2555_v58 = vpop.permute.xlu2 %2554  ;;  %v2647_v6 = vunpack.c.l.b16 %v2385_v57 }
 0x725   :  { %2319 = vst [vmem:[#allocation1 + $0x6] ss:$9 sm:$0xff] %v6475_v61  ;;  %2479 = vmatpush.bf16.msra.mxu0 %v2459_v27 }
 0x726   :  { %2320 = vst [vmem:[#allocation1 + $0x7] ss:$9 sm:$0xff] %v6476_v24 }
 0x727   :  { %v5481_v23 = vpop.f32.mrf.mxu1  ;;  %1908 = vmax.xlane.f32.xlu0 %v1907_v18 }
 0x728   :  { %v1928_v62 = vsel %vm1887_vm10, %v5481_v23, -inf }
 0x729   :  { %1929 = vmax.xlane.f32.xlu1 %v1928_v62  ;;  %v2507_v30 = vpop.permute.xlu0 %2506  ;;  %v2599_v62 = vunpack.c.l.b16 %v2382_v59 }
 0x72d   :  { %v5474_v40 = vld [vmem:[#allocation1] sm:$0xff] }
 0x72e   :  { %2322 = vst [vmem:[#allocation1] ss:$9 sm:$0xff] %v6357_v21 }
 0x72f   :  { %1920 = vmax.xlane.f32.xlu0 %v1919_v3 }
 0x730   :  { %v5496_v33 = vpop.f32.mrf.mxu1 }
 0x732   :  { %v5490_v21 = vpop.f32.mrf.mxu3 }
 0x735   :  { %v5485_v47 = vld [vmem:[#allocation1] sm:$0xff] }
 0x736   :  { %2324 = vst [vmem:[#allocation1] ss:$9 sm:$0xff] %v6358_v35  ;;  %v1931_v35 = vsel %vm1894_vm11, %v5496_v33, -inf }
 0x737   :  { %2325 = vst [vmem:[#allocation1 + $0x1] ss:$9 sm:$0xff] %v6359_v38  ;;  %v6477_v38 = vld [vmem:[#allocation133_spill] sm:$0xff]  ;;  %1932 = vmax.xlane.f32.xlu2 %v1931_v35 }
 0x738   :  { %2326 = vst [vmem:[#allocation1 + $0x2] ss:$9 sm:$0xff] %v4859_v52  ;;  %v2509_v52 = vpop.permute.xlu1 %2508  ;;  %v1735_v12 = vpop.f32.mrf.mxu1 }
 0x739   :  { %2327 = vst [vmem:[#allocation1 + $0x3] ss:$9 sm:$0xff] %v4854_v37  ;;  %v2518_v37 = vand.u32 %v2509_v52, %v5395_v41  ;;  %v2601_v52 = vpack.c.b16 %v2599_v62, %v2599_v62 }
 0x73a   :  { %2328 = vst [vmem:[#allocation1 + $0x4] ss:$9 sm:$0xff] %v4866_v34  ;;  %v1685_v54 = vpop.f32.mrf.mxu3  ;;  %v1922_v34 = vsel %vm1894_vm11, %v5490_v21, -inf }
 0x73b   :  { %2329 = vst [vmem:[#allocation1 + $0x5] ss:$9 sm:$0xff] %v4871_v11  ;;  %2526 = vmatpush.bf16.msrb.mxu2 %v2518_v37  ;;  %1923 = vmax.xlane.f32.xlu0 %v1922_v34 }
 0x73c   :  { %2330 = vst [vmem:[#allocation1 + $0x6] ss:$9 sm:$0xff] %v6477_v38 }
 0x73d   :  { %2331 = vst [vmem:[#allocation1 + $0x7] ss:$9 sm:$0xff] %v6478_v1 }
 0x73f   :  { %2527 = vmatpush.bf16.msrb.mxu2 %v2507_v30 }
 0x743   :  { %1926 = vmax.xlane.f32.xlu0 %v1925_v25 }
 0x744   :  { %v5506_v11 = vld [vmem:[#allocation1] sm:$0xff] }
 0x745   :  { %2333 = vst [vmem:[#allocation1] ss:$9 sm:$0xff] %v4880_v42 }
 0x746   :  { %2334 = vst [vmem:[#allocation1 + $0x1] ss:$9 sm:$0xff] %v6362_v26 }
 0x747   :  { %2335 = vst [vmem:[#allocation1 + $0x2] ss:$9 sm:$0xff] %v6363_v44 }
 0x748   :  { %2336 = vst [vmem:[#allocation1 + $0x3] ss:$9 sm:$0xff] %v4896_v22  ;;  %v2380_v22 = vpack.c.bf16 %v5345_v46, %v5345_v46 }
 0x749   :  { %2337 = vst [vmem:[#allocation1 + $0x4] ss:$9 sm:$0xff] %v4894_v20  ;;  %v5518_v19 = vpop.f32.mrf.mxu0  ;;  %v2381_v20 = vpack.c.bf16 %v5363_v2, %v5363_v2 }
 0x74a   :  { %2338 = vst [vmem:[#allocation1 + $0x5] ss:$9 sm:$0xff] %v6364_v50  ;;  %v1934_v26 = vsel %vm1887_vm10, %v5518_v19, -inf }
 0x74b   :  { %2339 = vst [vmem:[#allocation1 + $0x6] ss:$9 sm:$0xff] %v4908_v7  ;;  %1935 = vmax.xlane.f32.xlu2 %v1934_v26  ;;  %v2598_v50 = vunpack.c.l.b16 %v2381_v20 }
 0x74c   :  { %2340 = vst [vmem:[#allocation1 + $0x7] ss:$9 sm:$0xff] %v4905_v60  ;;  %v2597_v60 = vunpack.c.l.b16 %v2380_v22 }
 0x74e   :  { %v2600_v55 = vpack.c.b16 %v2598_v50, %v2597_v60 }
 0x751   :  { %v5529_v7 = vpop.f32.mrf.mxu0 }
 0x752   :  { %v1937_v44 = vsel %vm1887_vm10, %v5529_v7, -inf }
 0x753   :  { %v5520_v42 = vld [vmem:[#allocation1] sm:$0xff]  ;;  %1938 = vmax.xlane.f32.xlu2 %v1937_v44 }
 0x754   :  { %2342 = vst [vmem:[#allocation1] ss:$9 sm:$0xff] %v4914_v5  ;;  %v1890_v32 = vpop.xlane.xlu0 %1889 }
 0x755   :  { %v1961_v5 = vsub.f32 %v5372_v28, %v1890_v32  ;;  %v2649_v28 = vpack.c.b16 %v2647_v6, %v2647_v6 }
 0x757   :  { %2602 = vrot.lane.b32.xlu0 %v2600_v55, %s4013_s27  ;;  %v1985_v15 = vmul.f32 1.442695, %v1961_v5 }
 0x759   :  { %v5535_v51 = vpop.f32.mrf.mxu0  ;;  %3854 = vpow2.f32 %v1985_v15 }
 0x75a   :  { %v1940_v15 = vsel %vm1894_vm11, %v5535_v51, -inf }
 0x75f   :  { %v5537_v2 = vpop.eup %3854 }
 0x760   :  { %v2033_v14 = vsel %vm1887_vm10, %v5537_v2, 0.0 }
 0x761   :  { %v1785_v46 = vpop.f32.mrf.mxu0  ;;  %2034 = vadd.xlane.f32.xlu1 %v2033_v14  ;;  %v5543_v61 = vpop.f32.mrf.mxu2 }
 0x762   :  { %v1897_v17 = vpop.xlane.xlu2 %1896  ;;  %v1900_v1 = vpop.xlane.xlu1 %1899  ;;  %v1943_v20 = vsel %vm1887_vm10, %v5543_v61, -inf }
 0x763   :  { %v1964_v16 = vsub.f32 %v5391_v31, %v1900_v1  ;;  %v1963_v30 = vsub.f32 %v5361_v13, %v1897_v17 }
 0x765   :  { %v1991_v12 = vmul.f32 1.442695, %v1964_v16  ;;  %v1989_v25 = vmul.f32 1.442695, %v1963_v30 }
 0x767   :  { %v2557_v9 = vpop.permute.xlu0 %2556 }
 0x768   :  { %v2566_v24 = vand.u32 %v2557_v9, %v5395_v41 }
 0x769   :  { %v5547_v8 = vpop.f32.mrf.mxu2 }
 0x76a   :  { %2574 = vmatpush.bf16.msra.mxu3 %v2566_v24  ;;  %v1893_v27 = vpop.xlane.xlu2 %1892 }
 0x76b   :  { %2652 = vrot.lane.b32.xlu2 %v2649_v28, %s4013_s27  ;;  %v1962_v18 = vsub.f32 %v5430_v10, %v1893_v27 }
 0x76d   :  { %v1987_v38 = vmul.f32 1.442695, %v1962_v18 }
 0x76e   :  { %2575 = vmatpush.bf16.msra.mxu3 %v2555_v58 }
 0x76f   :  { %3856 = vpow2.f32 %v1987_v38 }
 0x770   :  { %3858 = vpow2.f32 %v1991_v12 }
 0x771   :  { %v5554_v3 = vpop.f32.mrf.mxu2  ;;  %3860 = vpow2.f32 %v1989_v25  ;;  %v1906_v44 = vpop.xlane.xlu1 %1905 }
 0x772   :  { %v1966_v5 = vsub.f32 %v5420_v56, %v1906_v44 }
 0x774   :  { %v5549_v45 = vpop.f32.mrf.mxu3  ;;  %v1995_v46 = vmul.f32 1.442695, %v1966_v5 }
 0x775   :  { %v5561_v34 = vpop.eup %3856  ;;  %v1952_v17 = vsel %vm1887_vm10, %v5549_v45, -inf }
 0x776   :  { %v2036_v10 = vsel %vm1887_vm10, %v5561_v34, 0.0  ;;  %v5569_v22 = vpop.eup %3858 }
 0x777   :  { %v5571_v50 = vpop.eup %3860  ;;  %v2042_v31 = vsel %vm1887_vm10, %v5569_v22, 0.0 }
 0x778   :  { %v2039_v13 = vsel %vm1894_vm11, %v5571_v50, 0.0 }
 0x779   :  { %v1835_v37 = vpop.f32.mrf.mxu2 }
 0x77a   :  { %2604 = vrot.lane.b32.xlu1 %v2601_v52, %s4013_s27 }
 0x77c   :  { %v5556_v35 = vpop.f32.mrf.mxu3 }
 0x77d   :  { %v1955_v1 = vsel %vm1887_vm10, %v5556_v35, -inf }
 0x781   :  { %2037 = vadd.xlane.f32.xlu0 %v2036_v10 }
 0x784   :  { %v5559_v54 = vpop.f32.mrf.mxu3  ;;  %v1912_v56 = vpop.xlane.xlu2 %1911 }
 0x785   :  { %v1968_v62 = vsub.f32 %v5447_v49, %v1912_v56 }
 0x787   :  { %v1999_v37 = vmul.f32 1.442695, %v1968_v62 }
 0x789   :  { %1944 = vmax.xlane.f32.xlu0 %v1943_v20 }
 0x78c   :  { %v1885_v26 = vpop.f32.mrf.mxu3  ;;  %v1918_v58 = vpop.xlane.xlu1 %1917 }
 0x78d   :  { %v1970_v28 = vsub.f32 %v5466_v53, %v1918_v58  ;;  %v1949_v53 = vsel %vm1894_vm11, %v5554_v3, -inf  ;;  %v1915_v16 = vpop.xlane.xlu2 %1914 }
 0x78e   :  { %v1969_v12 = vsub.f32 %v5455_v29, %v1915_v16 }
 0x78f   :  { %v2003_v18 = vmul.f32 1.442695, %v1970_v28 }
 0x791   :  { %2043 = vadd.xlane.f32.xlu0 %v2042_v31 }
 0x792   :  { %v1903_v60 = vpop.xlane.xlu0 %1902 }
 0x793   :  { %v1965_v55 = vsub.f32 %v5407_v39, %v1903_v60  ;;  %v1946_v39 = vsel %vm1887_vm10, %v5547_v8, -inf }
 0x794   :  { %2040 = vadd.xlane.f32.xlu2 %v2039_v13  ;;  %v2001_v13 = vmul.f32 1.442695, %v1969_v12 }
 0x795   :  { %v1993_v32 = vmul.f32 1.442695, %v1965_v55 }
 0x797   :  { %3862 = vpow2.f32 %v1993_v32 }
 0x798   :  { %3864 = vpow2.f32 %v1995_v46 }
 0x79a   :  { %v1909_v57 = vpop.xlane.xlu0 %1908 }
 0x79b   :  { %v1967_v9 = vsub.f32 %v5438_v48, %v1909_v57 }
 0x79c   :  { %1941 = vmax.xlane.f32.xlu2 %v1940_v15 }
 0x79d   :  { %v5581_v14 = vpop.eup %3862  ;;  %v1997_v27 = vmul.f32 1.442695, %v1967_v9 }
 0x79e   :  { %v2045_v6 = vsel %vm1887_vm10, %v5581_v14, 0.0  ;;  %v5591_v59 = vpop.eup %3864 }
 0x79f   :  { %2046 = vadd.xlane.f32.xlu0 %v2045_v6  ;;  %v2048_v48 = vsel %vm1894_vm11, %v5591_v59, 0.0  ;;  %3866 = vpow2.f32 %v1997_v27 }
 0x7a0   :  { %3868 = vpow2.f32 %v2003_v18 }
 0x7a1   :  { %3870 = vpow2.f32 %v1999_v37 }
 0x7a2   :  { %v1921_v24 = vpop.xlane.xlu0 %1920 }
 0x7a3   :  { %v1971_v5 = vsub.f32 %v5477_v0, %v1921_v24 }
 0x7a4   :  { %1947 = vmax.xlane.f32.xlu2 %v1946_v39  ;;  %1953 = vmax.xlane.f32.xlu1 %v1952_v17 }
 0x7a5   :  { %v5601_v10 = vpop.eup %3866  ;;  %v2005_v46 = vmul.f32 1.442695, %v1971_v5 }
 0x7a6   :  { %v5603_v49 = vpop.eup %3868  ;;  %v2051_v25 = vsel %vm1887_vm10, %v5601_v10, 0.0 }
 0x7a7   :  { %2049 = vadd.xlane.f32.xlu0 %v2048_v48  ;;  %v2060_v31 = vsel %vm1887_vm10, %v5603_v49, 0.0  ;;  %v5615_v44 = vpop.eup %3870 }
 0x7aa   :  { %v5613_v60 = vpop.xlane.xlu2 %1932 }
 0x7ab   :  { %v1975_v5 = vsub.f32 %v5496_v33, %v5613_v60 }
 0x7ac   :  { %1950 = vmax.xlane.f32.xlu2 %v1949_v53  ;;  %1956 = vmax.xlane.f32.xlu1 %v1955_v1  ;;  %v1930_v53 = vpop.xlane.xlu1 %1929  ;;  %v2383_v1 = vpack.c.bf16 %v5405_v63, %v5405_v63 }
 0x7ae   :  { %v1924_v38 = vpop.xlane.xlu0 %1923 }
 0x7af   :  { %v1972_v52 = vsub.f32 %v5490_v21, %v1924_v38  ;;  %v2388_v21 = vpack.c.bf16 %v5485_v47, %v5485_v47  ;;  %v2054_v47 = vsel %vm1887_vm10, %v5615_v44, 0.0 }
 0x7b1   :  { %v2007_v30 = vmul.f32 1.442695, %v1972_v52  ;;  %v2695_v55 = vunpack.c.l.b16 %v2388_v21  ;;  %v2384_v52 = vpack.c.bf16 %v5428_v4, %v5428_v4 }
 0x7b3   :  { %3872 = vpow2.f32 %v2007_v30  ;;  %v2646_v16 = vunpack.c.l.b16 %v2384_v52  ;;  %v2645_v30 = vunpack.c.l.b16 %v2383_v1 }
 0x7b4   :  { %2052 = vadd.xlane.f32.xlu2 %v2051_v25  ;;  %2061 = vadd.xlane.f32.xlu1 %v2060_v31  ;;  %3874 = vpow2.f32 %v2001_v13 }
 0x7b5   :  { %v2648_v25 = vpack.c.b16 %v2646_v16, %v2645_v30 }
 0x7b6   :  { %v1927_v26 = vpop.xlane.xlu0 %1926 }
 0x7b7   :  { %v1973_v20 = vsub.f32 %v5472_v36, %v1927_v26  ;;  %v2697_v36 = vpack.c.b16 %v2695_v55, %v2695_v55 }
 0x7b9   :  { %v2009_v29 = vmul.f32 1.442695, %v1973_v20  ;;  %v5617_v32 = vpop.eup %3872 }
 0x7ba   :  { %v2066_v15 = vsel %vm1894_vm11, %v5617_v32, 0.0  ;;  %v5625_v58 = vpop.eup %3874 }
 0x7bb   :  { %3876 = vpow2.f32 %v2009_v29  ;;  %2700 = vrot.lane.b32.xlu0 %v2697_v36, %s4013_s27  ;;  %v2057_v0 = vsel %vm1894_vm11, %v5625_v58, 0.0 }
 0x7bc   :  { %2055 = vadd.xlane.f32.xlu2 %v2054_v47  ;;  %2067 = vadd.xlane.f32.xlu1 %v2066_v15  ;;  %3878 = vpow2.f32 %v2005_v46  ;;  %v2013_v46 = vmul.f32 1.442695, %v1975_v5 }
 0x7be   :  { %v1936_v57 = vpop.xlane.xlu2 %1935 }
 0x7bf   :  { %v1976_v37 = vsub.f32 %v5518_v19, %v1936_v57 }
 0x7c1   :  { %v5627_v6 = vpop.eup %3876  ;;  %v2015_v12 = vmul.f32 1.442695, %v1976_v37 }
 0x7c2   :  { %v2069_v9 = vsel %vm1887_vm10, %v5627_v6, 0.0  ;;  %v5634_v28 = vpop.eup %3878 }
 0x7c3   :  { %v2063_v17 = vsel %vm1887_vm10, %v5634_v28, 0.0 }
 0x7c4   :  { %2058 = vadd.xlane.f32.xlu2 %v2057_v0  ;;  %2070 = vadd.xlane.f32.xlu1 %v2069_v9 }
 0x7c6   :  { %v1939_v39 = vpop.xlane.xlu2 %1938 }
 0x7c7   :  { %v1977_v56 = vsub.f32 %v5529_v7, %v1939_v39  ;;  %v1974_v7 = vsub.f32 %v5481_v23, %v1930_v53 }
 0x7c9   :  { %v2017_v24 = vmul.f32 1.442695, %v1977_v56  ;;  %v2011_v38 = vmul.f32 1.442695, %v1974_v7  ;;  %v2603_v63 = vpop.permute.xlu0 %2602 }
 0x7cb   :  { %3880 = vpow2.f32 %v2017_v24 }
 0x7cc   :  { %2064 = vadd.xlane.f32.xlu2 %v2063_v17  ;;  %3882 = vpow2.f32 %v2011_v38 }
 0x7cd   :  { %3884 = vpow2.f32 %v2015_v12 }
 0x7ce   :  { %v2653_v27 = vpop.permute.xlu2 %2652 }
 0x7cf   :  { %v2662_v18 = vand.u32 %v2653_v27, %v5395_v41 }
 0x7d1   :  { %v5639_v48 = vpop.eup %3880  ;;  %2670 = vmatpush.bf16.msrb.mxu0 %v2662_v18 }
 0x7d2   :  { %v2081_v62 = vsel %vm1887_vm10, %v5639_v48, 0.0  ;;  %v5649_v26 = vpop.eup %3882 }
 0x7d3   :  { %2082 = vadd.xlane.f32.xlu1 %v2081_v62  ;;  %v2072_v21 = vsel %vm1887_vm10, %v5649_v26, 0.0  ;;  %v5654_v4 = vpop.eup %3884 }
 0x7d4   :  { %v2035_v23 = vpop.xlane.xlu1 %2034  ;;  %v2078_v31 = vsel %vm1887_vm10, %v5654_v4, 0.0 }
 0x7d5   :  { %3886 = vrcp.f32 %v2035_v23 }
 0x7db   :  { %v3887_v29 = vpop.eup %3886 }
 0x7dc   :  { %v2129_v55 = vmul.f32 %v3887_v29, %v5537_v2 }
 0x7de   :  { %v2153_v36 = vpack.c.bf16 %v2129_v55, %v2129_v55 }
 0x7e0   :  { %v2395_v9 = vunpack.c.l.b16 %v2153_v36 }
 0x7e4   :  { %2650 = vrot.lane.b32.xlu2 %v2648_v25, %s4013_s27 }
 0x7e5   :  { %2073 = vadd.xlane.f32.xlu0 %v2072_v21 }
 0x7ec   :  { %v2605_v20 = vpop.permute.xlu1 %2604 }
 0x7ed   :  { %v2614_v19 = vand.u32 %v2605_v20, %v5395_v41  ;;  %2079 = vadd.xlane.f32.xlu0 %v2078_v31 }
 0x7ef   :  { %2622 = vmatpush.bf16.msrb.mxu1 %v2614_v19 }
 0x7f3   :  { %2623 = vmatpush.bf16.msrb.mxu1 %v2603_v63 }
 0x7f4   :  { %v2038_v13 = vpop.xlane.xlu0 %2037 }
 0x7f5   :  { %3888 = vrcp.f32 %v2038_v13 }
 0x7f6   :  { %3890 = vpow2.f32 %v2013_v46 }
 0x7fb   :  { %v3889_v47 = vpop.eup %3888 }
 0x7fc   :  { %v2130_v15 = vmul.f32 %v3889_v47, %v5561_v34  ;;  %v1945_v0 = vpop.xlane.xlu0 %1944  ;;  %v5665_v27 = vpop.eup %3890 }
 0x7fd   :  { %v1979_v24 = vsub.f32 %v5543_v61, %v1945_v0  ;;  %v2075_v33 = vsel %vm1894_vm11, %v5665_v27, 0.0 }
 0x7fe   :  { %v2154_v57 = vpack.c.bf16 %v2130_v15, %v2130_v15 }
 0x7ff   :  { %v2021_v17 = vmul.f32 1.442695, %v1979_v24 }
 0x800   :  { %v2396_v39 = vunpack.c.l.b16 %v2154_v57 }
 0x802   :  { %v2398_v56 = vpack.c.b16 %v2396_v39, %v2395_v9 }
 0x804   :  { %3691 = vmatmul.msk.bf16.vlgmr.msra.gmra.mxu1 %vm1887_vm10, %v2398_v56  ;;  %v2044_v34 = vpop.xlane.xlu0 %2043 }
 0x807   :  { %v2041_v2 = vpop.xlane.xlu2 %2040 }
 0x808   :  { %3892 = vrcp.f32 %v2041_v2 }
 0x809   :  { %3894 = vpow2.f32 %v2021_v17 }
 0x80a   :  { %3896 = vrcp.f32 %v2044_v34 }
 0x80d   :  { %2076 = vadd.xlane.f32.xlu2 %v2075_v33 }
 0x80e   :  { %v3893_v60 = vpop.eup %3892 }
 0x80f   :  { %v1942_v18 = vpop.xlane.xlu2 %1941  ;;  %v2131_v62 = vmul.f32 %v3893_v60, %v5571_v50  ;;  %v5671_v53 = vpop.eup %3894 }
 0x810   :  { %v1978_v61 = vsub.f32 %v5535_v51, %v1942_v18  ;;  %v2087_v1 = vsel %vm1887_vm10, %v5671_v53, 0.0  ;;  %v3897_v30 = vpop.eup %3896 }
 0x811   :  { %v2155_v7 = vpack.c.bf16 %v2131_v62, %v2131_v62  ;;  %v2132_v51 = vmul.f32 %v3897_v30, %v5569_v22  ;;  %v2390_v62 = vpack.c.bf16 %v5520_v42, %v5520_v42  ;;  %v2343_v30 = vld [vmem:[#allocation1] sm:$0xff] }
 0x812   :  { %v2019_v38 = vmul.f32 1.442695, %v1978_v61  ;;  %v2047_v37 = vpop.xlane.xlu0 %2046  ;;  %v2389_v61 = vpack.c.bf16 %v5506_v11, %v5506_v11 }
 0x813   :  { %v2397_v52 = vunpack.c.l.b16 %v2155_v7  ;;  %v2156_v13 = vpack.c.bf16 %v2132_v51, %v2132_v51 }
 0x814   :  { %3898 = vpow2.f32 %v2019_v38  ;;  %v2741_v42 = vunpack.c.l.b16 %v2389_v61 }
 0x815   :  { %2088 = vadd.xlane.f32.xlu2 %v2087_v1  ;;  %v2399_v16 = vpack.c.b16 %v2397_v52, %v2397_v52  ;;  %3900 = vrcp.f32 %v2047_v37  ;;  %v2445_v47 = vunpack.c.l.b16 %v2156_v13  ;;  %v2387_v52 = vpack.c.bf16 %v5474_v40, %v5474_v40 }
 0x816   :  { %v2742_v1 = vunpack.c.l.b16 %v2390_v62  ;;  %v2386_v37 = vpack.c.bf16 %v5451_v43, %v5451_v43  ;;  %v2391_v40 = vpack.c.bf16 %v2343_v30, %v2343_v30 }
 0x817   :  { %3692 = vmatmul.msk.bf16.gmra.mxu1 %vm1887_vm10, %v2399_v16  ;;  %v1948_v50 = vpop.xlane.xlu2 %1947  ;;  %v1954_v25 = vpop.xlane.xlu1 %1953 }
 0x818   :  { %v1980_v12 = vsub.f32 %v5547_v8, %v1948_v50  ;;  %v1982_v63 = vsub.f32 %v5549_v45, %v1954_v25  ;;  %v2744_v25 = vpack.c.b16 %v2742_v1, %v2741_v42 }
 0x81a   :  { %v5678_v23 = vpop.eup %3898  ;;  %v2023_v21 = vmul.f32 1.442695, %v1980_v12  ;;  %v2027_v31 = vmul.f32 1.442695, %v1982_v63  ;;  %v2050_v55 = vpop.xlane.xlu0 %2049  ;;  %v2693_v63 = vunpack.c.l.b16 %v2386_v37 }
 0x81b   :  { %v2084_v20 = vsel %vm1894_vm11, %v5678_v23, 0.0  ;;  %v3901_v19 = vpop.eup %3900 }
 0x81c   :  { %3902 = vpow2.f32 %v2023_v21  ;;  %2085 = vadd.xlane.f32.xlu0 %v2084_v20  ;;  %v2133_v29 = vmul.f32 %v3901_v19, %v5581_v14 }
 0x81d   :  { %3904 = vpow2.f32 %v2027_v31 }
 0x81e   :  { %v2157_v8 = vpack.c.bf16 %v2133_v29, %v2133_v29  ;;  %3906 = vrcp.f32 %v2050_v55  ;;  %v2743_v29 = vunpack.c.l.b16 %v2391_v40 }
 0x81f   :  { %v1951_v22 = vpop.xlane.xlu2 %1950  ;;  %v5699_v2 = vpop.xlane.xlu1 %1956 }
 0x820   :  { %v1981_v5 = vsub.f32 %v5554_v3, %v1951_v22  ;;  %v2446_v36 = vunpack.c.l.b16 %v2157_v8  ;;  %v2745_v22 = vpack.c.b16 %v2743_v29, %v2743_v29 }
 0x822   :  { %v5685_v45 = vpop.eup %3902  ;;  %v2025_v15 = vmul.f32 1.442695, %v1981_v5  ;;  %v2448_v46 = vpack.c.b16 %v2446_v36, %v2445_v47 }
 0x823   :  { %v2090_v57 = vsel %vm1887_vm10, %v5685_v45, 0.0  ;;  %v5689_v0 = vpop.eup %3904 }
 0x824   :  { %3908 = vpow2.f32 %v2025_v15  ;;  %2091 = vadd.xlane.f32.xlu1 %v2090_v57  ;;  %v3907_v14 = vpop.eup %3906  ;;  %3693 = vmatmul.msk.bf16.vlgmr.msra.gmra.mxu0 %vm1887_vm10, %v2448_v46  ;;  %v2096_v9 = vsel %vm1887_vm10, %v5689_v0, 0.0 }
 0x825   :  { %2097 = vadd.xlane.f32.xlu0 %v2096_v9  ;;  %v2134_v39 = vmul.f32 %v3907_v14, %v5591_v59 }
 0x827   :  { %v2053_v3 = vpop.xlane.xlu2 %2052  ;;  %v2158_v17 = vpack.c.bf16 %v2134_v39, %v2134_v39  ;;  %v2062_v12 = vpop.xlane.xlu1 %2061 }
 0x828   :  { %3910 = vrcp.f32 %v2053_v3 }
 0x829   :  { %v2447_v34 = vunpack.c.l.b16 %v2158_v17 }
 0x82a   :  { %v5695_v56 = vpop.eup %3908 }
 0x82b   :  { %v2093_v24 = vsel %vm1894_vm11, %v5695_v56, 0.0  ;;  %v2449_v38 = vpack.c.b16 %v2447_v34, %v2447_v34 }
 0x82c   :  { %2094 = vadd.xlane.f32.xlu2 %v2093_v24 }
 0x82d   :  { %v2701_v18 = vpop.permute.xlu0 %2700 }
 0x82e   :  { %v3911_v60 = vpop.eup %3910  ;;  %v2710_v59 = vand.u32 %v2701_v18, %v5395_v41 }
 0x82f   :  { %v2056_v33 = vpop.xlane.xlu2 %2055  ;;  %v2135_v7 = vmul.f32 %v3911_v60, %v5601_v10  ;;  %v2694_v10 = vunpack.c.l.b16 %v2387_v52  ;;  %v2068_v47 = vpop.xlane.xlu1 %2067 }
 0x830   :  { %3912 = vrcp.f32 %v2056_v33  ;;  %2718 = vmatpush.bf16.msra.mxu2 %v2710_v59 }
 0x831   :  { %v2159_v50 = vpack.c.bf16 %v2135_v7, %v2135_v7  ;;  %v2696_v43 = vpack.c.b16 %v2694_v10, %v2693_v63 }
 0x833   :  { %v2493_v20 = vunpack.c.l.b16 %v2159_v50 }
 0x834   :  { %3694 = vmatmul.msk.bf16.gmra.mxu0 %vm1887_vm10, %v2449_v38 }
 0x836   :  { %v3913_v16 = vpop.eup %3912 }
 0x837   :  { %v2136_v11 = vmul.f32 %v3913_v16, %v5615_v44  ;;  %v2059_v51 = vpop.xlane.xlu2 %2058  ;;  %v2071_v34 = vpop.xlane.xlu1 %2070 }
 0x838   :  { %3914 = vrcp.f32 %v2059_v51 }
 0x839   :  { %v2160_v21 = vpack.c.bf16 %v2136_v11, %v2136_v11  ;;  %3916 = vrcp.f32 %v2062_v12  ;;  %2746 = vrot.lane.b32.xlu0 %v2744_v25, %s4013_s27 }
 0x83b   :  { %v2494_v19 = vunpack.c.l.b16 %v2160_v21 }
 0x83d   :  { %v2496_v31 = vpack.c.b16 %v2494_v19, %v2493_v20  ;;  %2698 = vrot.lane.b32.xlu1 %v2696_v43, %s4013_s27 }
 0x83e   :  { %v3915_v13 = vpop.eup %3914 }
 0x83f   :  { %3695 = vmatmul.msk.bf16.vlgmr.msrb.gmra.mxu2 %vm1887_vm10, %v2496_v31  ;;  %v2065_v44 = vpop.xlane.xlu2 %2064  ;;  %v3917_v55 = vpop.eup %3916  ;;  %v2137_v8 = vmul.f32 %v3915_v13, %v5625_v58 }
 0x840   :  { %3918 = vrcp.f32 %v2065_v44  ;;  %v2138_v5 = vmul.f32 %v3917_v55, %v5603_v49 }
 0x841   :  { %v2161_v36 = vpack.c.bf16 %v2137_v8, %v2137_v8  ;;  %3920 = vrcp.f32 %v2068_v47 }
 0x842   :  { %v2162_v46 = vpack.c.bf16 %v2138_v5, %v2138_v5  ;;  %3922 = vrcp.f32 %v2071_v34 }
 0x843   :  { %v2495_v3 = vunpack.c.l.b16 %v2161_v36 }
 0x844   :  { %2748 = vrot.lane.b32.xlu2 %v2745_v22, %s4013_s27  ;;  %v2541_v39 = vunpack.c.l.b16 %v2162_v46 }
 0x845   :  { %v2497_v58 = vpack.c.b16 %v2495_v3, %v2495_v3 }
 0x846   :  { %v3919_v15 = vpop.eup %3918  ;;  %v2083_v59 = vpop.xlane.xlu1 %2082 }
 0x847   :  { %v2139_v57 = vmul.f32 %v3919_v15, %v5634_v28  ;;  %v2651_v14 = vpop.permute.xlu2 %2650  ;;  %v3921_v33 = vpop.eup %3920  ;;  %v1983_v28 = vsub.f32 %v5556_v35, %v5699_v2 }
 0x848   :  { %2671 = vmatpush.bf16.msrb.mxu0 %v2651_v14  ;;  %v2140_v49 = vmul.f32 %v3921_v33, %v5617_v32  ;;  %v3923_v7 = vpop.eup %3922 }
 0x849   :  { %v2163_v9 = vpack.c.bf16 %v2139_v57, %v2139_v57  ;;  %v2029_v18 = vmul.f32 1.442695, %v1983_v28  ;;  %v2141_v52 = vmul.f32 %v3923_v7, %v5627_v6 }
 0x84a   :  { %v2164_v60 = vpack.c.bf16 %v2140_v49, %v2140_v49 }
 0x84b   :  { %v2542_v24 = vunpack.c.l.b16 %v2163_v9  ;;  %v2165_v37 = vpack.c.bf16 %v2141_v52, %v2141_v52 }
 0x84c   :  { %v2543_v62 = vunpack.c.l.b16 %v2164_v60 }
 0x84d   :  { %v2544_v17 = vpack.c.b16 %v2542_v24, %v2541_v39  ;;  %v2589_v50 = vunpack.c.l.b16 %v2165_v37 }
 0x84e   :  { %v2545_v38 = vpack.c.b16 %v2543_v62, %v2543_v62 }
 0x84f   :  { %3696 = vmatmul.msk.bf16.gmra.mxu2 %vm1887_vm10, %v2497_v58  ;;  %3697 = vmatmul.msk.bf16.vlgmr.msra.gmra.mxu3 %vm1887_vm10, %v2544_v17 }
 0x858   :  { %v2074_v61 = vpop.xlane.xlu0 %2073 }
 0x859   :  { %3924 = vrcp.f32 %v2074_v61 }
 0x85a   :  { %3926 = vpow2.f32 %v2029_v18 }
 0x85b   :  { %3928 = vrcp.f32 %v2083_v59 }
 0x85f   :  { %3698 = vmatmul.msk.bf16.gmra.mxu3 %vm1887_vm10, %v2545_v38  ;;  %v3925_v32 = vpop.eup %3924 }
 0x860   :  { %v5727_v1 = vpop.eup %3926  ;;  %v2142_v35 = vmul.f32 %v3925_v32, %v5649_v26  ;;  %v2080_v2 = vpop.xlane.xlu0 %2079 }
 0x861   :  { %v3929_v16 = vpop.eup %3928  ;;  %3930 = vrcp.f32 %v2080_v2  ;;  %v2099_v30 = vsel %vm1887_vm10, %v5727_v1, 0.0 }
 0x862   :  { %v2166_v42 = vpack.c.bf16 %v2142_v35, %v2142_v35  ;;  %v2145_v12 = vmul.f32 %v3929_v16, %v5639_v48 }
 0x864   :  { %v2590_v11 = vunpack.c.l.b16 %v2166_v42  ;;  %v2169_v10 = vpack.c.bf16 %v2145_v12, %v2145_v12 }
 0x866   :  { %v2592_v6 = vpack.c.b16 %v2590_v11, %v2589_v50  ;;  %v2638_v21 = vunpack.c.l.b16 %v2169_v10 }
 0x867   :  { %2100 = vadd.xlane.f32.xlu1 %v2099_v30  ;;  %v3931_v51 = vpop.eup %3930 }
 0x868   :  { %v2144_v25 = vmul.f32 %v3931_v51, %v5654_v4  ;;  %3699 = vmatmul.msk.bf16.vlgmr.msrb.gmra.mxu1 %vm1887_vm10, %v2592_v6 }
 0x86a   :  { %v2168_v26 = vpack.c.bf16 %v2144_v25, %v2144_v25 }
 0x86c   :  { %v2637_v63 = vunpack.c.l.b16 %v2168_v26 }
 0x86e   :  { %v2640_v40 = vpack.c.b16 %v2638_v21, %v2637_v63 }
 0x870   :  { %3701 = vmatmul.msk.bf16.vlgmr.msrb.gmra.mxu0 %vm1887_vm10, %v2640_v40 }
 0x880   :  { %v2077_v20 = vpop.xlane.xlu2 %2076 }
 0x881   :  { %3932 = vrcp.f32 %v2077_v20  ;;  %v2433_v19 = vpop.f32.mrf.mxu1 }
 0x882   :  { %v2784_v43 = vrot.slane %v2433_v19, 1  ;;  %v2785_v48 = vrot.slane %v2433_v19, 2  ;;  %v2786_v31 = vrot.slane %v2433_v19, 3  ;;  %2914 = vst [vmem:[#allocation1] ss:$9 sm:$0xff] %v2433_v19  ;;  %v2787_v13 = vrot.slane %v2433_v19, 4 }
 0x883   :  { %v2788_v29 = vrot.slane %v2433_v19, 5  ;;  %v2789_v44 = vrot.slane %v2433_v19, 6  ;;  %v2790_v55 = vrot.slane %v2433_v19, 7 }
 0x884   :  { %2916 = vst [vmem:[#allocation1 + $0x1] ss:$9 sm:$0xff] %v2784_v43 }
 0x885   :  { %2918 = vst [vmem:[#allocation1 + $0x2] ss:$9 sm:$0xff] %v2785_v48 }
 0x886   :  { %2920 = vst [vmem:[#allocation1 + $0x3] ss:$9 sm:$0xff] %v2786_v31 }
 0x887   :  { %v3933_v4 = vpop.eup %3932  ;;  %2922 = vst [vmem:[#allocation1 + $0x4] ss:$9 sm:$0xff] %v2787_v13 }
 0x888   :  { %v2143_v8 = vmul.f32 %v3933_v4, %v5665_v27  ;;  %2924 = vst [vmem:[#allocation1 + $0x5] ss:$9 sm:$0xff] %v2788_v29  ;;  %v2089_v33 = vpop.xlane.xlu2 %2088 }
 0x889   :  { %2926 = vst [vmem:[#allocation1 + $0x6] ss:$9 sm:$0xff] %v2789_v44  ;;  %v2435_v5 = vpop.f32.mrf.mxu1 }
 0x88a   :  { %v2167_v22 = vpack.c.bf16 %v2143_v8, %v2143_v8  ;;  %2928 = vst [vmem:[#allocation1 + $0x7] ss:$9 sm:$0xff] %v2790_v55  ;;  %v2791_v46 = vrot.slane %v2435_v5, 1  ;;  %v2792_v57 = vrot.slane %v2435_v5, 2  ;;  %v2793_v9 = vrot.slane %v2435_v5, 3 }
 0x88b   :  { %v2794_v3 = vrot.slane %v2435_v5, 4  ;;  %v2795_v39 = vrot.slane %v2435_v5, 5  ;;  %v2796_v24 = vrot.slane %v2435_v5, 6  ;;  %v2797_v58 = vrot.slane %v2435_v5, 7 }
 0x88c   :  { %v2591_v47 = vunpack.c.l.b16 %v2167_v22 }
 0x88e   :  { %v2593_v36 = vpack.c.b16 %v2591_v47, %v2591_v47 }
 0x88f   :  { %v2086_v15 = vpop.xlane.xlu0 %2085 }
 0x890   :  { %3934 = vrcp.f32 %v2086_v15  ;;  %3700 = vmatmul.msk.bf16.gmra.mxu1 %vm1887_vm10, %v2593_v36 }
 0x891   :  { %v5738_v14 = vld [vmem:[#allocation1] sm:$0xff] }
 0x892   :  { %2930 = vst [vmem:[#allocation1] ss:$9 sm:$0xff] %v2435_v5 }
 0x893   :  { %2931 = vst [vmem:[#allocation1 + $0x1] ss:$9 sm:$0xff] %v2791_v46 }
 0x894   :  { %v2438_v27 = vpop.f32.mrf.mxu1  ;;  %2932 = vst [vmem:[#allocation1 + $0x2] ss:$9 sm:$0xff] %v2792_v57 }
 0x895   :  { %2933 = vst [vmem:[#allocation1 + $0x3] ss:$9 sm:$0xff] %v2793_v9 }
 0x896   :  { %v3935_v17 = vpop.eup %3934  ;;  %2934 = vst [vmem:[#allocation1 + $0x4] ss:$9 sm:$0xff] %v2794_v3 }
 0x897   :  { %v2146_v49 = vmul.f32 %v3935_v17, %v5678_v23  ;;  %2935 = vst [vmem:[#allocation1 + $0x5] ss:$9 sm:$0xff] %v2795_v39  ;;  %v2092_v34 = vpop.xlane.xlu1 %2091 }
 0x898   :  { %2936 = vst [vmem:[#allocation1 + $0x6] ss:$9 sm:$0xff] %v2796_v24  ;;  %3936 = vrcp.f32 %v2092_v34  ;;  %v5744_v37 = vpop.xlane.xlu0 %2097 }
 0x899   :  { %v2170_v28 = vpack.c.bf16 %v2146_v49, %v2146_v49  ;;  %2937 = vst [vmem:[#allocation1 + $0x7] ss:$9 sm:$0xff] %v2797_v58  ;;  %3938 = vrcp.f32 %v2089_v33 }
 0x89b   :  { %v2639_v60 = vunpack.c.l.b16 %v2170_v28 }
 0x89c   :  { %v2440_v18 = vpop.f32.mrf.mxu1 }
 0x89d   :  { %v2641_v62 = vpack.c.b16 %v2639_v60, %v2639_v60 }
 0x89e   :  { %v3937_v7 = vpop.eup %3936 }
 0x89f   :  { %3702 = vmatmul.msk.bf16.gmra.mxu0 %vm1887_vm10, %v2641_v62  ;;  %v2095_v59 = vpop.xlane.xlu2 %2094  ;;  %v3939_v32 = vpop.eup %3938  ;;  %v2148_v16 = vmul.f32 %v3937_v7, %v5685_v45 }
 0x8a0   :  { %v5742_v61 = vld [vmem:[#allocation1] sm:$0xff]  ;;  %v2147_v50 = vmul.f32 %v3939_v32, %v5671_v53  ;;  %3940 = vrcp.f32 %v2095_v59 }
 0x8a1   :  { %2939 = vst [vmem:[#allocation1] ss:$9 sm:$0xff] %v2438_v27  ;;  %v2481_v38 = vpop.f32.mrf.mxu0  ;;  %v2172_v6 = vpack.c.bf16 %v2148_v16, %v2148_v16  ;;  %3942 = vrcp.f32 %v5744_v37 }
 0x8a2   :  { %v2798_v52 = vrot.slane %v2481_v38, 1  ;;  %v2799_v23 = vrot.slane %v2481_v38, 2  ;;  %2940 = vst [vmem:[#allocation1 + $0x1] ss:$9 sm:$0xff] %v2481_v38  ;;  %v2800_v35 = vrot.slane %v2481_v38, 3  ;;  %v2801_v2 = vrot.slane %v2481_v38, 4 }
 0x8a3   :  { %v2802_v42 = vrot.slane %v2481_v38, 5  ;;  %v2803_v30 = vrot.slane %v2481_v38, 6  ;;  %v2171_v10 = vpack.c.bf16 %v2147_v50, %v2147_v50  ;;  %v2686_v45 = vunpack.c.l.b16 %v2172_v6 }
 0x8a4   :  { %2941 = vst [vmem:[#allocation1 + $0x2] ss:$9 sm:$0xff] %v2798_v52  ;;  %v2804_v63 = vrot.slane %v2481_v38, 7 }
 0x8a5   :  { %2942 = vst [vmem:[#allocation1 + $0x3] ss:$9 sm:$0xff] %v2799_v23  ;;  %v2685_v26 = vunpack.c.l.b16 %v2171_v10 }
 0x8a6   :  { %2943 = vst [vmem:[#allocation1 + $0x4] ss:$9 sm:$0xff] %v2800_v35 }
 0x8a7   :  { %v2749_v12 = vpop.permute.xlu2 %2748  ;;  %2944 = vst [vmem:[#allocation1 + $0x5] ss:$9 sm:$0xff] %v2801_v2  ;;  %v2688_v53 = vpack.c.b16 %v2686_v45, %v2685_v26 }
 0x8a8   :  { %v2758_v11 = vand.u32 %v2749_v12, %v5395_v41  ;;  %2945 = vst [vmem:[#allocation1 + $0x6] ss:$9 sm:$0xff] %v2802_v42  ;;  %v3941_v41 = vpop.eup %3940 }
 0x8a9   :  { %2946 = vst [vmem:[#allocation1 + $0x7] ss:$9 sm:$0xff] %v2803_v30  ;;  %v2483_v51 = vpop.f32.mrf.mxu0  ;;  %v2149_v44 = vmul.f32 %v3941_v41, %v5695_v56  ;;  %v3943_v7 = vpop.eup %3942 }
 0x8aa   :  { %2766 = vmatpush.bf16.msrb.mxu3 %v2758_v11  ;;  %v2805_v40 = vrot.slane %v2483_v51, 1  ;;  %v2806_v19 = vrot.slane %v2483_v51, 2  ;;  %v2807_v43 = vrot.slane %v2483_v51, 3  ;;  %v2808_v31 = vrot.slane %v2483_v51, 4 }
 0x8ab   :  { %v2747_v25 = vpop.permute.xlu0 %2746  ;;  %v2809_v13 = vrot.slane %v2483_v51, 5  ;;  %v2810_v29 = vrot.slane %v2483_v51, 6  ;;  %v2173_v4 = vpack.c.bf16 %v2149_v44, %v2149_v44  ;;  %v2811_v22 = vrot.slane %v2483_v51, 7 }
 0x8ac   :  { %v2150_v32 = vmul.f32 %v3943_v7, %v5689_v0 }
 0x8ad   :  { %v2687_v8 = vunpack.c.l.b16 %v2173_v4 }
 0x8ae   :  { %2767 = vmatpush.bf16.msrb.mxu3 %v2747_v25  ;;  %v2174_v35 = vpack.c.bf16 %v2150_v32, %v2150_v32 }
 0x8af   :  { %v2699_v21 = vpop.permute.xlu1 %2698  ;;  %v2689_v47 = vpack.c.b16 %v2687_v8, %v2687_v8 }
 0x8b0   :  { %2719 = vmatpush.bf16.msra.mxu2 %v2699_v21  ;;  %v5749_v20 = vld [vmem:[#allocation1] sm:$0xff]  ;;  %v2733_v30 = vunpack.c.l.b16 %v2174_v35 }
 0x8b1   :  { %2948 = vst [vmem:[#allocation1] ss:$9 sm:$0xff] %v2804_v63  ;;  %v2486_v48 = vpop.f32.mrf.mxu0 }
 0x8b2   :  { %2949 = vst [vmem:[#allocation1 + $0x1] ss:$9 sm:$0xff] %v2483_v51 }
 0x8b3   :  { %3703 = vmatmul.msk.bf16.vlgmr.msra.gmra.mxu2 %vm1887_vm10, %v2688_v53  ;;  %2950 = vst [vmem:[#allocation1 + $0x2] ss:$9 sm:$0xff] %v2805_v40 }
 0x8b4   :  { %2951 = vst [vmem:[#allocation1 + $0x3] ss:$9 sm:$0xff] %v2806_v19 }
 0x8b5   :  { %2952 = vst [vmem:[#allocation1 + $0x4] ss:$9 sm:$0xff] %v2807_v43 }
 0x8b6   :  { %2953 = vst [vmem:[#allocation1 + $0x5] ss:$9 sm:$0xff] %v2808_v31 }
 0x8b7   :  { %2954 = vst [vmem:[#allocation1 + $0x6] ss:$9 sm:$0xff] %v2809_v13 }
 0x8b8   :  { %2955 = vst [vmem:[#allocation1 + $0x7] ss:$9 sm:$0xff] %v2810_v29 }
 0x8b9   :  { %v2488_v55 = vpop.f32.mrf.mxu0 }
 0x8bf   :  { %v5753_v5 = vld [vmem:[#allocation1] sm:$0xff] }
 0x8c0   :  { %2957 = vst [vmem:[#allocation1] ss:$9 sm:$0xff] %v2811_v22 }
 0x8c1   :  { %2958 = vst [vmem:[#allocation1 + $0x1] ss:$9 sm:$0xff] %v2486_v48 }
 0x8c2   :  { %v2529_v36 = vpop.f32.mrf.mxu2 }
 0x8c3   :  { %3704 = vmatmul.msk.bf16.gmra.mxu2 %vm1887_vm10, %v2689_v47  ;;  %v2818_v15 = vrot.slane %v2529_v36, 1  ;;  %v2819_v46 = vrot.slane %v2529_v36, 2  ;;  %v2820_v56 = vrot.slane %v2529_v36, 3  ;;  %v2821_v9 = vrot.slane %v2529_v36, 4 }
 0x8c4   :  { %v2822_v39 = vrot.slane %v2529_v36, 5  ;;  %v2823_v27 = vrot.slane %v2529_v36, 6  ;;  %v2824_v24 = vrot.slane %v2529_v36, 7 }
 0x8c8   :  { %v5756_v57 = vld [vmem:[#allocation1] sm:$0xff] }
 0x8c9   :  { %2965 = vst [vmem:[#allocation1] ss:$9 sm:$0xff] %v2529_v36 }
 0x8ca   :  { %v2531_v3 = vpop.f32.mrf.mxu2  ;;  %2967 = vst [vmem:[#allocation1 + $0x1] ss:$9 sm:$0xff] %v2818_v15 }
 0x8cb   :  { %2969 = vst [vmem:[#allocation1 + $0x2] ss:$9 sm:$0xff] %v2819_v46  ;;  %v2825_v33 = vrot.slane %v2531_v3, 1  ;;  %v2826_v49 = vrot.slane %v2531_v3, 2  ;;  %v2827_v28 = vrot.slane %v2531_v3, 3  ;;  %v2828_v60 = vrot.slane %v2531_v3, 4 }
 0x8cc   :  { %2971 = vst [vmem:[#allocation1 + $0x3] ss:$9 sm:$0xff] %v2820_v56  ;;  %v2829_v18 = vrot.slane %v2531_v3, 5  ;;  %v2830_v38 = vrot.slane %v2531_v3, 6  ;;  %v2831_v23 = vrot.slane %v2531_v3, 7 }
 0x8cd   :  { %2973 = vst [vmem:[#allocation1 + $0x4] ss:$9 sm:$0xff] %v2821_v9 }
 0x8ce   :  { %2975 = vst [vmem:[#allocation1 + $0x5] ss:$9 sm:$0xff] %v2822_v39 }
 0x8cf   :  { %2977 = vst [vmem:[#allocation1 + $0x6] ss:$9 sm:$0xff] %v2823_v27 }
 0x8d0   :  { %2979 = vst [vmem:[#allocation1 + $0x7] ss:$9 sm:$0xff] %v2824_v24 }
 0x8d2   :  { %v2534_v17 = vpop.f32.mrf.mxu2  ;;  %v2577_v58 = vpop.f32.mrf.mxu3 }
 0x8d3   :  { %v2832_v50 = vrot.slane %v2577_v58, 1  ;;  %v2833_v6 = vrot.slane %v2577_v58, 2  ;;  %v2834_v51 = vrot.slane %v2577_v58, 3  ;;  %v2835_v45 = vrot.slane %v2577_v58, 4 }
 0x8d4   :  { %v2836_v0 = vrot.slane %v2577_v58, 5  ;;  %v2838_v21 = vrot.slane %v2577_v58, 7 }
 0x8d7   :  { %v2980_v34 = vld [vmem:[#allocation1] sm:$0xff] }
 0x8d8   :  { %2981 = vst [vmem:[#allocation1] ss:$9 sm:$0xff] %v2531_v3 }
 0x8d9   :  { %2982 = vst [vmem:[#allocation1 + $0x1] ss:$9 sm:$0xff] %v2825_v33 }
 0x8da   :  { %v2101_v62 = vpop.xlane.xlu1 %2100  ;;  %v2536_v59 = vpop.f32.mrf.mxu2  ;;  %2983 = vst [vmem:[#allocation1 + $0x2] ss:$9 sm:$0xff] %v2826_v49 }
 0x8db   :  { %3944 = vrcp.f32 %v2101_v62  ;;  %v2579_v52 = vpop.f32.mrf.mxu3  ;;  %2984 = vst [vmem:[#allocation1 + $0x3] ss:$9 sm:$0xff] %v2827_v28 }
 0x8dc   :  { %2985 = vst [vmem:[#allocation1 + $0x4] ss:$9 sm:$0xff] %v2828_v60  ;;  %v2839_v63 = vrot.slane %v2579_v52, 1  ;;  %v2840_v40 = vrot.slane %v2579_v52, 2  ;;  %v2841_v19 = vrot.slane %v2579_v52, 3  ;;  %v2842_v41 = vrot.slane %v2579_v52, 4 }
 0x8dd   :  { %2986 = vst [vmem:[#allocation1 + $0x5] ss:$9 sm:$0xff] %v2829_v18  ;;  %v2843_v43 = vrot.slane %v2579_v52, 5  ;;  %v2844_v48 = vrot.slane %v2579_v52, 6  ;;  %v2845_v13 = vrot.slane %v2579_v52, 7 }
 0x8de   :  { %2987 = vst [vmem:[#allocation1 + $0x6] ss:$9 sm:$0xff] %v2830_v38 }
 0x8df   :  { %2988 = vst [vmem:[#allocation1 + $0x7] ss:$9 sm:$0xff] %v2831_v23 }
 0x8e1   :  { %v3945_v37 = vpop.eup %3944 }
 0x8e2   :  { %v2151_v2 = vmul.f32 %v3945_v37, %v5727_v1  ;;  %v2837_v1 = vrot.slane %v2577_v58, 6 }
 0x8e3   :  { %v2582_v16 = vpop.f32.mrf.mxu3 }
 0x8e4   :  { %v2175_v42 = vpack.c.bf16 %v2151_v2, %v2151_v2 }
 0x8e5   :  { %v2625_v31 = vpop.f32.mrf.mxu1 }
 0x8e6   :  { %v2734_v12 = vunpack.c.l.b16 %v2175_v42  ;;  %v2989_v11 = vld [vmem:[#allocation1] sm:$0xff]  ;;  %v2852_v8 = vrot.slane %v2625_v31, 1  ;;  %v2853_v47 = vrot.slane %v2625_v31, 2  ;;  %v2854_v36 = vrot.slane %v2625_v31, 3 }
 0x8e7   :  { %2990 = vst [vmem:[#allocation1] ss:$9 sm:$0xff] %v2534_v17  ;;  %v3790_v10 = vpack.i.bf16 %v2989_v11, %v2980_v34  ;;  %v2855_v15 = vrot.slane %v2625_v31, 4  ;;  %v2856_v46 = vrot.slane %v2625_v31, 5  ;;  %v2857_v56 = vrot.slane %v2625_v31, 6 }
 0x8e8   :  { %v2736_v25 = vpack.c.b16 %v2734_v12, %v2733_v30  ;;  %2991 = vst [vmem:[#allocation1 + $0x1] ss:$9 sm:$0xff] %v2577_v58  ;;  %v2858_v3 = vrot.slane %v2625_v31, 7 }
 0x8e9   :  { %2992 = vst [vmem:[#allocation1 + $0x2] ss:$9 sm:$0xff] %v2832_v50  ;;  %3791 = vrot.lane.b32.xlu2 %v3790_v10, %s4015_s28 }
 0x8ea   :  { %3705 = vmatmul.msk.bf16.vlgmr.msrb.gmra.mxu3 %vm1887_vm10, %v2736_v25  ;;  %2993 = vst [vmem:[#allocation1 + $0x3] ss:$9 sm:$0xff] %v2833_v6 }
 0x8eb   :  { %v2584_v26 = vpop.f32.mrf.mxu3  ;;  %2994 = vst [vmem:[#allocation1 + $0x4] ss:$9 sm:$0xff] %v2834_v51 }
 0x8ec   :  { %2995 = vst [vmem:[#allocation1 + $0x5] ss:$9 sm:$0xff] %v2835_v45 }
 0x8ed   :  { %2996 = vst [vmem:[#allocation1 + $0x6] ss:$9 sm:$0xff] %v2836_v0  ;;  %v2673_v4 = vpop.f32.mrf.mxu0  ;;  %v2627_v55 = vpop.f32.mrf.mxu1 }
 0x8ee   :  { %2997 = vst [vmem:[#allocation1 + $0x7] ss:$9 sm:$0xff] %v2837_v1  ;;  %v2859_v17 = vrot.slane %v2627_v55, 1  ;;  %v2860_v33 = vrot.slane %v2627_v55, 2  ;;  %v2861_v49 = vrot.slane %v2627_v55, 3  ;;  %v2862_v34 = vrot.slane %v2627_v55, 4 }
 0x8ef   :  { %v2863_v28 = vrot.slane %v2627_v55, 5  ;;  %v2864_v60 = vrot.slane %v2627_v55, 6  ;;  %v2865_v18 = vrot.slane %v2627_v55, 7  ;;  %v2866_v59 = vrot.slane %v2673_v4, 1 }
 0x8f0   :  { %v2867_v38 = vrot.slane %v2673_v4, 2  ;;  %v2868_v23 = vrot.slane %v2673_v4, 3  ;;  %v2869_v32 = vrot.slane %v2673_v4, 4  ;;  %v2870_v37 = vrot.slane %v2673_v4, 5 }
 0x8f1   :  { %v2871_v35 = vrot.slane %v2673_v4, 6 }
 0x8f5   :  { %v2998_v53 = vld [vmem:[#allocation1] sm:$0xff]  ;;  %v2675_v39 = vpop.f32.mrf.mxu0 }
 0x8f6   :  { %2999 = vst [vmem:[#allocation1] ss:$9 sm:$0xff] %v2838_v21  ;;  %v2873_v30 = vrot.slane %v2675_v39, 1  ;;  %v2874_v50 = vrot.slane %v2675_v39, 2  ;;  %v2875_v12 = vrot.slane %v2675_v39, 3  ;;  %v2876_v6 = vrot.slane %v2675_v39, 4 }
 0x8f7   :  { %3000 = vst [vmem:[#allocation1 + $0x1] ss:$9 sm:$0xff] %v2579_v52  ;;  %v2877_v51 = vrot.slane %v2675_v39, 5  ;;  %v2878_v10 = vrot.slane %v2675_v39, 6  ;;  %v2879_v45 = vrot.slane %v2675_v39, 7 }
 0x8f8   :  { %3001 = vst [vmem:[#allocation1 + $0x2] ss:$9 sm:$0xff] %v2839_v63 }
 0x8f9   :  { %3002 = vst [vmem:[#allocation1 + $0x3] ss:$9 sm:$0xff] %v2840_v40 }
 0x8fa   :  { %3003 = vst [vmem:[#allocation1 + $0x4] ss:$9 sm:$0xff] %v2841_v19 }
 0x8fb   :  { %3004 = vst [vmem:[#allocation1 + $0x5] ss:$9 sm:$0xff] %v2842_v41 }
 0x8fc   :  { %3005 = vst [vmem:[#allocation1 + $0x6] ss:$9 sm:$0xff] %v2843_v43 }
 0x8fd   :  { %3006 = vst [vmem:[#allocation1 + $0x7] ss:$9 sm:$0xff] %v2844_v48 }
 0x904   :  { %v3007_v29 = vld [vmem:[#allocation1] sm:$0xff] }
 0x905   :  { %v3805_v44 = vpack.i.bf16 %v3007_v29, %v2998_v53  ;;  %3008 = vst [vmem:[#allocation1] ss:$9 sm:$0xff] %v2845_v13 }
 0x906   :  { %3009 = vst [vmem:[#allocation1 + $0x1] ss:$9 sm:$0xff] %v2582_v16  ;;  %v2872_v16 = vrot.slane %v2673_v4, 7 }
 0x907   :  { %3806 = vrot.lane.b32.xlu0 %v3805_v44, %s4015_s28 }
 0x90d   :  { %v5764_v22 = vld [vmem:[#allocation1] sm:$0xff]  ;;  %v2630_v9 = vpop.f32.mrf.mxu1 }
 0x90e   :  { %3026 = vst [vmem:[#allocation1] ss:$9 sm:$0xff] %v2625_v31 }
 0x90f   :  { %3028 = vst [vmem:[#allocation1 + $0x1] ss:$9 sm:$0xff] %v2852_v8 }
 0x910   :  { %3030 = vst [vmem:[#allocation1 + $0x2] ss:$9 sm:$0xff] %v2853_v47 }
 0x911   :  { %3032 = vst [vmem:[#allocation1 + $0x3] ss:$9 sm:$0xff] %v2854_v36 }
 0x912   :  { %3034 = vst [vmem:[#allocation1 + $0x4] ss:$9 sm:$0xff] %v2855_v15 }
 0x913   :  { %3036 = vst [vmem:[#allocation1 + $0x5] ss:$9 sm:$0xff] %v2856_v46 }
 0x914   :  { %3038 = vst [vmem:[#allocation1 + $0x6] ss:$9 sm:$0xff] %v2857_v56 }
 0x915   :  { %3040 = vst [vmem:[#allocation1 + $0x7] ss:$9 sm:$0xff] %v2858_v3  ;;  %v2632_v27 = vpop.f32.mrf.mxu1 }
 0x91c   :  { %v2678_v24 = vpop.f32.mrf.mxu0  ;;  %v3041_v58 = vld [vmem:[#allocation1] sm:$0xff] }
 0x91d   :  { %3042 = vst [vmem:[#allocation1] ss:$9 sm:$0xff] %v2627_v55 }
 0x91e   :  { %3043 = vst [vmem:[#allocation1 + $0x1] ss:$9 sm:$0xff] %v2859_v17 }
 0x91f   :  { %3044 = vst [vmem:[#allocation1 + $0x2] ss:$9 sm:$0xff] %v2860_v33 }
 0x920   :  { %3045 = vst [vmem:[#allocation1 + $0x3] ss:$9 sm:$0xff] %v2861_v49 }
 0x921   :  { %3046 = vst [vmem:[#allocation1 + $0x4] ss:$9 sm:$0xff] %v2862_v34 }
 0x922   :  { %3047 = vst [vmem:[#allocation1 + $0x5] ss:$9 sm:$0xff] %v2863_v28  ;;  %v3768_v28 = vld [vmem:[%s5949_s2 + $0x30] sm:$0xff] }
 0x923   :  { %3048 = vst [vmem:[#allocation1 + $0x6] ss:$9 sm:$0xff] %v2864_v60  ;;  %3196 = vmatpush.bf16.msra.mxu1 %v3768_v28 }
 0x924   :  { %v2680_v62 = vpop.f32.mrf.mxu0  ;;  %3049 = vst [vmem:[#allocation1 + $0x7] ss:$9 sm:$0xff] %v2865_v18 }
 0x92b   :  { %v3050_v7 = vld [vmem:[#allocation1] sm:$0xff] }
 0x92c   :  { %v3795_v52 = vpack.i.bf16 %v3050_v7, %v3041_v58  ;;  %3052 = vst [vmem:[#allocation1 + $0x1] ss:$9 sm:$0xff] %v2673_v4 }
 0x92d   :  { %3053 = vst [vmem:[#allocation1 + $0x2] ss:$9 sm:$0xff] %v2866_v59 }
 0x92e   :  { %3796 = vrot.lane.b32.xlu1 %v3795_v52, %s4016_s29  ;;  %3054 = vst [vmem:[#allocation1 + $0x3] ss:$9 sm:$0xff] %v2867_v38 }
 0x92f   :  { %3055 = vst [vmem:[#allocation1 + $0x4] ss:$9 sm:$0xff] %v2868_v23  ;;  %v1958_v23 = vsel %vm1894_vm11, %v5559_v54, -inf }
 0x930   :  { %3056 = vst [vmem:[#allocation1 + $0x5] ss:$9 sm:$0xff] %v2869_v32  ;;  %v3767_v32 = vld [vmem:[%s5949_s2 + $0x28] sm:$0xff] }
 0x931   :  { %3057 = vst [vmem:[#allocation1 + $0x6] ss:$9 sm:$0xff] %v2870_v37  ;;  %3197 = vmatpush.bf16.msra.mxu1 %v3767_v32 }
 0x932   :  { %3058 = vst [vmem:[#allocation1 + $0x7] ss:$9 sm:$0xff] %v2871_v35 }
 0x933   :  { %3051 = vst [vmem:[#allocation1] ss:$9 sm:$0xff] %v2630_v9 }
 0x936   :  { %v2721_v2 = vpop.f32.mrf.mxu2 }
 0x937   :  { %v2886_v26 = vrot.slane %v2721_v2, 1  ;;  %v2887_v21 = vrot.slane %v2721_v2, 2  ;;  %v2888_v63 = vrot.slane %v2721_v2, 3  ;;  %v2889_v53 = vrot.slane %v2721_v2, 4 }
 0x938   :  { %v2890_v19 = vrot.slane %v2721_v2, 5  ;;  %v2891_v41 = vrot.slane %v2721_v2, 6  ;;  %v2892_v43 = vrot.slane %v2721_v2, 7 }
 0x93a   :  { %v5767_v42 = vld [vmem:[#allocation1] sm:$0xff] }
 0x93b   :  { %3060 = vst [vmem:[#allocation1] ss:$9 sm:$0xff] %v2872_v16 }
 0x93c   :  { %3061 = vst [vmem:[#allocation1 + $0x1] ss:$9 sm:$0xff] %v2675_v39 }
 0x93d   :  { %3062 = vst [vmem:[#allocation1 + $0x2] ss:$9 sm:$0xff] %v2873_v30 }
 0x93e   :  { %v2723_v11 = vpop.f32.mrf.mxu2  ;;  %3063 = vst [vmem:[#allocation1 + $0x3] ss:$9 sm:$0xff] %v2874_v50 }
 0x93f   :  { %3064 = vst [vmem:[#allocation1 + $0x4] ss:$9 sm:$0xff] %v2875_v12  ;;  %v2893_v48 = vrot.slane %v2723_v11, 1  ;;  %v2894_v31 = vrot.slane %v2723_v11, 2  ;;  %v2895_v13 = vrot.slane %v2723_v11, 3  ;;  %v2896_v44 = vrot.slane %v2723_v11, 4 }
 0x940   :  { %3065 = vst [vmem:[#allocation1 + $0x5] ss:$9 sm:$0xff] %v2876_v6  ;;  %v2897_v4 = vrot.slane %v2723_v11, 5  ;;  %v2898_v55 = vrot.slane %v2723_v11, 6  ;;  %v2899_v8 = vrot.slane %v2723_v11, 7 }
 0x941   :  { %3066 = vst [vmem:[#allocation1 + $0x6] ss:$9 sm:$0xff] %v2877_v51 }
 0x942   :  { %3067 = vst [vmem:[#allocation1 + $0x7] ss:$9 sm:$0xff] %v2878_v10 }
 0x943   :  { %v3792_v37 = vpop.permute.xlu2 %3791 }
 0x944   :  { %v3793_v16 = vunpack.i.l.bf16 %v3792_v37 }
 0x946   :  { %v2726_v25 = vpop.f32.mrf.mxu2 }
 0x949   :  { %v3068_v0 = vld [vmem:[#allocation1] sm:$0xff] }
 0x94a   :  { %3069 = vst [vmem:[#allocation1] ss:$9 sm:$0xff] %v2879_v45 }
 0x94b   :  { %3070 = vst [vmem:[#allocation1 + $0x1] ss:$9 sm:$0xff] %v2678_v24  ;;  %v3810_v24 = vpack.i.bf16 %v3068_v0, %v5767_v42 }
 0x94e   :  { %v2728_v1 = vpop.f32.mrf.mxu2 }
 0x952   :  { %v5769_v40 = vld [vmem:[#allocation1] sm:$0xff] }
 0x953   :  { %3087 = vst [vmem:[#allocation1] ss:$9 sm:$0xff] %v2721_v2  ;;  %v3794_v2 = vunpack.i.h.bf16 %v3792_v37 }
 0x954   :  { %3089 = vst [vmem:[#allocation1 + $0x1] ss:$9 sm:$0xff] %v2886_v26 }
 0x955   :  { %3091 = vst [vmem:[#allocation1 + $0x2] ss:$9 sm:$0xff] %v2887_v21  ;;  %v3149_v12 = vsel %vm1506_vm9, %v5742_v61, %v3794_v2 }
 0x956   :  { %3093 = vst [vmem:[#allocation1 + $0x3] ss:$9 sm:$0xff] %v2888_v63 }
 0x957   :  { %3095 = vst [vmem:[#allocation1 + $0x4] ss:$9 sm:$0xff] %v2889_v53 }
 0x958   :  { %3097 = vst [vmem:[#allocation1 + $0x5] ss:$9 sm:$0xff] %v2890_v19 }
 0x959   :  { %3099 = vst [vmem:[#allocation1 + $0x6] ss:$9 sm:$0xff] %v2891_v41 }
 0x95a   :  { %3101 = vst [vmem:[#allocation1 + $0x7] ss:$9 sm:$0xff] %v2892_v43 }
 0x961   :  { %v3102_v29 = vld [vmem:[#allocation1] sm:$0xff] }
 0x962   :  { %3103 = vst [vmem:[#allocation1] ss:$9 sm:$0xff] %v2723_v11  ;;  %v3148_v11 = vsel %vm1506_vm9, %v5738_v14, %v3793_v16 }
 0x963   :  { %3104 = vst [vmem:[#allocation1 + $0x1] ss:$9 sm:$0xff] %v2893_v48 }
 0x964   :  { %3105 = vst [vmem:[#allocation1 + $0x2] ss:$9 sm:$0xff] %v2894_v31 }
 0x965   :  { %3106 = vst [vmem:[#allocation1 + $0x3] ss:$9 sm:$0xff] %v2895_v13 }
 0x966   :  { %3107 = vst [vmem:[#allocation1 + $0x4] ss:$9 sm:$0xff] %v2896_v44 }
 0x967   :  { %3108 = vst [vmem:[#allocation1 + $0x5] ss:$9 sm:$0xff] %v2897_v4 }
 0x968   :  { %3109 = vst [vmem:[#allocation1 + $0x6] ss:$9 sm:$0xff] %v2898_v55 }
 0x969   :  { %3110 = vst [vmem:[#allocation1 + $0x7] ss:$9 sm:$0xff] %v2899_v8 }
 0x96d   :  { %v2769_v47 = vpop.f32.mrf.mxu3 }
 0x96e   :  { %v2900_v36 = vrot.slane %v2769_v47, 1  ;;  %v2901_v46 = vrot.slane %v2769_v47, 2  ;;  %v2902_v9 = vrot.slane %v2769_v47, 3  ;;  %v2903_v3 = vrot.slane %v2769_v47, 4 }
 0x96f   :  { %v2904_v39 = vrot.slane %v2769_v47, 5  ;;  %v2905_v27 = vrot.slane %v2769_v47, 6  ;;  %v2906_v17 = vrot.slane %v2769_v47, 7 }
 0x970   :  { %v3111_v15 = vld [vmem:[#allocation1] sm:$0xff] }
 0x971   :  { %v3800_v56 = vpack.i.bf16 %v3111_v15, %v3102_v29  ;;  %3112 = vst [vmem:[#allocation1] ss:$9 sm:$0xff] %v2726_v25  ;;  %v5806_v15 = vld [vmem:[%s5950_s3 + $0x9] ss:$0 sm:$0xff] }
 0x972   :  { %3113 = vst [vmem:[#allocation1 + $0x1] ss:$9 sm:$0xff] %v2769_v47 }
 0x973   :  { %3801 = vrot.lane.b32.xlu2 %v3800_v56, %s4017_s30  ;;  %3114 = vst [vmem:[#allocation1 + $0x2] ss:$9 sm:$0xff] %v2900_v36 }
 0x974   :  { %3115 = vst [vmem:[#allocation1 + $0x3] ss:$9 sm:$0xff] %v2901_v46 }
 0x975   :  { %3116 = vst [vmem:[#allocation1 + $0x4] ss:$9 sm:$0xff] %v2902_v9  ;;  %v2771_v58 = vpop.f32.mrf.mxu3  ;;  %v6479_v9 = vld [vmem:[#allocation6_spill] sm:$0xff] }
 0x976   :  { %3117 = vst [vmem:[#allocation1 + $0x5] ss:$9 sm:$0xff] %v2903_v3  ;;  %v2907_v33 = vrot.slane %v2771_v58, 1  ;;  %v2908_v49 = vrot.slane %v2771_v58, 2  ;;  %v2909_v60 = vrot.slane %v2771_v58, 3  ;;  %v2910_v18 = vrot.slane %v2771_v58, 4 }
 0x977   :  { %3118 = vst [vmem:[#allocation1 + $0x6] ss:$9 sm:$0xff] %v2904_v39  ;;  %v2911_v62 = vrot.slane %v2771_v58, 5  ;;  %v2912_v59 = vrot.slane %v2771_v58, 6  ;;  %v2913_v7 = vrot.slane %v2771_v58, 7 }
 0x978   :  { %3119 = vst [vmem:[#allocation1 + $0x7] ss:$9 sm:$0xff] %v2905_v27 }
 0x979   :  { %v3807_v26 = vpop.permute.xlu0 %3806 }
 0x97a   :  { %v3809_v63 = vunpack.i.h.bf16 %v3807_v26  ;;  %v3808_v61 = vunpack.i.l.bf16 %v3807_v26 }
 0x97b   :  { %3811 = vrot.lane.b32.xlu2 %v3810_v24, %s4016_s29  ;;  %v6480_v24 = vld [vmem:[#allocation7_spill] sm:$0xff] }
 0x97c   :  { %v3151_v41 = vsel %vm1506_vm9, %v5753_v5, %v3809_v63  ;;  %v3150_v43 = vsel %vm1506_vm9, %v5749_v20, %v3808_v61 }
 0x97f   :  { %v3120_v34 = vld [vmem:[#allocation1] sm:$0xff] }
 0x980   :  { %3121 = vst [vmem:[#allocation1] ss:$9 sm:$0xff] %v2906_v17 }
 0x981   :  { %3122 = vst [vmem:[#allocation1 + $0x1] ss:$9 sm:$0xff] %v2771_v58 }
 0x982   :  { %3123 = vst [vmem:[#allocation1 + $0x2] ss:$9 sm:$0xff] %v2907_v33 }
 0x983   :  { %3124 = vst [vmem:[#allocation1 + $0x3] ss:$9 sm:$0xff] %v2908_v49 }
 0x984   :  { %3125 = vst [vmem:[#allocation1 + $0x4] ss:$9 sm:$0xff] %v2909_v60 }
 0x985   :  { %3126 = vst [vmem:[#allocation1 + $0x5] ss:$9 sm:$0xff] %v2910_v18 }
 0x986   :  { %3127 = vst [vmem:[#allocation1 + $0x6] ss:$9 sm:$0xff] %v2911_v62 }
 0x987   :  { %3128 = vst [vmem:[#allocation1 + $0x7] ss:$9 sm:$0xff] %v2912_v59  ;;  %v6482_v59 = vld [vmem:[#allocation9_spill] sm:$0xff] }
 0x98e   :  { %v3129_v38 = vld [vmem:[#allocation1] sm:$0xff] }
 0x98f   :  { %v3815_v52 = vpack.i.bf16 %v3129_v38, %v3120_v34  ;;  %3130 = vst [vmem:[#allocation1] ss:$9 sm:$0xff] %v2913_v7  ;;  %v6481_v34 = vld [vmem:[#allocation8_spill] sm:$0xff] }
 0x991   :  { %3816 = vrot.lane.b32.xlu0 %v3815_v52, %s4017_s30 }
 0x9a0   :  { %v3797_v35 = vpop.permute.xlu1 %3796 }
 0x9a1   :  { %v3799_v42 = vunpack.i.h.bf16 %v3797_v35  ;;  %v3798_v30 = vunpack.i.l.bf16 %v3797_v35 }
 0x9a3   :  { %v3155_v10 = vsel %vm3153_vm12, %v3149_v12, %v3799_v42  ;;  %v3154_v25 = vsel %vm3153_vm12, %v3148_v11, %v3798_v30  ;;  %v6483_v42 = vld [vmem:[#allocation5_spill] sm:$0xff] }
 0x9a4   :  { %1959 = vmax.xlane.f32.xlu2 %v1958_v23 }
 0x9cd   :  { %v3802_v50 = vpop.permute.xlu2 %3801 }
 0x9ce   :  { %v3804_v6 = vunpack.i.h.bf16 %v3802_v50  ;;  %v3803_v51 = vunpack.i.l.bf16 %v3802_v50 }
 0x9d0   :  { %v3161_v45 = vsel %vm3159_vm13, %v3155_v10, %v3804_v6  ;;  %v3160_v0 = vsel %vm3159_vm13, %v3154_v25, %v3803_v51 }
 0x9d1   :  { %v3165_v1 = vpack.c.bf16 %v3161_v45, %v3160_v0 }
 0x9d3   :  { %3715 = vmatmul.msk.bf16.vlgmr.msra.gmra.mxu1 %vm102_vm1, %v3165_v1 }
 0x9d5   :  { %v3812_v21 = vpop.permute.xlu2 %3811 }
 0x9d6   :  { %v3814_v53 = vunpack.i.h.bf16 %v3812_v21  ;;  %v3813_v19 = vunpack.i.l.bf16 %v3812_v21 }
 0x9d8   :  { %v3157_v13 = vsel %vm3153_vm12, %v3151_v41, %v3814_v53  ;;  %v3156_v29 = vsel %vm3153_vm12, %v3150_v43, %v3813_v19 }
 0xa03   :  { %v3817_v14 = vpop.permute.xlu0 %3816 }
 0xa04   :  { %v3819_v48 = vunpack.i.h.bf16 %v3817_v14  ;;  %v3818_v31 = vunpack.i.l.bf16 %v3817_v14 }
 0xa06   :  { %v3162_v44 = vsel %vm3159_vm13, %v3156_v29, %v3818_v31  ;;  %v3163_v4 = vsel %vm3159_vm13, %v3157_v13, %v3819_v48 }
 0xa07   :  { %v3166_v55 = vpack.c.bf16 %v3163_v4, %v3162_v44  ;;  %v3770_v44 = vld [vmem:[%s5949_s2 + $0x40] sm:$0xff] }
 0xa08   :  { %3378 = vmatpush.bf16.msra.mxu0 %v3770_v44 }
 0xa09   :  { %3716 = vmatmul.msk.bf16.gmra.mxu1 %vm102_vm1, %v3166_v55 }
 0xa17   :  { %v1960_v8 = vpop.xlane.xlu2 %1959 }
 0xa18   :  { %v1984_v47 = vsub.f32 %v5559_v54, %v1960_v8 }
 0xa1a   :  { %v2031_v5 = vmul.f32 1.442695, %v1984_v47 }
 0xa1c   :  { %3946 = vpow2.f32 %v2031_v5 }
 0xa22   :  { %v3947_v36 = vpop.eup %3946 }
 0xa23   :  { %v2102_v20 = vsel %vm1894_vm11, %v3947_v36, 0.0 }
 0xa24   :  { %2103 = vadd.xlane.f32.xlu1 %v2102_v20 }
 0xa50   :  { %v3199_v46 = vpop.f32.mrf.mxu1 }
 0xa51   :  { %v3200_v56 = vadd.f32 %v5806_v15, %v3199_v46 }
 0xa53   :  { %v5810_v3 = vadd.f32 %v3200_v56, %v6479_v9 }
 0xa55   :  { %v3220_v54 = vsel %vm102_vm1, %v5810_v3, 0.0 }
 0xa56   :  { %3221 = vadd.xlane.f32.xlu0 %v3220_v54 }
 0xa58   :  { %v3201_v39 = vpop.f32.mrf.mxu1 }
 0xa59   :  { %v3202_v27 = vadd.f32 %v5806_v15, %v3201_v39 }
 0xa5b   :  { %v3214_v17 = vadd.f32 %v3202_v27, %v6480_v24 }
 0xa5d   :  { %v3223_v58 = vsel %vm102_vm1, %v3214_v17, 0.0 }
 0xa5e   :  { %3224 = vadd.xlane.f32.xlu2 %v3223_v58  ;;  %v5861_v58 = vld [vmem:[%s5950_s3 + $0x4] ss:$0 sm:$0xff] }
 0xa86   :  { %v3204_v33 = vpop.f32.mrf.mxu1 }
 0xa87   :  { %v3205_v49 = vadd.f32 %v5806_v15, %v3204_v33 }
 0xa89   :  { %v5819_v28 = vadd.f32 %v3205_v49, %v6481_v34 }
 0xa8b   :  { %v3226_v60 = vsel %vm102_vm1, %v5819_v28, 0.0 }
 0xa8c   :  { %3227 = vadd.xlane.f32.xlu1 %v3226_v60  ;;  %v5866_v60 = vld [vmem:[%s5950_s3 + $0x5] ss:$0 sm:$0xff] }
 0xa8e   :  { %v3206_v18 = vpop.f32.mrf.mxu1 }
 0xa8f   :  { %v3207_v62 = vadd.f32 %v5806_v15, %v3206_v18 }
 0xa91   :  { %v3216_v7 = vadd.f32 %v3207_v62, %v6482_v59 }
 0xa93   :  { %v3229_v52 = vsel %vm102_vm1, %v3216_v7, 0.0 }
 0xa94   :  { %3230 = vadd.xlane.f32.xlu0 %v3229_v52 }
 0xa97   :  { %v2104_v38 = vpop.xlane.xlu1 %2103 }
 0xa98   :  { %3948 = vrcp.f32 %v2104_v38 }
 0xa9e   :  { %v3949_v23 = vpop.eup %3948 }
 0xa9f   :  { %v2152_v32 = vmul.f32 %v3949_v23, %v3947_v36 }
 0xaa1   :  { %v2176_v37 = vpack.c.bf16 %v2152_v32, %v2152_v32 }
 0xaa3   :  { %v2735_v35 = vunpack.c.l.b16 %v2176_v37 }
 0xaa5   :  { %v2737_v2 = vpack.c.b16 %v2735_v35, %v2735_v35 }
 0xaa7   :  { %3706 = vmatmul.msk.bf16.gmra.mxu3 %vm1887_vm10, %v2737_v2 }
 0xac9   :  { %v3222_v16 = vpop.xlane.xlu0 %3221 }
 0xaca   :  { %v3235_v30 = vmul.f32 %v3222_v16, %v6483_v42 }
 0xacc   :  { %v3240_v50 = vsub.f32 %v5810_v3, %v3235_v30 }
 0xace   :  { %v3245_v12 = vmul.f32 %v3240_v50, %v3240_v50 }
 0xad0   :  { %v3250_v11 = vsel %vm102_vm1, %v3245_v12, 0.0 }
 0xad1   :  { %v3225_v6 = vpop.xlane.xlu2 %3224  ;;  %3251 = vadd.xlane.f32.xlu2 %v3250_v11 }
 0xad2   :  { %v3236_v51 = vmul.f32 %v3225_v6, %v6483_v42 }
 0xad4   :  { %v3241_v10 = vsub.f32 %v3214_v17, %v3236_v51 }
 0xad6   :  { %v3246_v25 = vmul.f32 %v3241_v10, %v3241_v10 }
 0xad8   :  { %v3253_v45 = vsel %vm102_vm1, %v3246_v25, 0.0 }
 0xad9   :  { %3254 = vadd.xlane.f32.xlu1 %v3253_v45 }
 0xaf2   :  { %3019 = vrot.lane.b32.xlu1 %v5764_v22, %s4015_s28 }
 0xaff   :  { %v3228_v0 = vpop.xlane.xlu1 %3227 }
 0xb00   :  { %v3237_v1 = vmul.f32 %v3228_v0, %v6483_v42 }
 0xb02   :  { %v5836_v26 = vsub.f32 %v5819_v28, %v3237_v1 }
 0xb04   :  { %v3247_v21 = vmul.f32 %v5836_v26, %v5836_v26 }
 0xb06   :  { %v3256_v63 = vsel %vm102_vm1, %v3247_v21, 0.0 }
 0xb07   :  { %v3231_v61 = vpop.xlane.xlu0 %3230  ;;  %3257 = vadd.xlane.f32.xlu0 %v3256_v63 }
 0xb08   :  { %v3238_v53 = vmul.f32 %v3231_v61, %v6483_v42 }
 0xb0a   :  { %v5842_v19 = vsub.f32 %v3216_v7, %v3238_v53 }
 0xb0c   :  { %v3248_v22 = vmul.f32 %v5842_v19, %v5842_v19 }
 0xb0e   :  { %v3259_v14 = vsel %vm102_vm1, %v3248_v22, 0.0 }
 0xb0f   :  { %3260 = vadd.xlane.f32.xlu2 %v3259_v14 }
 0xb1b   :  { %3080 = vrot.lane.b32.xlu0 %v5769_v40, %s4016_s29  ;;  %v3769_v40 = vld [vmem:[%s5949_s2 + $0x38] sm:$0xff] }
 0xb1c   :  { %3379 = vmatpush.bf16.msra.mxu0 %v3769_v40 }
 0xb2a   :  { %v2774_v41 = vpop.f32.mrf.mxu3 }
 0xb2b   :  { %3131 = vst [vmem:[#allocation1 + $0x1] ss:$9 sm:$0xff] %v2774_v41 }
 0xb32   :  { %v2776_v43 = vpop.f32.mrf.mxu3  ;;  %v3132_v48 = vld [vmem:[#allocation1] sm:$0xff] }
 0xb33   :  { %3141 = vrot.lane.b32.xlu2 %v3132_v48, %s4017_s30 }
 0xb44   :  { %v3252_v31 = vpop.xlane.xlu2 %3251 }
 0xb45   :  { %v3265_v13 = vmul.f32 %v3252_v31, %v6483_v42 }
 0xb47   :  { %v3270_v29 = vadd.f32 1e-05, %v3265_v13 }
 0xb49   :  { %3950 = vrsqrt.f32 %v3270_v29  ;;  %vm3281_vm15 = vweird.f32 %v3270_v29 }
 0xb4c   :  { %v3255_v4 = vpop.xlane.xlu1 %3254 }
 0xb4d   :  { %v3266_v55 = vmul.f32 %v3255_v4, %v6483_v42 }
 0xb4f   :  { %v3951_v8 = vpop.eup %3950  ;;  %v3271_v47 = vadd.f32 1e-05, %v3266_v55 }
 0xb50   :  { %v3276_v5 = vmul.f32 %v3951_v8, %v3270_v29  ;;  %vm3282_vm14 = vweird.f32 %v3951_v8 }
 0xb51   :  { %3952 = vrsqrt.f32 %v3271_v47  ;;  %vm3283_vm0 = vmor %vm3281_vm15, %vm3282_vm14  ;;  %vm3291_vm5 = vweird.f32 %v3271_v47 }
 0xb52   :  { %v3277_v36 = vmul.f32 %v3951_v8, %v3276_v5 }
 0xb54   :  { %v3278_v20 = vmul.f32 0.5, %v3277_v36 }
 0xb56   :  { %v3279_v46 = vsub.f32 1.5, %v3278_v20 }
 0xb57   :  { %v3953_v56 = vpop.eup %3952 }
 0xb58   :  { %v3280_v9 = vmul.f32 %v3951_v8, %v3279_v46  ;;  %v3286_v54 = vmul.f32 %v3953_v56, %v3271_v47  ;;  %vm3292_vm4 = vweird.f32 %v3953_v56  ;;  %v3774_v46 = vld [vmem:[%s5949_s2 + $0x60] sm:$0xff] }
 0xb59   :  { %vm3293_vm6 = vmor %vm3291_vm5, %vm3292_vm4  ;;  %3551 = vmatpush.bf16.msrb.mxu2 %v3774_v46 }
 0xb5a   :  { %v3287_v39 = vmul.f32 %v3953_v56, %v3286_v54  ;;  %v3284_v27 = vsel %vm3283_vm0, %v3951_v8, %v3280_v9  ;;  %v3773_v9 = vld [vmem:[%s5949_s2 + $0x58] sm:$0xff] }
 0xb5b   :  { %v3325_v33 = vmul.f32 %v3284_v27, %v3240_v50 }
 0xb5c   :  { %v3288_v24 = vmul.f32 0.5, %v3287_v39 }
 0xb5d   :  { %v3331_v18 = vmul.f32 %v5861_v58, %v3325_v33  ;;  %3552 = vmatpush.bf16.msrb.mxu2 %v3773_v9 }
 0xb5e   :  { %v3289_v17 = vsub.f32 1.5, %v3288_v24  ;;  %v3772_v24 = vld [vmem:[%s5949_s2 + $0x50] sm:$0xff] }
 0xb5f   :  { %v3337_v7 = vadd.f32 %v5866_v60, %v3331_v18 }
 0xb60   :  { %v3290_v49 = vmul.f32 %v3953_v56, %v3289_v17  ;;  %v3771_v17 = vld [vmem:[%s5949_s2 + $0x48] sm:$0xff] }
 0xb61   :  { %3553 = vmatpush.bf16.msrb.mxu2 %v3772_v24 }
 0xb62   :  { %v3294_v34 = vsel %vm3293_vm6, %v3953_v56, %v3290_v49 }
 0xb63   :  { %v3326_v62 = vmul.f32 %v3294_v34, %v3241_v10 }
 0xb64   :  { %v3020_v11 = vpop.permute.xlu1 %3019 }
 0xb65   :  { %v3332_v59 = vmul.f32 %v5861_v58, %v3326_v62  ;;  %v3152_v25 = vsel %vm1506_vm9, %v5756_v57, %v3020_v11  ;;  %3554 = vmatpush.bf16.msrb.mxu2 %v3771_v17 }
 0xb67   :  { %v3338_v38 = vadd.f32 %v5866_v60, %v3332_v59 }
 0xb69   :  { %v3342_v52 = vpack.c.bf16 %v3338_v38, %v3337_v7 }
 0xb6b   :  { %3726 = vmatmul.msk.bf16.vlgmr.msra.gmra.mxu0 %vm102_vm1, %v3342_v52 }
 0xb7a   :  { %v3258_v23 = vpop.xlane.xlu0 %3257 }
 0xb7b   :  { %v3267_v32 = vmul.f32 %v3258_v23, %v6483_v42 }
 0xb7d   :  { %v3272_v37 = vadd.f32 1e-05, %v3267_v32 }
 0xb7f   :  { %3954 = vrsqrt.f32 %v3272_v37  ;;  %vm3301_vm8 = vweird.f32 %v3272_v37 }
 0xb82   :  { %v3261_v35 = vpop.xlane.xlu2 %3260 }
 0xb83   :  { %v3268_v2 = vmul.f32 %v3261_v35, %v6483_v42 }
 0xb85   :  { %v3955_v16 = vpop.eup %3954  ;;  %v3273_v30 = vadd.f32 1e-05, %v3268_v2 }
 0xb86   :  { %v3296_v50 = vmul.f32 %v3955_v16, %v3272_v37  ;;  %vm3302_vm7 = vweird.f32 %v3955_v16 }
 0xb87   :  { %3956 = vrsqrt.f32 %v3273_v30  ;;  %vm3303_vm10 = vmor %vm3301_vm8, %vm3302_vm7  ;;  %vm3311_vm9 = vweird.f32 %v3273_v30  ;;  %vm3537_vm8 = vcmask 523264  }
 0xb88   :  { %v3297_v12 = vmul.f32 %v3955_v16, %v3296_v50 }
 0xb8a   :  { %v3298_v6 = vmul.f32 0.5, %v3297_v12 }
 0xb8c   :  { %v3299_v51 = vsub.f32 1.5, %v3298_v6 }
 0xb8d   :  { %v3957_v10 = vpop.eup %3956  ;;  %v3081_v45 = vpop.permute.xlu0 %3080 }
 0xb8e   :  { %v3300_v0 = vmul.f32 %v3955_v16, %v3299_v51  ;;  %v3306_v1 = vmul.f32 %v3957_v10, %v3273_v30  ;;  %v3142_v21 = vpop.permute.xlu2 %3141  ;;  %v3158_v63 = vsel %vm3153_vm12, %v3152_v25, %v3081_v45  ;;  %vm3312_vm11 = vweird.f32 %v3957_v10 }
 0xb8f   :  { %v3164_v61 = vsel %vm3159_vm13, %v3158_v63, %v3142_v21  ;;  %vm3313_vm14 = vmor %vm3311_vm9, %vm3312_vm11  ;;  %v6484_v63 = vld [vmem:[#allocation10_spill] sm:$0xff] }
 0xb90   :  { %v3307_v53 = vmul.f32 %v3957_v10, %v3306_v1  ;;  %v3167_v22 = vpack.c.bf16 %v3164_v61, %v3164_v61  ;;  %v3304_v14 = vsel %vm3303_vm10, %v3955_v16, %v3300_v0 }
 0xb91   :  { %v3327_v57 = vmul.f32 %v3304_v14, %v5836_v26  ;;  %v5890_v26 = vld [vmem:[%s5950_s3 + $0xa] ss:$0 sm:$0xff] }
 0xb92   :  { %v3308_v41 = vmul.f32 0.5, %v3307_v53  ;;  %3717 = vmatmul.msk.bf16.gmra.mxu1 %vm102_vm1, %v3167_v22 }
 0xb93   :  { %v3333_v29 = vmul.f32 %v5861_v58, %v3327_v57 }
 0xb94   :  { %v3309_v43 = vsub.f32 1.5, %v3308_v41 }
 0xb95   :  { %v3339_v40 = vadd.f32 %v5866_v60, %v3333_v29 }
 0xb96   :  { %v3310_v48 = vmul.f32 %v3957_v10, %v3309_v43 }
 0xb98   :  { %v3314_v31 = vsel %vm3313_vm14, %v3957_v10, %v3310_v48 }
 0xb99   :  { %v3328_v13 = vmul.f32 %v3314_v31, %v5842_v19 }
 0xb9b   :  { %v3334_v44 = vmul.f32 %v5861_v58, %v3328_v13 }
 0xb9d   :  { %v3340_v4 = vadd.f32 %v5866_v60, %v3334_v44 }
 0xb9f   :  { %v3343_v55 = vpack.c.bf16 %v3340_v4, %v3339_v40 }
 0xba1   :  { %3727 = vmatmul.msk.bf16.gmra.mxu0 %vm102_vm1, %v3343_v55 }
 0xbe8   :  { %v3381_v8 = vpop.f32.mrf.mxu0 }
 0xbe9   :  { %v3382_v47 = vadd.f32 %v5890_v26, %v3381_v8 }
 0xbeb   :  { %v3729_v19 = vmul.f32 -1.702, %v3382_v47 }
 0xbed   :  { %v3405_v5 = vmul.f32 1.442695, %v3729_v19 }
 0xbef   :  { %3958 = vpow2.f32 %v3405_v5 }
 0xbf0   :  { %v3383_v36 = vpop.f32.mrf.mxu0 }
 0xbf1   :  { %v3384_v20 = vadd.f32 %v5890_v26, %v3383_v36 }
 0xbf3   :  { %v3730_v56 = vmul.f32 -1.702, %v3384_v20 }
 0xbf5   :  { %v3959_v54 = vpop.eup %3958  ;;  %v3407_v39 = vmul.f32 1.442695, %v3730_v56 }
 0xbf6   :  { %v3415_v27 = vadd.f32 1.0, %v3959_v54 }
 0xbf7   :  { %3960 = vpow2.f32 %v3407_v39 }
 0xbf8   :  { %3962 = vrcp.f32 %v3415_v27  ;;  %v3431_v23 = vand.u32 2147483648, %v3415_v27  ;;  %vm3425_vm13 = vweird.f32 %v3415_v27  ;;  %v3429_v32 = vand.u32 2147483647, %v3415_v27 }
 0xbfa   :  { %v3432_v50 = vor.u32 1.1754944e-38, %v3431_v23  ;;  %vm3430_vm4 = vcmp.eq.f32.partialorder %v3429_v32, 8.507059e+37 }
 0xbfd   :  { %v3961_v33 = vpop.eup %3960 }
 0xbfe   :  { %v3963_v49 = vpop.eup %3962  ;;  %v3416_v34 = vadd.f32 1.0, %v3961_v33 }
 0xbff   :  { %v3421_v18 = vmul.f32 %v3963_v49, %v3415_v27  ;;  %vm3426_vm12 = vweird.f32 %v3963_v49 }
 0xc00   :  { %3964 = vrcp.f32 %v3416_v34  ;;  %vm3427_vm15 = vmor %vm3425_vm13, %vm3426_vm12  ;;  %v3446_v35 = vand.u32 2147483648, %v3416_v34  ;;  %v3444_v30 = vand.u32 2147483647, %v3416_v34  ;;  %vm3440_vm5 = vweird.f32 %v3416_v34 }
 0xc01   :  { %v3422_v62 = vsub.f32 1.0, %v3421_v18 }
 0xc02   :  { %v3447_v6 = vor.u32 1.1754944e-38, %v3446_v35  ;;  %vm3445_vm7 = vcmp.eq.f32.partialorder %v3444_v30, 8.507059e+37  ;;  %v3829_v30 = vld [vmem:[%s5950_s3 + $0xb] ss:$0 sm:$0xff] }
 0xc03   :  { %v3423_v59 = vmul.f32 %v3963_v49, %v3422_v62 }
 0xc05   :  { %v3424_v38 = vadd.f32 %v3963_v49, %v3423_v59 }
 0xc06   :  { %v3965_v7 = vpop.eup %3964 }
 0xc07   :  { %v3436_v52 = vmul.f32 %v3965_v7, %v3416_v34  ;;  %v3428_v2 = vsel %vm3427_vm15, %v3963_v49, %v3424_v38  ;;  %vm3441_vm0 = vweird.f32 %v3965_v7 }
 0xc08   :  { %v3433_v11 = vsel %vm3430_vm4, %v3432_v50, %v3428_v2  ;;  %vm3442_vm6 = vmor %vm3440_vm5, %vm3441_vm0 }
 0xc09   :  { %v3437_v37 = vsub.f32 1.0, %v3436_v52  ;;  %v3495_v25 = vmul.f32 %v3433_v11, %v3382_v47 }
 0xc0b   :  { %v3438_v16 = vmul.f32 %v3965_v7, %v3437_v37 }
 0xc0d   :  { %v3439_v12 = vadd.f32 %v3965_v7, %v3438_v16 }
 0xc0f   :  { %v3443_v51 = vsel %vm3442_vm6, %v3965_v7, %v3439_v12  ;;  %v3209_v1 = vpop.f32.mrf.mxu1 }
 0xc10   :  { %v3448_v10 = vsel %vm3445_vm7, %v3447_v6, %v3443_v51  ;;  %v3210_v21 = vadd.f32 %v5806_v15, %v3209_v1 }
 0xc11   :  { %v3496_v45 = vmul.f32 %v3448_v10, %v3384_v20 }
 0xc12   :  { %v3217_v61 = vadd.f32 %v3210_v21, %v6484_v63 }
 0xc13   :  { %v3500_v0 = vpack.c.bf16 %v3496_v45, %v3495_v25 }
 0xc14   :  { %v3232_v53 = vsel %vm115_vm3, %v3217_v61, 0.0 }
 0xc15   :  { %3750 = vmatmul.msk.bf16.vlgmr.msrb.gmra.mxu2 %vm3537_vm8, %v3500_v0  ;;  %3233 = vadd.xlane.f32.xlu0 %v3232_v53 }
 0xc17   :  { %v3211_v22 = vpop.f32.mrf.mxu1 }
 0xc1e   :  { %v3386_v14 = vpop.f32.mrf.mxu0 }
 0xc1f   :  { %v3387_v41 = vadd.f32 %v5890_v26, %v3386_v14 }
 0xc21   :  { %v3731_v43 = vmul.f32 -1.702, %v3387_v41 }
 0xc23   :  { %v3409_v57 = vmul.f32 1.442695, %v3731_v43 }
 0xc25   :  { %3966 = vpow2.f32 %v3409_v57 }
 0xc26   :  { %v3388_v48 = vpop.f32.mrf.mxu0 }
 0xc27   :  { %v3389_v31 = vadd.f32 %v5890_v26, %v3388_v48 }
 0xc29   :  { %v3732_v13 = vmul.f32 -1.702, %v3389_v31 }
 0xc2b   :  { %v3967_v29 = vpop.eup %3966  ;;  %v3411_v44 = vmul.f32 1.442695, %v3732_v13 }
 0xc2c   :  { %v3417_v40 = vadd.f32 1.0, %v3967_v29 }
 0xc2d   :  { %3968 = vpow2.f32 %v3411_v44 }
 0xc2e   :  { %3970 = vrcp.f32 %v3417_v40  ;;  %v3461_v46 = vand.u32 2147483648, %v3417_v40  ;;  %vm3455_vm11 = vweird.f32 %v3417_v40  ;;  %v3459_v56 = vand.u32 2147483647, %v3417_v40 }
 0xc30   :  { %v3462_v17 = vor.u32 1.1754944e-38, %v3461_v46  ;;  %vm3460_vm12 = vcmp.eq.f32.partialorder %v3459_v56, 8.507059e+37 }
 0xc33   :  { %v3969_v15 = vpop.eup %3968 }
 0xc34   :  { %v3971_v4 = vpop.eup %3970  ;;  %v3418_v55 = vadd.f32 1.0, %v3969_v15 }
 0xc35   :  { %v3451_v8 = vmul.f32 %v3971_v4, %v3417_v40  ;;  %vm3456_vm10 = vweird.f32 %v3971_v4 }
 0xc36   :  { %3972 = vrcp.f32 %v3418_v55  ;;  %vm3457_vm9 = vmor %vm3455_vm11, %vm3456_vm10  ;;  %v3476_v54 = vand.u32 2147483648, %v3418_v55  ;;  %v3474_v24 = vand.u32 2147483647, %v3418_v55  ;;  %vm3470_vm13 = vweird.f32 %v3418_v55 }
 0xc37   :  { %v3452_v47 = vsub.f32 1.0, %v3451_v8 }
 0xc38   :  { %v3477_v34 = vor.u32 1.1754944e-38, %v3476_v54  ;;  %vm3475_vm0 = vcmp.eq.f32.partialorder %v3474_v24, 8.507059e+37 }
 0xc39   :  { %v3453_v19 = vmul.f32 %v3971_v4, %v3452_v47 }
 0xc3b   :  { %v3454_v36 = vadd.f32 %v3971_v4, %v3453_v19 }
 0xc3c   :  { %v3973_v5 = vpop.eup %3972 }
 0xc3d   :  { %v3466_v20 = vmul.f32 %v3973_v5, %v3418_v55  ;;  %v3458_v39 = vsel %vm3457_vm9, %v3971_v4, %v3454_v36  ;;  %vm3471_vm14 = vweird.f32 %v3973_v5 }
 0xc3e   :  { %v3463_v49 = vsel %vm3460_vm12, %v3462_v17, %v3458_v39  ;;  %vm3472_vm15 = vmor %vm3470_vm13, %vm3471_vm14 }
 0xc3f   :  { %v3467_v9 = vsub.f32 1.0, %v3466_v20  ;;  %v3497_v59 = vmul.f32 %v3463_v49, %v3387_v41 }
 0xc41   :  { %v3468_v27 = vmul.f32 %v3973_v5, %v3467_v9 }
 0xc43   :  { %v3469_v33 = vadd.f32 %v3973_v5, %v3468_v27  ;;  %v3775_v27 = vld [vmem:[%s5949_s2 + $0x68] sm:$0xff] }
 0xc45   :  { %v3473_v18 = vsel %vm3472_vm15, %v3973_v5, %v3469_v33 }
 0xc46   :  { %v3478_v62 = vsel %vm3475_vm0, %v3477_v34, %v3473_v18 }
 0xc47   :  { %v3498_v7 = vmul.f32 %v3478_v62, %v3389_v31 }
 0xc49   :  { %v3501_v38 = vpack.c.bf16 %v3498_v7, %v3497_v59 }
 0xc4b   :  { %3751 = vmatmul.msk.bf16.gmra.mxu2 %vm3537_vm8, %v3501_v38 }
 0xc88   :  { %v3234_v52 = vpop.xlane.xlu0 %3233 }
 0xc89   :  { %v3239_v23 = vmul.f32 %v3234_v52, %v6483_v42 }
 0xc8b   :  { %v3244_v32 = vsub.f32 %v3217_v61, %v3239_v23 }
 0xc8d   :  { %v3249_v37 = vmul.f32 %v3244_v32, %v3244_v32 }
 0xc8f   :  { %v3262_v35 = vsel %vm115_vm3, %v3249_v37, 0.0 }
 0xc90   :  { %3263 = vadd.xlane.f32.xlu1 %v3262_v35 }
 0xc98   :  { %v3556_v2 = vpop.f32.mrf.mxu2 }
 0xc99   :  { %v3557_v50 = vadd.f32 %v3829_v30, %v3556_v2 }
 0xc9b   :  { %v3567_v6 = vadd.f32 %v3557_v50, %v5810_v3 }
 0xca0   :  { %v3558_v16 = vpop.f32.mrf.mxu2 }
 0xcce   :  { %v3560_v12 = vpop.f32.mrf.mxu2 }
 0xccf   :  { %v3561_v11 = vadd.f32 %v3829_v30, %v3560_v12 }
 0xcd1   :  { %v3568_v51 = vadd.f32 %v3561_v11, %v5819_v28 }
 0xcd3   :  { %v3569_v10 = vsel %vm39_vm2, %v3567_v6, %v3568_v51 }
 0xcd4   :  { %v3572_v25 = vsel %vm115_vm3, %v3569_v10, 0.0 }
 0xcd5   :  { %3573 = vadd.xlane.f32.xlu2 %v3572_v25 }
 0xcd6   :  { %v3562_v45 = vpop.f32.mrf.mxu2 }
 0xd03   :  { %v3264_v0 = vpop.xlane.xlu1 %3263 }
 0xd04   :  { %v3269_v1 = vmul.f32 %v3264_v0, %v6483_v42 }
 0xd06   :  { %v3274_v21 = vadd.f32 1e-05, %v3269_v1 }
 0xd08   :  { %3974 = vrsqrt.f32 %v3274_v21  ;;  %vm3321_vm5 = vweird.f32 %v3274_v21 }
 0xd0e   :  { %v3975_v63 = vpop.eup %3974 }
 0xd0f   :  { %v3316_v61 = vmul.f32 %v3975_v63, %v3274_v21  ;;  %vm3322_vm4 = vweird.f32 %v3975_v63 }
 0xd10   :  { %vm3323_vm6 = vmor %vm3321_vm5, %vm3322_vm4 }
 0xd11   :  { %v3317_v53 = vmul.f32 %v3975_v63, %v3316_v61 }
 0xd13   :  { %v3318_v22 = vmul.f32 0.5, %v3317_v53 }
 0xd15   :  { %v3319_v14 = vsub.f32 1.5, %v3318_v22 }
 0xd17   :  { %v3320_v3 = vmul.f32 %v3975_v63, %v3319_v14 }
 0xd19   :  { %v3324_v28 = vsel %vm3323_vm6, %v3975_v63, %v3320_v3 }
 0xd1a   :  { %v3329_v41 = vmul.f32 %v3324_v28, %v3244_v32  ;;  %v3830_v32 = vld [vmem:[%s5950_s3 + $0x6] ss:$0 sm:$0xff] }
 0xd1c   :  { %v3335_v43 = vmul.f32 %v5861_v58, %v3329_v41 }
 0xd1e   :  { %v3341_v57 = vadd.f32 %v5866_v60, %v3335_v43 }
 0xd20   :  { %v3344_v48 = vpack.c.bf16 %v3341_v57, %v3341_v57 }
 0xd22   :  { %3728 = vmatmul.msk.bf16.gmra.mxu0 %vm102_vm1, %v3344_v48 }
 0xd48   :  { %v3574_v31 = vpop.xlane.xlu2 %3573 }
 0xd49   :  { %v3575_v13 = vmul.f32 %v3574_v31, %v6483_v42 }
 0xd4b   :  { %v3576_v29 = vsub.f32 %v3569_v10, %v3575_v13 }
 0xd4d   :  { %v3577_v44 = vmul.f32 %v3576_v29, %v3576_v29 }
 0xd4f   :  { %v3578_v40 = vsel %vm115_vm3, %v3577_v44, 0.0 }
 0xd50   :  { %3579 = vadd.xlane.f32.xlu0 %v3578_v40 }
 0xd9f   :  { %v3391_v15 = vpop.f32.mrf.mxu0 }
 0xda0   :  { %v3392_v4 = vadd.f32 %v5890_v26, %v3391_v15  ;;  %v3776_v26 = vld [vmem:[%s5949_s2 + $0x70] sm:$0xff] }
 0xda1   :  { %3624 = vmatpush.bf16.msra.mxu3 %v3776_v26 }
 0xda2   :  { %v3733_v55 = vmul.f32 -1.702, %v3392_v4 }
 0xda4   :  { %v3413_v8 = vmul.f32 1.442695, %v3733_v55 }
 0xda5   :  { %3625 = vmatpush.bf16.msra.mxu3 %v3775_v27 }
 0xda6   :  { %3976 = vpow2.f32 %v3413_v8 }
 0xda7   :  { %v3393_v58 = vpop.f32.mrf.mxu0 }
 0xdac   :  { %v3977_v47 = vpop.eup %3976 }
 0xdad   :  { %v3419_v60 = vadd.f32 1.0, %v3977_v47 }
 0xdaf   :  { %3978 = vrcp.f32 %v3419_v60  ;;  %v3491_v20 = vand.u32 2147483648, %v3419_v60  ;;  %v3489_v56 = vand.u32 2147483647, %v3419_v60  ;;  %vm3485_vm3 = vweird.f32 %v3419_v60 }
 0xdb1   :  { %v3492_v54 = vor.u32 1.1754944e-38, %v3491_v20  ;;  %vm3490_vm10 = vcmp.eq.f32.partialorder %v3489_v56, 8.507059e+37 }
 0xdb5   :  { %v3979_v19 = vpop.eup %3978 }
 0xdb6   :  { %v3481_v5 = vmul.f32 %v3979_v19, %v3419_v60  ;;  %vm3486_vm2 = vweird.f32 %v3979_v19 }
 0xdb7   :  { %vm3487_vm7 = vmor %vm3485_vm3, %vm3486_vm2 }
 0xdb8   :  { %v3482_v36 = vsub.f32 1.0, %v3481_v5 }
 0xdba   :  { %v3483_v46 = vmul.f32 %v3979_v19, %v3482_v36 }
 0xdbc   :  { %v3484_v9 = vadd.f32 %v3979_v19, %v3483_v46 }
 0xdbe   :  { %v3488_v39 = vsel %vm3487_vm7, %v3979_v19, %v3484_v9 }
 0xdbf   :  { %v3493_v24 = vsel %vm3490_vm10, %v3492_v54, %v3488_v39 }
 0xdc0   :  { %v3499_v17 = vmul.f32 %v3493_v24, %v3392_v4 }
 0xdc2   :  { %v3502_v33 = vpack.c.bf16 %v3499_v17, %v3499_v17 }
 0xdc3   :  { %v3580_v49 = vpop.xlane.xlu0 %3579 }
 0xdc4   :  { %v3581_v34 = vmul.f32 %v3580_v49, %v6483_v42  ;;  %3752 = vmatmul.msk.bf16.gmra.mxu2 %vm3537_vm8, %v3502_v33  ;;  %v3831_v42 = vld [vmem:[%s5950_s3 + $0x7] ss:$0 sm:$0xff]  ;;  %vm3631_vm8 = vcmask 123904  }
 0xdc6   :  { %v3582_v18 = vadd.f32 1e-05, %v3581_v34 }
 0xdc8   :  { %3980 = vrsqrt.f32 %v3582_v18  ;;  %vm3589_vm9 = vweird.f32 %v3582_v18 }
 0xdce   :  { %v3981_v62 = vpop.eup %3980 }
 0xdcf   :  { %v3584_v59 = vmul.f32 %v3981_v62, %v3582_v18  ;;  %vm3590_vm11 = vweird.f32 %v3981_v62 }
 0xdd0   :  { %vm3591_vm14 = vmor %vm3589_vm9, %vm3590_vm11 }
 0xdd1   :  { %v3585_v7 = vmul.f32 %v3981_v62, %v3584_v59 }
 0xdd3   :  { %v3586_v38 = vmul.f32 0.5, %v3585_v7 }
 0xdd5   :  { %v3587_v52 = vsub.f32 1.5, %v3586_v38 }
 0xdd7   :  { %v3588_v23 = vmul.f32 %v3981_v62, %v3587_v52 }
 0xdd9   :  { %v3592_v37 = vsel %vm3591_vm14, %v3981_v62, %v3588_v23 }
 0xdda   :  { %v3593_v35 = vmul.f32 %v3592_v37, %v3576_v29 }
 0xddc   :  { %v3595_v2 = vmul.f32 %v3830_v32, %v3593_v35 }
 0xdde   :  { %v3597_v16 = vadd.f32 %v3831_v42, %v3595_v2 }
 0xde0   :  { %v3598_v30 = vpack.c.bf16 %v3597_v16, %v3597_v16 }
 0xde2   :  { %3761 = vmatmul.msk.bf16.vlgmr.msra.gmra.mxu3 %vm102_vm1, %v3598_v30 }
 0xe47   :  { %v3564_v50 = vpop.f32.mrf.mxu2 }
 0xe4f   :  { %v3565_v12 = vpop.f32.mrf.mxu2 }
 0xe65   :  { %v3627_v11 = vpop.f32.mrf.mxu3 }
 0xe66   :  { %3632 = vst.msk [vmem:[#allocation2] sm:$0x3] %vm3631_vm8, %v3627_v11 }
 0xe67   :  { %3643 = dma.vmem_to_hbm [thread:$0]  %s3639_s1, 32, %s3641_s12, [#allocation3]  }
 0xe6d   :  { %v3629_v6 = vpop.f32.mrf.mxu3 }
 0xe6e   :  { %4006 = dma.done.wait [#allocation3], 32  }
 0xe6f   :  { %4007 = vsyncadd [#allocation3], 4294967264 }
 0xe70   :  { %3648 = vsyncpa [#allocation3], 1 }

</bundles_post_ra>
